<compile_context>
chip_gen: v6e
topology: v6e:2x2x1
jax: 0.10.0
libtpu: 0.0.40
codegen_flags: <defaults>
</compile_context>

<pallas_src>
import functools

import jax
import jax.numpy as jnp
import numpy as np
from jax.experimental import pallas as pl
from jax.experimental.pallas import tpu as pltpu

_EPS = 1e-5
_LANES = 128
# Scoped-VMEM cap: sized from tile usage (< ~20 MiB at tile_m=512 for the widest layers)
# plus headroom; deliberately below v7x's 64 MiB physical per-TC VMEM.
_VMEM_LIMIT = 48 * 1024 * 1024


def _cparams(n_axes):
    return pltpu.CompilerParams(
        dimension_semantics=("parallel",) * n_axes,
        vmem_limit_bytes=_VMEM_LIMIT,
    )


def _ceil_to(x, m):
    return ((x + m - 1) // m) * m


# ----------------------------------------------------------------------------
# Kernel bodies
# ----------------------------------------------------------------------------
def _store_stats(st_ref, s, q):
    # Lane-dense, 8-sublane-aligned statistics block: row0 = sum, row1 = sum of squares.
    st_ref[0:1, :] = s
    st_ref[1:2, :] = q
    st_ref[2:8, :] = jnp.zeros((6, s.shape[-1]), jnp.float32)


def _conv1x1_stats_kernel(x_ref, w_ref, y_ref, st_ref):
    # 1x1 conv as GEMM on one M tile + per-tile per-channel sufficient statistics.
    y = jnp.dot(x_ref[...], w_ref[...], preferred_element_type=jnp.float32)
    y_ref[...] = y.astype(y_ref.dtype)
    _store_stats(st_ref,
                 jnp.sum(y, axis=0, keepdims=True),
                 jnp.sum(y * y, axis=0, keepdims=True))


def _conv3x3_fused_kernel(c_ref, mask_ref, sc_ref, sh_ref, w_ref,
                          y_ref, st_ref, act_ref, acc_ref, *, H, W):
    # c_ref   : ((H+2)*(W+2) padded, Pp) raw conv1 output, spatially zero-padded slab.
    # mask_ref: (R_pad, 1) 1.0 on interior pixels, 0.0 on the zero-padding border / tail.
    # BN1 (precomputed global scale/shift) + ReLU fused here; 9-tap overlapping-slab conv.
    Wp = W + 2
    Ro = H * Wp
    Cout = acc_ref.shape[-1]

    c = c_ref[...].astype(jnp.float32)
    a = mask_ref[...] * jnp.maximum(c * sc_ref[...] + sh_ref[...], 0.0)
    act_ref[...] = a.astype(act_ref.dtype)

    # Output row r = h*Wp + j; tap (ky,kx) reads slab row r + ky*Wp + kx.
    # Columns j in {W, W+1} are garbage and are dropped in the compaction below.
    for ky in range(3):
        for kx in range(3):
            t = ky * 3 + kx
            off = ky * Wp + kx
            p = jnp.dot(act_ref[off:off + Ro, :], w_ref[t],
                        preferred_element_type=jnp.float32)
            if t == 0:
                acc_ref[...] = p
            else:
                acc_ref[...] += p

    # Compact valid columns into the (H*W, Cout) output and accumulate BN2 sufficient
    # statistics from the same garbage-free rows.
    s = jnp.zeros((1, Cout), jnp.float32)
    q = jnp.zeros((1, Cout), jnp.float32)
    for h in range(H):
        row = acc_ref[h * Wp:h * Wp + W, :]
        y_ref[h * W:(h + 1) * W, :] = row.astype(y_ref.dtype)
        s = s + jnp.sum(row, axis=0, keepdims=True)
        q = q + jnp.sum(row * row, axis=0, keepdims=True)
    _store_stats(st_ref, s, q)


def _bn_relu_conv1x1_stats_kernel(y_ref, sc_ref, sh_ref, w_ref, o_ref, st_ref,
                                  *, tile_m, m_total, need_mask):
    # BN2-apply + ReLU fused into the conv3 GEMM; emits BN3 sufficient statistics.
    act = jnp.maximum(y_ref[...].astype(jnp.float32) * sc_ref[...] + sh_ref[...], 0.0)
    if need_mask:  # zero the padded M-tail so it cannot pollute BN3 statistics
        r = pl.program_id(0) * tile_m + jax.lax.broadcasted_iota(jnp.int32, (tile_m, 1), 0)
        act = jnp.where(r < m_total, act, 0.0)
    y = jnp.dot(act.astype(w_ref.dtype), w_ref[...], preferred_element_type=jnp.float32)
    o_ref[...] = y.astype(o_ref.dtype)
    _store_stats(st_ref,
                 jnp.sum(y, axis=0, keepdims=True),
                 jnp.sum(y * y, axis=0, keepdims=True))


def _bn_add_relu_kernel(y_ref, sc_ref, sh_ref, r_ref, o_ref):
    out = (y_ref[...].astype(jnp.float32) * sc_ref[...] + sh_ref[...]
           + r_ref[...].astype(jnp.float32))
    o_ref[...] = jnp.maximum(out, 0.0).astype(o_ref.dtype)


# ----------------------------------------------------------------------------
# pallas_call wrappers
# ----------------------------------------------------------------------------
def _conv1x1_stats(x2d, w, *, tile_m):
    Mp, K = x2d.shape
    Nc = w.shape[1]
    T = Mp // tile_m
    return pl.pallas_call(
        _conv1x1_stats_kernel,
        out_shape=(jax.ShapeDtypeStruct((Mp, Nc), x2d.dtype),
                   jax.ShapeDtypeStruct((T * 8, Nc), jnp.float32)),
        grid=(T,),
        in_specs=[pl.BlockSpec((tile_m, K), lambda i: (i, 0)),
                  pl.BlockSpec((K, Nc), lambda i: (0, 0))],
        out_specs=(pl.BlockSpec((tile_m, Nc), lambda i: (i, 0)),
                   pl.BlockSpec((8, Nc), lambda i: (i, 0))),
        compiler_params=_cparams(1),
    )(x2d, w)


def _conv3x3_fused(slab, mask, sc1, sh1, w2t, *, H, W, m_pad, out_dtype):
    N, R_pad, Pp = slab.shape
    Cout = w2t.shape[-1]
    HW = H * W
    kern = functools.partial(_conv3x3_fused_kernel, H=H, W=W)
    return pl.pallas_call(
        kern,
        out_shape=(jax.ShapeDtypeStruct((m_pad, Cout), out_dtype),
                   jax.ShapeDtypeStruct((N * 8, Cout), jnp.float32)),
        grid=(N,),
        in_specs=[pl.BlockSpec((None, R_pad, Pp), lambda n: (n, 0, 0)),
                  pl.BlockSpec((R_pad, 1), lambda n: (0, 0)),
                  pl.BlockSpec((1, Pp), lambda n: (0, 0)),
                  pl.BlockSpec((1, Pp), lambda n: (0, 0)),
                  pl.BlockSpec((9, Pp, Cout), lambda n: (0, 0, 0))],
        out_specs=(pl.BlockSpec((HW, Cout), lambda n: (n, 0)),
                   pl.BlockSpec((8, Cout), lambda n: (n, 0))),
        scratch_shapes=[pltpu.VMEM((R_pad, Pp), slab.dtype),
                        pltpu.VMEM((H * (W + 2), Cout), jnp.float32)],
        compiler_params=_cparams(1),
    )(slab, mask, sc1, sh1, w2t)


def _bn_relu_conv1x1_stats(y2, sc2, sh2, w3, *, tile_m, m_total):
    Mp, Cin = y2.shape
    Cout = w3.shape[1]
    T = Mp // tile_m
    kern = functools.partial(_bn_relu_conv1x1_stats_kernel, tile_m=tile_m,
                             m_total=m_total, need_mask=(Mp > m_total))
    return pl.pallas_call(
        kern,
        out_shape=(jax.ShapeDtypeStruct((Mp, Cout), y2.dtype),
                   jax.ShapeDtypeStruct((T * 8, Cout), jnp.float32)),
        grid=(T,),
        in_specs=[pl.BlockSpec((tile_m, Cin), lambda i: (i, 0)),
                  pl.BlockSpec((1, Cin), lambda i: (0, 0)),
                  pl.BlockSpec((1, Cin), lambda i: (0, 0)),
                  pl.BlockSpec((Cin, Cout), lambda i: (0, 0))],
        out_specs=(pl.BlockSpec((tile_m, Cout), lambda i: (i, 0)),
                   pl.BlockSpec((8, Cout), lambda i: (i, 0))),
        compiler_params=_cparams(1),
    )(y2, sc2, sh2, w3)


def _bn_add_relu(y3, sc3, sh3, res, *, tile_m):
    Mp, Nc = y3.shape
    T = Mp // tile_m
    return pl.pallas_call(
        _bn_add_relu_kernel,
        out_shape=jax.ShapeDtypeStruct((Mp, Nc), res.dtype),
        grid=(T,),
        in_specs=[pl.BlockSpec((tile_m, Nc), lambda i: (i, 0)),
                  pl.BlockSpec((1, Nc), lambda i: (0, 0)),
                  pl.BlockSpec((1, Nc), lambda i: (0, 0)),
                  pl.BlockSpec((tile_m, Nc), lambda i: (i, 0))],
        out_specs=pl.BlockSpec((tile_m, Nc), lambda i: (i, 0)),
        compiler_params=_cparams(1),
    )(y3, sc3, sh3, res)


# ----------------------------------------------------------------------------
# BN statistics fold (tiny (T, C) arrays -> (1, C) scale/shift, plain JAX)
# ----------------------------------------------------------------------------
def _fold_bn_stats(stats, gamma, beta, inv_count):
    # TODO(synk): E[x^2]-mean^2 on f32 sums can cancel for very large M; switch to
    #             per-tile mean-centered sums / a two-level reduction if that bites.
    st = stats.reshape(-1, 8, stats.shape[-1])
    s = jnp.sum(st[:, 0, :], axis=0, keepdims=True)
    q = jnp.sum(st[:, 1, :], axis=0, keepdims=True)
    mu = s * inv_count
    var = jnp.maximum(q * inv_count - mu * mu, 0.0)
    scale = gamma * jax.lax.rsqrt(var + _EPS)
    shift = beta - mu * scale
    return scale, shift


# ----------------------------------------------------------------------------
# Layout glue
# ----------------------------------------------------------------------------
def _pad2(a, rows, cols):
    return jnp.pad(a, ((0, rows - a.shape[0]), (0, cols - a.shape[1])))


def _pad_param(v, n, fill):
    v = v.reshape(1, -1).astype(jnp.float32)
    return jnp.pad(v, ((0, 0), (0, n - v.shape[1])), constant_values=fill)


# ----------------------------------------------------------------------------
# Bottleneck forward (NHWC core)
# ----------------------------------------------------------------------------
def bottleneck_forward_nhwc(x_nhwc, params, *, stride=1, block_m=512,
                            compute_dtype=jnp.bfloat16):
    """x_nhwc: (N, H, W, inplanes) float32; returns (N, H, W, 4*planes) in compute_dtype.
    Training-mode BatchNorm.  Requires stride == 1 and inplanes == 4*planes
    (the downsample-is-None configuration of the module)."""
    N, H, W, Cin = x_nhwc.shape
    w1, w2, w3 = params["w1"], params["w2"], params["w3"]
    planes = w1.shape[0]
    C3 = 4 * planes
    assert stride == 1 and Cin == C3, (
        "downsample is None => stride must be 1 and inplanes == 4*planes")
    assert (H * W) % 8 == 0, "H*W must be a multiple of 8 (see TODO for ragged sizes)"

    Pp = _ceil_to(planes, _LANES)
    C3p = _ceil_to(C3, _LANES)
    cd = compute_dtype

    M = N * H * W
    tile_m = min(block_m, _ceil_to(M, 16))      # multiple of 16 (bf16 sublane packing)
    M_pad = _ceil_to(M, tile_m)                 # fixed tile + cdiv grid, masked tail
    inv_m = 1.0 / float(M)

    # --- parameters: GEMM layout, lane-padded channels, f32 BN affine ---
    w1m = _pad2(jnp.transpose(w1.reshape(planes, Cin), (1, 0)), C3p, Pp).astype(cd)
    w2t = jnp.transpose(w2, (2, 3, 1, 0)).reshape(9, planes, planes)   # (t=ky*3+kx, ci, co)
    w2t = jnp.pad(w2t, ((0, 0), (0, Pp - planes), (0, Pp - planes))).astype(cd)
    w3m = _pad2(jnp.transpose(w3.reshape(C3, planes), (1, 0)), Pp, C3p).astype(cd)

    g1 = _pad_param(params["g1"], Pp, 1.0); b1 = _pad_param(params["b1"], Pp, 0.0)
    g2 = _pad_param(params["g2"], Pp, 1.0); b2 = _pad_param(params["b2"], Pp, 0.0)
    g3 = _pad_param(params["g3"], C3p, 1.0); b3 = _pad_param(params["b3"], C3p, 0.0)

    # --- input: flat NHWC rows, channel-padded to lanes, row-padded to the tile grid ---
    x2d = jnp.pad(x_nhwc, ((0, 0), (0, 0), (0, 0), (0, C3p - Cin)))
    x2d = x2d.reshape(M, C3p)
    x2d = jnp.pad(x2d, ((0, M_pad - M), (0, 0))).astype(cd)
    # NOTE: the residual added in the epilogue is this bf16-cast copy (production path).

    # conv1 (1x1 GEMM) + BN1 sufficient statistics; fold to scale/shift once.
    y1, st1 = _conv1x1_stats(x2d, w1m, tile_m=tile_m)
    sc1, sh1 = _fold_bn_stats(st1, g1, b1, inv_m)

    # conv2 (3x3, pad=1): one zero-padded slab per image (no 3x kx-concat);
    # BN1-apply + ReLU fused in-kernel with the padding border masked.
    Wp = W + 2
    R_in = (H + 2) * Wp
    R_pad = _ceil_to(R_in + 2, 8)               # +2 so the (ky=2,kx=2) tap never reads OOB
    a = y1[:M].reshape(N, H, W, Pp)
    a = jnp.pad(a, ((0, 0), (1, 1), (1, 1), (0, 0)))
    slab = jnp.pad(a.reshape(N, R_in, Pp), ((0, 0), (0, R_pad - R_in), (0, 0)))
    rr = np.arange(R_pad)
    valid = ((rr // Wp >= 1) & (rr // Wp <= H) &
             (rr % Wp >= 1) & (rr % Wp <= W) & (rr < R_in))
    mask = jnp.asarray(valid.astype(np.float32).reshape(R_pad, 1))
    y2, st2 = _conv3x3_fused(slab, mask, sc1, sh1, w2t,
                             H=H, W=W, m_pad=M_pad, out_dtype=cd)
    sc2, sh2 = _fold_bn_stats(st2, g2, b2, inv_m)

    # conv3 (1x1 GEMM) with BN2-apply + ReLU fused, emitting BN3 sufficient statistics.
    y3, st3 = _bn_relu_conv1x1_stats(y2, sc2, sh2, w3m, tile_m=tile_m, m_total=M)
    sc3, sh3 = _fold_bn_stats(st3, g3, b3, inv_m)

    # BN3-apply + residual add + ReLU (residual streamed in lockstep, compute-dtype output).
    out = _bn_add_relu(y3, sc3, sh3, x2d, tile_m=tile_m)
    return out[:M].reshape(N, H, W, C3p)[..., :C3]


def bottleneck_forward(x_nchw, params, *, stride=1, block_m=512,
                       compute_dtype=jnp.bfloat16):
    """NCHW wrapper for parity with the PyTorch module (a multi-block network should
    call bottleneck_forward_nhwc directly and stay NHWC between blocks)."""
    x_nhwc = jnp.transpose(x_nchw, (0, 2, 3, 1))
    out = bottleneck_forward_nhwc(x_nhwc, params, stride=stride, block_m=block_m,
                                  compute_dtype=compute_dtype)
    return jnp.transpose(out, (0, 3, 1, 2))


# ----------------------------------------------------------------------------
# Pure-JAX reference (correctness verification)
# ----------------------------------------------------------------------------
def _ref_forward(x, params, stride=1):
    def conv(x, w, s=1, p=0):
        return jax.lax.conv_general_dilated(
            x, w, (s, s), [(p, p), (p, p)],
            dimension_numbers=("NCHW", "OIHW", "NCHW"))

    def bn(x, g, b):
        mu = x.mean(axis=(0, 2, 3), keepdims=True)
        var = ((x - mu) ** 2).mean(axis=(0, 2, 3), keepdims=True)
        return (x - mu) * jax.lax.rsqrt(var + _EPS) * g.reshape(1, -1, 1, 1) \
               + b.reshape(1, -1, 1, 1)

    relu = lambda t: jnp.maximum(t, 0.0)
    out = relu(bn(conv(x, params["w1"]), params["g1"], params["b1"]))
    out = relu(bn(conv(out, params["w2"], s=stride, p=1), params["g2"], params["b2"]))
    out = bn(conv(out, params["w3"]), params["g3"], params["b3"])
    return relu(out + x)


def _make_params(key, planes, inplanes):
    k2, k3, k4 = jax.random.split(key, 3)
    return {
        "w1": 0.1 * jax.random.normal(k2, (planes, inplanes, 1, 1), dtype=jnp.float32),
        "w2": 0.1 * jax.random.normal(k3, (planes, planes, 3, 3), dtype=jnp.float32),
        "w3": 0.1 * jax.random.normal(k4, (planes * 4, planes, 1, 1), dtype=jnp.float32),
        "g1": 1.0 + 0.1 * jnp.arange(planes, dtype=jnp.float32),
        "b1": 0.05 * jnp.arange(planes, dtype=jnp.float32),
        "g2": 1.0 + 0.1 * jnp.arange(planes, dtype=jnp.float32),
        "b2": 0.05 * jnp.arange(planes, dtype=jnp.float32),
        "g3": 1.0 + 0.1 * jnp.arange(planes * 4, dtype=jnp.float32),
        "b3": 0.05 * jnp.arange(planes * 4, dtype=jnp.float32),
    }


# ----------------------------------------------------------------------------
if __name__ == "__main__":
    key = jax.random.PRNGKey(0)
    kx, kp, kx2, kp2 = jax.random.split(key, 4)

    # --- Config A: multi-tile BN statistics (block_m=128 => 4 M-tiles), bf16 + f32 paths ---
    N, H, W = 2, 16, 16
    planes = 4
    inplanes = planes * 4
    x = jax.random.normal(kx, (N, inplanes, H, W), dtype=jnp.float32)
    params = _make_params(kp, planes, inplanes)

    fwd_bf16 = jax.jit(functools.partial(
        bottleneck_forward, block_m=128, compute_dtype=jnp.bfloat16))
    fwd_f32 = jax.jit(functools.partial(
        bottleneck_forward, block_m=128, compute_dtype=jnp.float32))

    out_bf16 = jax.block_until_ready(fwd_bf16(x, params))
    out_f32 = jax.block_until_ready(fwd_f32(x, params))
    ref = np.asarray(_ref_forward(x, params))

    # f32 variant: tight structural check of tiling / indexing / BN-statistic logic.
    np.testing.assert_allclose(np.asarray(out_f32, dtype=np.float32), ref,
                               rtol=1e-3, atol=1e-3)
    # bf16 variant (production path): errors bounded at the bf16 level of the output range.
    diff = float(np.max(np.abs(np.asarray(out_bf16, dtype=np.float32) - ref)))
    scale = float(np.max(np.abs(ref)))
    if diff > 5e-2 * scale + 1e-2:
        raise AssertionError(f"bf16 path max error {diff} too large (output scale {scale})")

    # --- Config B: masked M-tail (M=144 padded to 256) and W not a multiple of 8 ---
    N2, H2, W2, planes2 = 1, 12, 12, 8
    inplanes2 = planes2 * 4
    x2 = jax.random.normal(kx2, (N2, inplanes2, H2, W2), dtype=jnp.float32)
    params2 = _make_params(kp2, planes2, inplanes2)
    fwd2_f32 = jax.jit(functools.partial(
        bottleneck_forward, block_m=128, compute_dtype=jnp.float32))
    out2 = jax.block_until_ready(fwd2_f32(x2, params2))
    ref2 = np.asarray(_ref_forward(x2, params2))
    np.testing.assert_allclose(np.asarray(out2, dtype=np.float32), ref2,
                               rtol=1e-3, atol=1e-3)

    print("KERNEL_OK")
</pallas_src>

<mosaic_0001>
module attributes {stable_mosaic.version = 11 : i64} {
  func.func @_conv1x1_stats_kernel(%arg0: i32, %arg1: memref<128x128xbf16, #tpu.memory_space<vmem>>, %arg2: memref<128x128xbf16, #tpu.memory_space<vmem>>, %arg3: memref<128x128xbf16, #tpu.memory_space<vmem>>, %arg4: memref<8x128xf32, #tpu.memory_space<vmem>>) attributes {dimension_semantics = [#tpu.dimension_semantics<parallel>], iteration_bounds = array<i64: 4>, scalar_prefetch = 0 : i64, scratch_operands = 0 : i64, tpu.core_type = #tpu.core_type<tc>, window_params = [{transform_indices = @transform_0, window_bounds = array<i64: 128, 128>}, {pipeline_mode = #tpu.pipeline_mode<synchronous>, transform_indices = @transform_1, window_bounds = array<i64: 128, 128>}, {transform_indices = @transform_2, window_bounds = array<i64: 128, 128>}, {transform_indices = @transform_3, window_bounds = array<i64: 8, 128>}]} {
    %c0 = arith.constant 0 : index
    %c0_0 = arith.constant 0 : index
    %0 = vector.load %arg1[%c0, %c0_0] : memref<128x128xbf16, #tpu.memory_space<vmem>>, vector<128x128xbf16>
    %c0_1 = arith.constant 0 : index
    %c0_2 = arith.constant 0 : index
    %1 = vector.load %arg2[%c0_1, %c0_2] : memref<128x128xbf16, #tpu.memory_space<vmem>>, vector<128x128xbf16>
    %cst = arith.constant dense<0.000000e+00> : vector<128x128xf32>
    %2 = tpu.matmul %0, %1, %cst {dimension_numbers = #tpu.dot_dimension_numbers<[1], [0], [0], [1], [0, 0, 1, 1], [], []>} : vector<128x128xbf16>, vector<128x128xbf16>, vector<128x128xf32> -> vector<128x128xf32>
    %3 = arith.truncf %2 : vector<128x128xf32> to vector<128x128xbf16>
    %c0_3 = arith.constant 0 : index
    %c0_4 = arith.constant 0 : index
    %4 = vector.load %arg3[%c0_3, %c0_4] : memref<128x128xbf16, #tpu.memory_space<vmem>>, vector<128x128xbf16>
    tpu.vector_store %arg3[%c0_3, %c0_4], %3 {strides = array<i32>} : memref<128x128xbf16, #tpu.memory_space<vmem>>, vector<128x128xbf16>,
    %cst_5 = arith.constant dense<0.000000e+00> : vector<128xf32>
    %5 = vector.multi_reduction <add>, %2, %cst_5 [0] : vector<128x128xf32> to vector<128xf32>
    %6 = vector.shape_cast %5 : vector<128xf32> to vector<1x128xf32>
    %7 = arith.mulf %2, %2 : vector<128x128xf32>
    %cst_6 = arith.constant dense<0.000000e+00> : vector<128xf32>
    %8 = vector.multi_reduction <add>, %7, %cst_6 [0] : vector<128x128xf32> to vector<128xf32>
    %9 = vector.shape_cast %8 : vector<128xf32> to vector<1x128xf32>
    %c0_7 = arith.constant 0 : index
    %c0_8 = arith.constant 0 : index
    %10 = vector.load %arg4[%c0_7, %c0_8] : memref<8x128xf32, #tpu.memory_space<vmem>>, vector<1x128xf32>
    tpu.vector_store %arg4[%c0_7, %c0_8], %6 {strides = array<i32>} : memref<8x128xf32, #tpu.memory_space<vmem>>, vector<1x128xf32>,
    %c1 = arith.constant 1 : index
    %c0_9 = arith.constant 0 : index
    %11 = vector.load %arg4[%c1, %c0_9] : memref<8x128xf32, #tpu.memory_space<vmem>>, vector<1x128xf32>
    tpu.vector_store %arg4[%c1, %c0_9], %9 {strides = array<i32>} : memref<8x128xf32, #tpu.memory_space<vmem>>, vector<1x128xf32>,
    %cst_10 = arith.constant 0.000000e+00 : f32
    %12 = vector.broadcast %cst_10 : f32 to vector<6x128xf32>
    %c2 = arith.constant 2 : index
    %c0_11 = arith.constant 0 : index
    %13 = vector.load %arg4[%c2, %c0_11] : memref<8x128xf32, #tpu.memory_space<vmem>>, vector<6x128xf32>
    tpu.vector_store %arg4[%c2, %c0_11], %12 {strides = array<i32>} : memref<8x128xf32, #tpu.memory_space<vmem>>, vector<6x128xf32>,
    return
  }
  func.func @transform_0(%arg0: i32) -> (i32, i32) {
    %c0_i32 = arith.constant 0 : i32
    %c0_i32_0 = arith.constant 0 : i32
    return %arg0, %c0_i32 : i32, i32
  }
  func.func @transform_1(%arg0: i32) -> (i32, i32) {
    %c0_i32 = arith.constant 0 : i32
    %c0_i32_0 = arith.constant 0 : i32
    %c0_i32_1 = arith.constant 0 : i32
    return %c0_i32, %c0_i32_0 : i32, i32
  }
  func.func @transform_2(%arg0: i32) -> (i32, i32) {
    %c0_i32 = arith.constant 0 : i32
    %c0_i32_0 = arith.constant 0 : i32
    return %arg0, %c0_i32 : i32, i32
  }
  func.func @transform_3(%arg0: i32) -> (i32, i32) {
    %c0_i32 = arith.constant 0 : i32
    %c0_i32_0 = arith.constant 0 : i32
    return %arg0, %c0_i32 : i32, i32
  }
}

module attributes {stable_mosaic.version = 11 : i64} {
  func.func @_bn_relu_conv1x1_stats_kernel(%arg0: i32, %arg1: memref<128x128xbf16, #tpu.memory_space<vmem>>, %arg2: memref<1x128xf32, #tpu.memory_space<vmem>>, %arg3: memref<1x128xf32, #tpu.memory_space<vmem>>, %arg4: memref<128x128xbf16, #tpu.memory_space<vmem>>, %arg5: memref<128x128xbf16, #tpu.memory_space<vmem>>, %arg6: memref<8x128xf32, #tpu.memory_space<vmem>>) attributes {dimension_semantics = [#tpu.dimension_semantics<parallel>], iteration_bounds = array<i64: 4>, scalar_prefetch = 0 : i64, scratch_operands = 0 : i64, tpu.core_type = #tpu.core_type<tc>, window_params = [{transform_indices = @transform_0, window_bounds = array<i64: 128, 128>}, {pipeline_mode = #tpu.pipeline_mode<synchronous>, transform_indices = @transform_1, window_bounds = array<i64: 1, 128>}, {pipeline_mode = #tpu.pipeline_mode<synchronous>, transform_indices = @transform_2, window_bounds = array<i64: 1, 128>}, {pipeline_mode = #tpu.pipeline_mode<synchronous>, transform_indices = @transform_3, window_bounds = array<i64: 128, 128>}, {transform_indices = @transform_4, window_bounds = array<i64: 128, 128>}, {transform_indices = @transform_5, window_bounds = array<i64: 8, 128>}]} {
    %c0 = arith.constant 0 : index
    %c0_0 = arith.constant 0 : index
    %0 = vector.load %arg1[%c0, %c0_0] : memref<128x128xbf16, #tpu.memory_space<vmem>>, vector<128x128xbf16>
    %1 = arith.extf %0 : vector<128x128xbf16> to vector<128x128xf32>
    %c0_1 = arith.constant 0 : index
    %c0_2 = arith.constant 0 : index
    %2 = vector.load %arg2[%c0_1, %c0_2] : memref<1x128xf32, #tpu.memory_space<vmem>>, vector<1x128xf32>
    %3 = vector.broadcast %2 : vector<1x128xf32> to vector<128x128xf32>
    %4 = arith.mulf %1, %3 : vector<128x128xf32>
    %c0_3 = arith.constant 0 : index
    %c0_4 = arith.constant 0 : index
    %5 = vector.load %arg3[%c0_3, %c0_4] : memref<1x128xf32, #tpu.memory_space<vmem>>, vector<1x128xf32>
    %6 = vector.broadcast %5 : vector<1x128xf32> to vector<128x128xf32>
    %7 = arith.addf %4, %6 : vector<128x128xf32>
    %cst = arith.constant 0.000000e+00 : f32
    %8 = vector.broadcast %cst : f32 to vector<128x128xf32>
    %9 = arith.maximumf %7, %8 : vector<128x128xf32>
    %10 = arith.truncf %9 : vector<128x128xf32> to vector<128x128xbf16>
    %c0_5 = arith.constant 0 : index
    %c0_6 = arith.constant 0 : index
    %11 = vector.load %arg4[%c0_5, %c0_6] : memref<128x128xbf16, #tpu.memory_space<vmem>>, vector<128x128xbf16>
    %cst_7 = arith.constant dense<0.000000e+00> : vector<128x128xf32>
    %12 = tpu.matmul %10, %11, %cst_7 {dimension_numbers = #tpu.dot_dimension_numbers<[1], [0], [0], [1], [0, 0, 1, 1], [], []>} : vector<128x128xbf16>, vector<128x128xbf16>, vector<128x128xf32> -> vector<128x128xf32>
    %13 = arith.truncf %12 : vector<128x128xf32> to vector<128x128xbf16>
    %c0_8 = arith.constant 0 : index
    %c0_9 = arith.constant 0 : index
    %14 = vector.load %arg5[%c0_8, %c0_9] : memref<128x128xbf16, #tpu.memory_space<vmem>>, vector<128x128xbf16>
    tpu.vector_store %arg5[%c0_8, %c0_9], %13 {strides = array<i32>} : memref<128x128xbf16, #tpu.memory_space<vmem>>, vector<128x128xbf16>,
    %cst_10 = arith.constant dense<0.000000e+00> : vector<128xf32>
    %15 = vector.multi_reduction <add>, %12, %cst_10 [0] : vector<128x128xf32> to vector<128xf32>
    %16 = vector.shape_cast %15 : vector<128xf32> to vector<1x128xf32>
    %17 = arith.mulf %12, %12 : vector<128x128xf32>
    %cst_11 = arith.constant dense<0.000000e+00> : vector<128xf32>
    %18 = vector.multi_reduction <add>, %17, %cst_11 [0] : vector<128x128xf32> to vector<128xf32>
    %19 = vector.shape_cast %18 : vector<128xf32> to vector<1x128xf32>
    %c0_12 = arith.constant 0 : index
    %c0_13 = arith.constant 0 : index
    %20 = vector.load %arg6[%c0_12, %c0_13] : memref<8x128xf32, #tpu.memory_space<vmem>>, vector<1x128xf32>
    tpu.vector_store %arg6[%c0_12, %c0_13], %16 {strides = array<i32>} : memref<8x128xf32, #tpu.memory_space<vmem>>, vector<1x128xf32>,
    %c1 = arith.constant 1 : index
    %c0_14 = arith.constant 0 : index
    %21 = vector.load %arg6[%c1, %c0_14] : memref<8x128xf32, #tpu.memory_space<vmem>>, vector<1x128xf32>
    tpu.vector_store %arg6[%c1, %c0_14], %19 {strides = array<i32>} : memref<8x128xf32, #tpu.memory_space<vmem>>, vector<1x128xf32>,
    %cst_15 = arith.constant 0.000000e+00 : f32
    %22 = vector.broadcast %cst_15 : f32 to vector<6x128xf32>
    %c2 = arith.constant 2 : index
    %c0_16 = arith.constant 0 : index
    %23 = vector.load %arg6[%c2, %c0_16] : memref<8x128xf32, #tpu.memory_space<vmem>>, vector<6x128xf32>
    tpu.vector_store %arg6[%c2, %c0_16], %22 {strides = array<i32>} : memref<8x128xf32, #tpu.memory_space<vmem>>, vector<6x128xf32>,
    return
  }
  func.func @transform_0(%arg0: i32) -> (i32, i32) {
    %c0_i32 = arith.constant 0 : i32
    %c0_i32_0 = arith.constant 0 : i32
    return %arg0, %c0_i32 : i32, i32
  }
  func.func @transform_1(%arg0: i32) -> (i32, i32) {
    %c0_i32 = arith.constant 0 : i32
    %c0_i32_0 = arith.constant 0 : i32
    %c0_i32_1 = arith.constant 0 : i32
    return %c0_i32, %c0_i32_0 : i32, i32
  }
  func.func @transform_2(%arg0: i32) -> (i32, i32) {
    %c0_i32 = arith.constant 0 : i32
    %c0_i32_0 = arith.constant 0 : i32
    %c0_i32_1 = arith.constant 0 : i32
    return %c0_i32, %c0_i32_0 : i32, i32
  }
  func.func @transform_3(%arg0: i32) -> (i32, i32) {
    %c0_i32 = arith.constant 0 : i32
    %c0_i32_0 = arith.constant 0 : i32
    %c0_i32_1 = arith.constant 0 : i32
    return %c0_i32, %c0_i32_0 : i32, i32
  }
  func.func @transform_4(%arg0: i32) -> (i32, i32) {
    %c0_i32 = arith.constant 0 : i32
    %c0_i32_0 = arith.constant 0 : i32
    return %arg0, %c0_i32 : i32, i32
  }
  func.func @transform_5(%arg0: i32) -> (i32, i32) {
    %c0_i32 = arith.constant 0 : i32
    %c0_i32_0 = arith.constant 0 : i32
    return %arg0, %c0_i32 : i32, i32
  }
}

module attributes {stable_mosaic.version = 11 : i64} {
  func.func @_bn_add_relu_kernel(%arg0: i32, %arg1: memref<128x128xbf16, #tpu.memory_space<vmem>>, %arg2: memref<1x128xf32, #tpu.memory_space<vmem>>, %arg3: memref<1x128xf32, #tpu.memory_space<vmem>>, %arg4: memref<128x128xbf16, #tpu.memory_space<vmem>>, %arg5: memref<128x128xbf16, #tpu.memory_space<vmem>>) attributes {dimension_semantics = [#tpu.dimension_semantics<parallel>], iteration_bounds = array<i64: 4>, scalar_prefetch = 0 : i64, scratch_operands = 0 : i64, tpu.core_type = #tpu.core_type<tc>, window_params = [{transform_indices = @transform_0, window_bounds = array<i64: 128, 128>}, {pipeline_mode = #tpu.pipeline_mode<synchronous>, transform_indices = @transform_1, window_bounds = array<i64: 1, 128>}, {pipeline_mode = #tpu.pipeline_mode<synchronous>, transform_indices = @transform_2, window_bounds = array<i64: 1, 128>}, {transform_indices = @transform_3, window_bounds = array<i64: 128, 128>}, {transform_indices = @transform_4, window_bounds = array<i64: 128, 128>}]} {
    %c0 = arith.constant 0 : index
    %c0_0 = arith.constant 0 : index
    %0 = vector.load %arg1[%c0, %c0_0] : memref<128x128xbf16, #tpu.memory_space<vmem>>, vector<128x128xbf16>
    %1 = arith.extf %0 : vector<128x128xbf16> to vector<128x128xf32>
    %c0_1 = arith.constant 0 : index
    %c0_2 = arith.constant 0 : index
    %2 = vector.load %arg2[%c0_1, %c0_2] : memref<1x128xf32, #tpu.memory_space<vmem>>, vector<1x128xf32>
    %3 = vector.broadcast %2 : vector<1x128xf32> to vector<128x128xf32>
    %4 = arith.mulf %1, %3 : vector<128x128xf32>
    %c0_3 = arith.constant 0 : index
    %c0_4 = arith.constant 0 : index
    %5 = vector.load %arg3[%c0_3, %c0_4] : memref<1x128xf32, #tpu.memory_space<vmem>>, vector<1x128xf32>
    %6 = vector.broadcast %5 : vector<1x128xf32> to vector<128x128xf32>
    %7 = arith.addf %4, %6 : vector<128x128xf32>
    %c0_5 = arith.constant 0 : index
    %c0_6 = arith.constant 0 : index
    %8 = vector.load %arg4[%c0_5, %c0_6] : memref<128x128xbf16, #tpu.memory_space<vmem>>, vector<128x128xbf16>
    %9 = arith.extf %8 : vector<128x128xbf16> to vector<128x128xf32>
    %10 = arith.addf %7, %9 : vector<128x128xf32>
    %cst = arith.constant 0.000000e+00 : f32
    %11 = vector.broadcast %cst : f32 to vector<128x128xf32>
    %12 = arith.maximumf %10, %11 : vector<128x128xf32>
    %13 = arith.truncf %12 : vector<128x128xf32> to vector<128x128xbf16>
    %c0_7 = arith.constant 0 : index
    %c0_8 = arith.constant 0 : index
    %14 = vector.load %arg5[%c0_7, %c0_8] : memref<128x128xbf16, #tpu.memory_space<vmem>>, vector<128x128xbf16>
    tpu.vector_store %arg5[%c0_7, %c0_8], %13 {strides = array<i32>} : memref<128x128xbf16, #tpu.memory_space<vmem>>, vector<128x128xbf16>,
    return
  }
  func.func @transform_0(%arg0: i32) -> (i32, i32) {
    %c0_i32 = arith.constant 0 : i32
    %c0_i32_0 = arith.constant 0 : i32
    return %arg0, %c0_i32 : i32, i32
  }
  func.func @transform_1(%arg0: i32) -> (i32, i32) {
    %c0_i32 = arith.constant 0 : i32
    %c0_i32_0 = arith.constant 0 : i32
    %c0_i32_1 = arith.constant 0 : i32
    return %c0_i32, %c0_i32_0 : i32, i32
  }
  func.func @transform_2(%arg0: i32) -> (i32, i32) {
    %c0_i32 = arith.constant 0 : i32
    %c0_i32_0 = arith.constant 0 : i32
    %c0_i32_1 = arith.constant 0 : i32
    return %c0_i32, %c0_i32_0 : i32, i32
  }
  func.func @transform_3(%arg0: i32) -> (i32, i32) {
    %c0_i32 = arith.constant 0 : i32
    %c0_i32_0 = arith.constant 0 : i32
    return %arg0, %c0_i32 : i32, i32
  }
  func.func @transform_4(%arg0: i32) -> (i32, i32) {
    %c0_i32 = arith.constant 0 : i32
    %c0_i32_0 = arith.constant 0 : i32
    return %arg0, %c0_i32 : i32, i32
  }
}

module attributes {stable_mosaic.version = 11 : i64} {
  func.func @_conv3x3_fused_kernel(%arg0: i32, %arg1: memref<1x328x128xbf16, #tpu.memory_space<vmem>>, %arg2: memref<328x1xf32, #tpu.memory_space<vmem>>, %arg3: memref<1x128xf32, #tpu.memory_space<vmem>>, %arg4: memref<1x128xf32, #tpu.memory_space<vmem>>, %arg5: memref<9x128x128xbf16, #tpu.memory_space<vmem>>, %arg6: memref<256x128xbf16, #tpu.memory_space<vmem>>, %arg7: memref<8x128xf32, #tpu.memory_space<vmem>>, %arg8: memref<328x128xbf16, #tpu.memory_space<vmem>>, %arg9: memref<288x128xf32, #tpu.memory_space<vmem>>) attributes {dimension_semantics = [#tpu.dimension_semantics<parallel>], iteration_bounds = array<i64: 2>, scalar_prefetch = 0 : i64, scratch_operands = 2 : i64, tpu.core_type = #tpu.core_type<tc>, window_params = [{transform_indices = @transform_0, window_bounds = array<i64: 1, 328, 128>}, {pipeline_mode = #tpu.pipeline_mode<synchronous>, transform_indices = @transform_1, window_bounds = array<i64: 328, 1>}, {pipeline_mode = #tpu.pipeline_mode<synchronous>, transform_indices = @transform_2, window_bounds = array<i64: 1, 128>}, {pipeline_mode = #tpu.pipeline_mode<synchronous>, transform_indices = @transform_3, window_bounds = array<i64: 1, 128>}, {pipeline_mode = #tpu.pipeline_mode<synchronous>, transform_indices = @transform_4, window_bounds = array<i64: 9, 128, 128>}, {transform_indices = @transform_5, window_bounds = array<i64: 256, 128>}, {transform_indices = @transform_6, window_bounds = array<i64: 8, 128>}]} {
    %c0 = arith.constant 0 : index
    %c0_0 = arith.constant 0 : index
    %c0_1 = arith.constant 0 : index
    %0 = vector.load %arg1[%c0, %c0_0, %c0_1] : memref<1x328x128xbf16, #tpu.memory_space<vmem>>, vector<1x328x128xbf16>
    %1 = vector.shape_cast %0 : vector<1x328x128xbf16> to vector<328x128xbf16>
    %2 = arith.extf %1 : vector<328x128xbf16> to vector<328x128xf32>
    %c0_2 = arith.constant 0 : index
    %c0_3 = arith.constant 0 : index
    %3 = vector.load %arg2[%c0_2, %c0_3] : memref<328x1xf32, #tpu.memory_space<vmem>>, vector<328x1xf32>
    %c0_4 = arith.constant 0 : index
    %c0_5 = arith.constant 0 : index
    %4 = vector.load %arg3[%c0_4, %c0_5] : memref<1x128xf32, #tpu.memory_space<vmem>>, vector<1x128xf32>
    %5 = vector.broadcast %4 : vector<1x128xf32> to vector<328x128xf32>
    %6 = arith.mulf %2, %5 : vector<328x128xf32>
    %c0_6 = arith.constant 0 : index
    %c0_7 = arith.constant 0 : index
    %7 = vector.load %arg4[%c0_6, %c0_7] : memref<1x128xf32, #tpu.memory_space<vmem>>, vector<1x128xf32>
    %8 = vector.broadcast %7 : vector<1x128xf32> to vector<328x128xf32>
    %9 = arith.addf %6, %8 : vector<328x128xf32>
    %cst = arith.constant 0.000000e+00 : f32
    %10 = vector.broadcast %cst : f32 to vector<328x128xf32>
    %11 = arith.maximumf %9, %10 : vector<328x128xf32>
    %12 = vector.broadcast %3 : vector<328x1xf32> to vector<328x128xf32>
    %13 = arith.mulf %12, %11 : vector<328x128xf32>
    %14 = arith.truncf %13 : vector<328x128xf32> to vector<328x128xbf16>
    %c0_8 = arith.constant 0 : index
    %c0_9 = arith.constant 0 : index
    %15 = vector.load %arg8[%c0_8, %c0_9] : memref<328x128xbf16, #tpu.memory_space<vmem>>, vector<328x128xbf16>
    tpu.vector_store %arg8[%c0_8, %c0_9], %14 {strides = array<i32>} : memref<328x128xbf16, #tpu.memory_space<vmem>>, vector<328x128xbf16>,
    %c0_10 = arith.constant 0 : index
    %c0_11 = arith.constant 0 : index
    %16 = vector.load %arg8[%c0_10, %c0_11] : memref<328x128xbf16, #tpu.memory_space<vmem>>, vector<288x128xbf16>
    %c0_12 = arith.constant 0 : index
    %c0_13 = arith.constant 0 : index
    %c0_14 = arith.constant 0 : index
    %17 = vector.load %arg5[%c0_12, %c0_13, %c0_14] : memref<9x128x128xbf16, #tpu.memory_space<vmem>>, vector<1x128x128xbf16>
    %18 = vector.shape_cast %17 : vector<1x128x128xbf16> to vector<128x128xbf16>
    %cst_15 = arith.constant dense<0.000000e+00> : vector<288x128xf32>
    %19 = tpu.matmul %16, %18, %cst_15 {dimension_numbers = #tpu.dot_dimension_numbers<[1], [0], [0], [1], [0, 0, 1, 1], [], []>} : vector<288x128xbf16>, vector<128x128xbf16>, vector<288x128xf32> -> vector<288x128xf32>
    %c0_16 = arith.constant 0 : index
    %c0_17 = arith.constant 0 : index
    %20 = vector.load %arg9[%c0_16, %c0_17] : memref<288x128xf32, #tpu.memory_space<vmem>>, vector<288x128xf32>
    tpu.vector_store %arg9[%c0_16, %c0_17], %19 {strides = array<i32>} : memref<288x128xf32, #tpu.memory_space<vmem>>, vector<288x128xf32>,
    %c1 = arith.constant 1 : index
    %c0_18 = arith.constant 0 : index
    %21 = vector.load %arg8[%c1, %c0_18] : memref<328x128xbf16, #tpu.memory_space<vmem>>, vector<288x128xbf16>
    %c1_19 = arith.constant 1 : index
    %c0_20 = arith.constant 0 : index
    %c0_21 = arith.constant 0 : index
    %22 = vector.load %arg5[%c1_19, %c0_20, %c0_21] : memref<9x128x128xbf16, #tpu.memory_space<vmem>>, vector<1x128x128xbf16>
    %23 = vector.shape_cast %22 : vector<1x128x128xbf16> to vector<128x128xbf16>
    %cst_22 = arith.constant dense<0.000000e+00> : vector<288x128xf32>
    %24 = tpu.matmul %21, %23, %cst_22 {dimension_numbers = #tpu.dot_dimension_numbers<[1], [0], [0], [1], [0, 0, 1, 1], [], []>} : vector<288x128xbf16>, vector<128x128xbf16>, vector<288x128xf32> -> vector<288x128xf32>
    %c0_23 = arith.constant 0 : index
    %c0_24 = arith.constant 0 : index
    %25 = vector.load %arg9[%c0_23, %c0_24] : memref<288x128xf32, #tpu.memory_space<vmem>>, vector<288x128xf32>
    %26 = arith.addf %25, %24 : vector<288x128xf32>
    %c0_25 = arith.constant 0 : index
    %c0_26 = arith.constant 0 : index
    %27 = vector.load %arg9[%c0_25, %c0_26] : memref<288x128xf32, #tpu.memory_space<vmem>>, vector<288x128xf32>
    tpu.vector_store %arg9[%c0_25, %c0_26], %26 {strides = array<i32>} : memref<288x128xf32, #tpu.memory_space<vmem>>, vector<288x128xf32>,
    %c2 = arith.constant 2 : index
    %c0_27 = arith.constant 0 : index
    %28 = vector.load %arg8[%c2, %c0_27] : memref<328x128xbf16, #tpu.memory_space<vmem>>, vector<288x128xbf16>
    %c2_28 = arith.constant 2 : index
    %c0_29 = arith.constant 0 : index
    %c0_30 = arith.constant 0 : index
    %29 = vector.load %arg5[%c2_28, %c0_29, %c0_30] : memref<9x128x128xbf16, #tpu.memory_space<vmem>>, vector<1x128x128xbf16>
    %30 = vector.shape_cast %29 : vector<1x128x128xbf16> to vector<128x128xbf16>
    %cst_31 = arith.constant dense<0.000000e+00> : vector<288x128xf32>
    %31 = tpu.matmul %28, %30, %cst_31 {dimension_numbers = #tpu.dot_dimension_numbers<[1], [0], [0], [1], [0, 0, 1, 1], [], []>} : vector<288x128xbf16>, vector<128x128xbf16>, vector<288x128xf32> -> vector<288x128xf32>
    %c0_32 = arith.constant 0 : index
    %c0_33 = arith.constant 0 : index
    %32 = vector.load %arg9[%c0_32, %c0_33] : memref<288x128xf32, #tpu.memory_space<vmem>>, vector<288x128xf32>
    %33 = arith.addf %32, %31 : vector<288x128xf32>
    %c0_34 = arith.constant 0 : index
    %c0_35 = arith.constant 0 : index
    %34 = vector.load %arg9[%c0_34, %c0_35] : memref<288x128xf32, #tpu.memory_space<vmem>>, vector<288x128xf32>
    tpu.vector_store %arg9[%c0_34, %c0_35], %33 {strides = array<i32>} : memref<288x128xf32, #tpu.memory_space<vmem>>, vector<288x128xf32>,
    %c18 = arith.constant 18 : index
    %c0_36 = arith.constant 0 : index
    %35 = vector.load %arg8[%c18, %c0_36] : memref<328x128xbf16, #tpu.memory_space<vmem>>, vector<288x128xbf16>
    %c3 = arith.constant 3 : index
    %c0_37 = arith.constant 0 : index
    %c0_38 = arith.constant 0 : index
    %36 = vector.load %arg5[%c3, %c0_37, %c0_38] : memref<9x128x128xbf16, #tpu.memory_space<vmem>>, vector<1x128x128xbf16>
    %37 = vector.shape_cast %36 : vector<1x128x128xbf16> to vector<128x128xbf16>
    %cst_39 = arith.constant dense<0.000000e+00> : vector<288x128xf32>
    %38 = tpu.matmul %35, %37, %cst_39 {dimension_numbers = #tpu.dot_dimension_numbers<[1], [0], [0], [1], [0, 0, 1, 1], [], []>} : vector<288x128xbf16>, vector<128x128xbf16>, vector<288x128xf32> -> vector<288x128xf32>
    %c0_40 = arith.constant 0 : index
    %c0_41 = arith.constant 0 : index
    %39 = vector.load %arg9[%c0_40, %c0_41] : memref<288x128xf32, #tpu.memory_space<vmem>>, vector<288x128xf32>
    %40 = arith.addf %39, %38 : vector<288x128xf32>
    %c0_42 = arith.constant 0 : index
    %c0_43 = arith.constant 0 : index
    %41 = vector.load %arg9[%c0_42, %c0_43] : memref<288x128xf32, #tpu.memory_space<vmem>>, vector<288x128xf32>
    tpu.vector_store %arg9[%c0_42, %c0_43], %40 {strides = array<i32>} : memref<288x128xf32, #tpu.memory_space<vmem>>, vector<288x128xf32>,
    %c19 = arith.constant 19 : index
    %c0_44 = arith.constant 0 : index
    %42 = vector.load %arg8[%c19, %c0_44] : memref<328x128xbf16, #tpu.memory_space<vmem>>, vector<288x128xbf16>
    %c4 = arith.constant 4 : index
    %c0_45 = arith.constant 0 : index
    %c0_46 = arith.constant 0 : index
    %43 = vector.load %arg5[%c4, %c0_45, %c0_46] : memref<9x128x128xbf16, #tpu.memory_space<vmem>>, vector<1x128x128xbf16>
    %44 = vector.shape_cast %43 : vector<1x128x128xbf16> to vector<128x128xbf16>
    %cst_47 = arith.constant dense<0.000000e+00> : vector<288x128xf32>
    %45 = tpu.matmul %42, %44, %cst_47 {dimension_numbers = #tpu.dot_dimension_numbers<[1], [0], [0], [1], [0, 0, 1, 1], [], []>} : vector<288x128xbf16>, vector<128x128xbf16>, vector<288x128xf32> -> vector<288x128xf32>
    %c0_48 = arith.constant 0 : index
    %c0_49 = arith.constant 0 : index
    %46 = vector.load %arg9[%c0_48, %c0_49] : memref<288x128xf32, #tpu.memory_space<vmem>>, vector<288x128xf32>
    %47 = arith.addf %46, %45 : vector<288x128xf32>
    %c0_50 = arith.constant 0 : index
    %c0_51 = arith.constant 0 : index
    %48 = vector.load %arg9[%c0_50, %c0_51] : memref<288x128xf32, #tpu.memory_space<vmem>>, vector<288x128xf32>
    tpu.vector_store %arg9[%c0_50, %c0_51], %47 {strides = array<i32>} : memref<288x128xf32, #tpu.memory_space<vmem>>, vector<288x128xf32>,
    %c20 = arith.constant 20 : index
    %c0_52 = arith.constant 0 : index
    %49 = vector.load %arg8[%c20, %c0_52] : memref<328x128xbf16, #tpu.memory_space<vmem>>, vector<288x128xbf16>
    %c5 = arith.constant 5 : index
    %c0_53 = arith.constant 0 : index
    %c0_54 = arith.constant 0 : index
    %50 = vector.load %arg5[%c5, %c0_53, %c0_54] : memref<9x128x128xbf16, #tpu.memory_space<vmem>>, vector<1x128x128xbf16>
    %51 = vector.shape_cast %50 : vector<1x128x128xbf16> to vector<128x128xbf16>
    %cst_55 = arith.constant dense<0.000000e+00> : vector<288x128xf32>
    %52 = tpu.matmul %49, %51, %cst_55 {dimension_numbers = #tpu.dot_dimension_numbers<[1], [0], [0], [1], [0, 0, 1, 1], [], []>} : vector<288x128xbf16>, vector<128x128xbf16>, vector<288x128xf32> -> vector<288x128xf32>
    %c0_56 = arith.constant 0 : index
    %c0_57 = arith.constant 0 : index
    %53 = vector.load %arg9[%c0_56, %c0_57] : memref<288x128xf32, #tpu.memory_space<vmem>>, vector<288x128xf32>
    %54 = arith.addf %53, %52 : vector<288x128xf32>
    %c0_58 = arith.constant 0 : index
    %c0_59 = arith.constant 0 : index
    %55 = vector.load %arg9[%c0_58, %c0_59] : memref<288x128xf32, #tpu.memory_space<vmem>>, vector<288x128xf32>
    tpu.vector_store %arg9[%c0_58, %c0_59], %54 {strides = array<i32>} : memref<288x128xf32, #tpu.memory_space<vmem>>, vector<288x128xf32>,
    %c36 = arith.constant 36 : index
    %c0_60 = arith.constant 0 : index
    %56 = vector.load %arg8[%c36, %c0_60] : memref<328x128xbf16, #tpu.memory_space<vmem>>, vector<288x128xbf16>
    %c6 = arith.constant 6 : index
    %c0_61 = arith.constant 0 : index
    %c0_62 = arith.constant 0 : index
    %57 = vector.load %arg5[%c6, %c0_61, %c0_62] : memref<9x128x128xbf16, #tpu.memory_space<vmem>>, vector<1x128x128xbf16>
    %58 = vector.shape_cast %57 : vector<1x128x128xbf16> to vector<128x128xbf16>
    %cst_63 = arith.constant dense<0.000000e+00> : vector<288x128xf32>
    %59 = tpu.matmul %56, %58, %cst_63 {dimension_numbers = #tpu.dot_dimension_numbers<[1], [0], [0], [1], [0, 0, 1, 1], [], []>} : vector<288x128xbf16>, vector<128x128xbf16>, vector<288x128xf32> -> vector<288x128xf32>
    %c0_64 = arith.constant 0 : index
    %c0_65 = arith.constant 0 : index
    %60 = vector.load %arg9[%c0_64, %c0_65] : memref<288x128xf32, #tpu.memory_space<vmem>>, vector<288x128xf32>
    %61 = arith.addf %60, %59 : vector<288x128xf32>
    %c0_66 = arith.constant 0 : index
    %c0_67 = arith.constant 0 : index
    %62 = vector.load %arg9[%c0_66, %c0_67] : memref<288x128xf32, #tpu.memory_space<vmem>>, vector<288x128xf32>
    tpu.vector_store %arg9[%c0_66, %c0_67], %61 {strides = array<i32>} : memref<288x128xf32, #tpu.memory_space<vmem>>, vector<288x128xf32>,
    %c37 = arith.constant 37 : index
    %c0_68 = arith.constant 0 : index
    %63 = vector.load %arg8[%c37, %c0_68] : memref<328x128xbf16, #tpu.memory_space<vmem>>, vector<288x128xbf16>
    %c7 = arith.constant 7 : index
    %c0_69 = arith.constant 0 : index
    %c0_70 = arith.constant 0 : index
    %64 = vector.load %arg5[%c7, %c0_69, %c0_70] : memref<9x128x128xbf16, #tpu.memory_space<vmem>>, vector<1x128x128xbf16>
    %65 = vector.shape_cast %64 : vector<1x128x128xbf16> to vector<128x128xbf16>
    %cst_71 = arith.constant dense<0.000000e+00> : vector<288x128xf32>
    %66 = tpu.matmul %63, %65, %cst_71 {dimension_numbers = #tpu.dot_dimension_numbers<[1], [0], [0], [1], [0, 0, 1, 1], [], []>} : vector<288x128xbf16>, vector<128x128xbf16>, vector<288x128xf32> -> vector<288x128xf32>
    %c0_72 = arith.constant 0 : index
    %c0_73 = arith.constant 0 : index
    %67 = vector.load %arg9[%c0_72, %c0_73] : memref<288x128xf32, #tpu.memory_space<vmem>>, vector<288x128xf32>
    %68 = arith.addf %67, %66 : vector<288x128xf32>
    %c0_74 = arith.constant 0 : index
    %c0_75 = arith.constant 0 : index
    %69 = vector.load %arg9[%c0_74, %c0_75] : memref<288x128xf32, #tpu.memory_space<vmem>>, vector<288x128xf32>
    tpu.vector_store %arg9[%c0_74, %c0_75], %68 {strides = array<i32>} : memref<288x128xf32, #tpu.memory_space<vmem>>, vector<288x128xf32>,
    %c38 = arith.constant 38 : index
    %c0_76 = arith.constant 0 : index
    %70 = vector.load %arg8[%c38, %c0_76] : memref<328x128xbf16, #tpu.memory_space<vmem>>, vector<288x128xbf16>
    %c8 = arith.constant 8 : index
    %c0_77 = arith.constant 0 : index
    %c0_78 = arith.constant 0 : index
    %71 = vector.load %arg5[%c8, %c0_77, %c0_78] : memref<9x128x128xbf16, #tpu.memory_space<vmem>>, vector<1x128x128xbf16>
    %72 = vector.shape_cast %71 : vector<1x128x128xbf16> to vector<128x128xbf16>
    %cst_79 = arith.constant dense<0.000000e+00> : vector<288x128xf32>
    %73 = tpu.matmul %70, %72, %cst_79 {dimension_numbers = #tpu.dot_dimension_numbers<[1], [0], [0], [1], [0, 0, 1, 1], [], []>} : vector<288x128xbf16>, vector<128x128xbf16>, vector<288x128xf32> -> vector<288x128xf32>
    %c0_80 = arith.constant 0 : index
    %c0_81 = arith.constant 0 : index
    %74 = vector.load %arg9[%c0_80, %c0_81] : memref<288x128xf32, #tpu.memory_space<vmem>>, vector<288x128xf32>
    %75 = arith.addf %74, %73 : vector<288x128xf32>
    %c0_82 = arith.constant 0 : index
    %c0_83 = arith.constant 0 : index
    %76 = vector.load %arg9[%c0_82, %c0_83] : memref<288x128xf32, #tpu.memory_space<vmem>>, vector<288x128xf32>
    tpu.vector_store %arg9[%c0_82, %c0_83], %75 {strides = array<i32>} : memref<288x128xf32, #tpu.memory_space<vmem>>, vector<288x128xf32>,
    %cst_84 = arith.constant 0.000000e+00 : f32
    %77 = vector.broadcast %cst_84 : f32 to vector<1x128xf32>
    %cst_85 = arith.constant 0.000000e+00 : f32
    %78 = vector.broadcast %cst_85 : f32 to vector<1x128xf32>
    %c0_86 = arith.constant 0 : index
    %c0_87 = arith.constant 0 : index
    %79 = vector.load %arg9[%c0_86, %c0_87] : memref<288x128xf32, #tpu.memory_space<vmem>>, vector<16x128xf32>
    %80 = arith.truncf %79 : vector<16x128xf32> to vector<16x128xbf16>
    %c0_88 = arith.constant 0 : index
    %c0_89 = arith.constant 0 : index
    %81 = vector.load %arg6[%c0_88, %c0_89] : memref<256x128xbf16, #tpu.memory_space<vmem>>, vector<16x128xbf16>
    tpu.vector_store %arg6[%c0_88, %c0_89], %80 {strides = array<i32>} : memref<256x128xbf16, #tpu.memory_space<vmem>>, vector<16x128xbf16>,
    %cst_90 = arith.constant dense<0.000000e+00> : vector<128xf32>
    %82 = vector.multi_reduction <add>, %79, %cst_90 [0] : vector<16x128xf32> to vector<128xf32>
    %83 = vector.shape_cast %82 : vector<128xf32> to vector<1x128xf32>
    %84 = arith.addf %77, %83 : vector<1x128xf32>
    %85 = arith.mulf %79, %79 : vector<16x128xf32>
    %cst_91 = arith.constant dense<0.000000e+00> : vector<128xf32>
    %86 = vector.multi_reduction <add>, %85, %cst_91 [0] : vector<16x128xf32> to vector<128xf32>
    %87 = vector.shape_cast %86 : vector<128xf32> to vector<1x128xf32>
    %88 = arith.addf %78, %87 : vector<1x128xf32>
    %c18_92 = arith.constant 18 : index
    %c0_93 = arith.constant 0 : index
    %89 = vector.load %arg9[%c18_92, %c0_93] : memref<288x128xf32, #tpu.memory_space<vmem>>, vector<16x128xf32>
    %90 = arith.truncf %89 : vector<16x128xf32> to vector<16x128xbf16>
    %c16 = arith.constant 16 : index
    %c0_94 = arith.constant 0 : index
    %91 = vector.load %arg6[%c16, %c0_94] : memref<256x128xbf16, #tpu.memory_space<vmem>>, vector<16x128xbf16>
    tpu.vector_store %arg6[%c16, %c0_94], %90 {strides = array<i32>} : memref<256x128xbf16, #tpu.memory_space<vmem>>, vector<16x128xbf16>,
    %cst_95 = arith.constant dense<0.000000e+00> : vector<128xf32>
    %92 = vector.multi_reduction <add>, %89, %cst_95 [0] : vector<16x128xf32> to vector<128xf32>
    %93 = vector.shape_cast %92 : vector<128xf32> to vector<1x128xf32>
    %94 = arith.addf %84, %93 : vector<1x128xf32>
    %95 = arith.mulf %89, %89 : vector<16x128xf32>
    %cst_96 = arith.constant dense<0.000000e+00> : vector<128xf32>
    %96 = vector.multi_reduction <add>, %95, %cst_96 [0] : vector<16x128xf32> to vector<128xf32>
    %97 = vector.shape_cast %96 : vector<128xf32> to vector<1x128xf32>
    %98 = arith.addf %88, %97 : vector<1x128xf32>
    %c36_97 = arith.constant 36 : index
    %c0_98 = arith.constant 0 : index
    %99 = vector.load %arg9[%c36_97, %c0_98] : memref<288x128xf32, #tpu.memory_space<vmem>>, vector<16x128xf32>
    %100 = arith.truncf %99 : vector<16x128xf32> to vector<16x128xbf16>
    %c32 = arith.constant 32 : index
    %c0_99 = arith.constant 0 : index
    %101 = vector.load %arg6[%c32, %c0_99] : memref<256x128xbf16, #tpu.memory_space<vmem>>, vector<16x128xbf16>
    tpu.vector_store %arg6[%c32, %c0_99], %100 {strides = array<i32>} : memref<256x128xbf16, #tpu.memory_space<vmem>>, vector<16x128xbf16>,
    %cst_100 = arith.constant dense<0.000000e+00> : vector<128xf32>
    %102 = vector.multi_reduction <add>, %99, %cst_100 [0] : vector<16x128xf32> to vector<128xf32>
    %103 = vector.shape_cast %102 : vector<128xf32> to vector<1x128xf32>
    %104 = arith.addf %94, %103 : vector<1x128xf32>
    %105 = arith.mulf %99, %99 : vector<16x128xf32>
    %cst_101 = arith.constant dense<0.000000e+00> : vector<128xf32>
    %106 = vector.multi_reduction <add>, %105, %cst_101 [0] : vector<16x128xf32> to vector<128xf32>
    %107 = vector.shape_cast %106 : vector<128xf32> to vector<1x128xf32>
    %108 = arith.addf %98, %107 : vector<1x128xf32>
    %c54 = arith.constant 54 : index
    %c0_102 = arith.constant 0 : index
    %109 = vector.load %arg9[%c54, %c0_102] : memref<288x128xf32, #tpu.memory_space<vmem>>, vector<16x128xf32>
    %110 = arith.truncf %109 : vector<16x128xf32> to vector<16x128xbf16>
    %c48 = arith.constant 48 : index
    %c0_103 = arith.constant 0 : index
    %111 = vector.load %arg6[%c48, %c0_103] : memref<256x128xbf16, #tpu.memory_space<vmem>>, vector<16x128xbf16>
    tpu.vector_store %arg6[%c48, %c0_103], %110 {strides = array<i32>} : memref<256x128xbf16, #tpu.memory_space<vmem>>, vector<16x128xbf16>,
    %cst_104 = arith.constant dense<0.000000e+00> : vector<128xf32>
    %112 = vector.multi_reduction <add>, %109, %cst_104 [0] : vector<16x128xf32> to vector<128xf32>
    %113 = vector.shape_cast %112 : vector<128xf32> to vector<1x128xf32>
    %114 = arith.addf %104, %113 : vector<1x128xf32>
    %115 = arith.mulf %109, %109 : vector<16x128xf32>
    %cst_105 = arith.constant dense<0.000000e+00> : vector<128xf32>
    %116 = vector.multi_reduction <add>, %115, %cst_105 [0] : vector<16x128xf32> to vector<128xf32>
    %117 = vector.shape_cast %116 : vector<128xf32> to vector<1x128xf32>
    %118 = arith.addf %108, %117 : vector<1x128xf32>
    %c72 = arith.constant 72 : index
    %c0_106 = arith.constant 0 : index
    %119 = vector.load %arg9[%c72, %c0_106] : memref<288x128xf32, #tpu.memory_space<vmem>>, vector<16x128xf32>
    %120 = arith.truncf %119 : vector<16x128xf32> to vector<16x128xbf16>
    %c64 = arith.constant 64 : index
    %c0_107 = arith.constant 0 : index
    %121 = vector.load %arg6[%c64, %c0_107] : memref<256x128xbf16, #tpu.memory_space<vmem>>, vector<16x128xbf16>
    tpu.vector_store %arg6[%c64, %c0_107], %120 {strides = array<i32>} : memref<256x128xbf16, #tpu.memory_space<vmem>>, vector<16x128xbf16>,
    %cst_108 = arith.constant dense<0.000000e+00> : vector<128xf32>
    %122 = vector.multi_reduction <add>, %119, %cst_108 [0] : vector<16x128xf32> to vector<128xf32>
    %123 = vector.shape_cast %122 : vector<128xf32> to vector<1x128xf32>
    %124 = arith.addf %114, %123 : vector<1x128xf32>
    %125 = arith.mulf %119, %119 : vector<16x128xf32>
    %cst_109 = arith.constant dense<0.000000e+00> : vector<128xf32>
    %126 = vector.multi_reduction <add>, %125, %cst_109 [0] : vector<16x128xf32> to vector<128xf32>
    %127 = vector.shape_cast %126 : vector<128xf32> to vector<1x128xf32>
    %128 = arith.addf %118, %127 : vector<1x128xf32>
    %c90 = arith.constant 90 : index
    %c0_110 = arith.constant 0 : index
    %129 = vector.load %arg9[%c90, %c0_110] : memref<288x128xf32, #tpu.memory_space<vmem>>, vector<16x128xf32>
    %130 = arith.truncf %129 : vector<16x128xf32> to vector<16x128xbf16>
    %c80 = arith.constant 80 : index
    %c0_111 = arith.constant 0 : index
    %131 = vector.load %arg6[%c80, %c0_111] : memref<256x128xbf16, #tpu.memory_space<vmem>>, vector<16x128xbf16>
    tpu.vector_store %arg6[%c80, %c0_111], %130 {strides = array<i32>} : memref<256x128xbf16, #tpu.memory_space<vmem>>, vector<16x128xbf16>,
    %cst_112 = arith.constant dense<0.000000e+00> : vector<128xf32>
    %132 = vector.multi_reduction <add>, %129, %cst_112 [0] : vector<16x128xf32> to vector<128xf32>
    %133 = vector.shape_cast %132 : vector<128xf32> to vector<1x128xf32>
    %134 = arith.addf %124, %133 : vector<1x128xf32>
    %135 = arith.mulf %129, %129 : vector<16x128xf32>
    %cst_113 = arith.constant dense<0.000000e+00> : vector<128xf32>
    %136 = vector.multi_reduction <add>, %135, %cst_113 [0] : vector<16x128xf32> to vector<128xf32>
    %137 = vector.shape_cast %136 : vector<128xf32> to vector<1x128xf32>
    %138 = arith.addf %128, %137 : vector<1x128xf32>
    %c108 = arith.constant 108 : index
    %c0_114 = arith.constant 0 : index
    %139 = vector.load %arg9[%c108, %c0_114] : memref<288x128xf32, #tpu.memory_space<vmem>>, vector<16x128xf32>
    %140 = arith.truncf %139 : vector<16x128xf32> to vector<16x128xbf16>
    %c96 = arith.constant 96 : index
    %c0_115 = arith.constant 0 : index
    %141 = vector.load %arg6[%c96, %c0_115] : memref<256x128xbf16, #tpu.memory_space<vmem>>, vector<16x128xbf16>
    tpu.vector_store %arg6[%c96, %c0_115], %140 {strides = array<i32>} : memref<256x128xbf16, #tpu.memory_space<vmem>>, vector<16x128xbf16>,
    %cst_116 = arith.constant dense<0.000000e+00> : vector<128xf32>
    %142 = vector.multi_reduction <add>, %139, %cst_116 [0] : vector<16x128xf32> to vector<128xf32>
    %143 = vector.shape_cast %142 : vector<128xf32> to vector<1x128xf32>
    %144 = arith.addf %134, %143 : vector<1x128xf32>
    %145 = arith.mulf %139, %139 : vector<16x128xf32>
    %cst_117 = arith.constant dense<0.000000e+00> : vector<128xf32>
    %146 = vector.multi_reduction <add>, %145, %cst_117 [0] : vector<16x128xf32> to vector<128xf32>
    %147 = vector.shape_cast %146 : vector<128xf32> to vector<1x128xf32>
    %148 = arith.addf %138, %147 : vector<1x128xf32>
    %c126 = arith.constant 126 : index
    %c0_118 = arith.constant 0 : index
    %149 = vector.load %arg9[%c126, %c0_118] : memref<288x128xf32, #tpu.memory_space<vmem>>, vector<16x128xf32>
    %150 = arith.truncf %149 : vector<16x128xf32> to vector<16x128xbf16>
    %c112 = arith.constant 112 : index
    %c0_119 = arith.constant 0 : index
    %151 = vector.load %arg6[%c112, %c0_119] : memref<256x128xbf16, #tpu.memory_space<vmem>>, vector<16x128xbf16>
    tpu.vector_store %arg6[%c112, %c0_119], %150 {strides = array<i32>} : memref<256x128xbf16, #tpu.memory_space<vmem>>, vector<16x128xbf16>,
    %cst_120 = arith.constant dense<0.000000e+00> : vector<128xf32>
    %152 = vector.multi_reduction <add>, %149, %cst_120 [0] : vector<16x128xf32> to vector<128xf32>
    %153 = vector.shape_cast %152 : vector<128xf32> to vector<1x128xf32>
    %154 = arith.addf %144, %153 : vector<1x128xf32>
    %155 = arith.mulf %149, %149 : vector<16x128xf32>
    %cst_121 = arith.constant dense<0.000000e+00> : vector<128xf32>
    %156 = vector.multi_reduction <add>, %155, %cst_121 [0] : vector<16x128xf32> to vector<128xf32>
    %157 = vector.shape_cast %156 : vector<128xf32> to vector<1x128xf32>
    %158 = arith.addf %148, %157 : vector<1x128xf32>
    %c144 = arith.constant 144 : index
    %c0_122 = arith.constant 0 : index
    %159 = vector.load %arg9[%c144, %c0_122] : memref<288x128xf32, #tpu.memory_space<vmem>>, vector<16x128xf32>
    %160 = arith.truncf %159 : vector<16x128xf32> to vector<16x128xbf16>
    %c128 = arith.constant 128 : index
    %c0_123 = arith.constant 0 : index
    %161 = vector.load %arg6[%c128, %c0_123] : memref<256x128xbf16, #tpu.memory_space<vmem>>, vector<16x128xbf16>
    tpu.vector_store %arg6[%c128, %c0_123], %160 {strides = array<i32>} : memref<256x128xbf16, #tpu.memory_space<vmem>>, vector<16x128xbf16>,
    %cst_124 = arith.constant dense<0.000000e+00> : vector<128xf32>
    %162 = vector.multi_reduction <add>, %159, %cst_124 [0] : vector<16x128xf32> to vector<128xf32>
    %163 = vector.shape_cast %162 : vector<128xf32> to vector<1x128xf32>
    %164 = arith.addf %154, %163 : vector<1x128xf32>
    %165 = arith.mulf %159, %159 : vector<16x128xf32>
    %cst_125 = arith.constant dense<0.000000e+00> : vector<128xf32>
    %166 = vector.multi_reduction <add>, %165, %cst_125 [0] : vector<16x128xf32> to vector<128xf32>
    %167 = vector.shape_cast %166 : vector<128xf32> to vector<1x128xf32>
    %168 = arith.addf %158, %167 : vector<1x128xf32>
    %c162 = arith.constant 162 : index
    %c0_126 = arith.constant 0 : index
    %169 = vector.load %arg9[%c162, %c0_126] : memref<288x128xf32, #tpu.memory_space<vmem>>, vector<16x128xf32>
    %170 = arith.truncf %169 : vector<16x128xf32> to vector<16x128xbf16>
    %c144_127 = arith.constant 144 : index
    %c0_128 = arith.constant 0 : index
    %171 = vector.load %arg6[%c144_127, %c0_128] : memref<256x128xbf16, #tpu.memory_space<vmem>>, vector<16x128xbf16>
    tpu.vector_store %arg6[%c144_127, %c0_128], %170 {strides = array<i32>} : memref<256x128xbf16, #tpu.memory_space<vmem>>, vector<16x128xbf16>,
    %cst_129 = arith.constant dense<0.000000e+00> : vector<128xf32>
    %172 = vector.multi_reduction <add>, %169, %cst_129 [0] : vector<16x128xf32> to vector<128xf32>
    %173 = vector.shape_cast %172 : vector<128xf32> to vector<1x128xf32>
    %174 = arith.addf %164, %173 : vector<1x128xf32>
    %175 = arith.mulf %169, %169 : vector<16x128xf32>
    %cst_130 = arith.constant dense<0.000000e+00> : vector<128xf32>
    %176 = vector.multi_reduction <add>, %175, %cst_130 [0] : vector<16x128xf32> to vector<128xf32>
    %177 = vector.shape_cast %176 : vector<128xf32> to vector<1x128xf32>
    %178 = arith.addf %168, %177 : vector<1x128xf32>
    %c180 = arith.constant 180 : index
    %c0_131 = arith.constant 0 : index
    %179 = vector.load %arg9[%c180, %c0_131] : memref<288x128xf32, #tpu.memory_space<vmem>>, vector<16x128xf32>
    %180 = arith.truncf %179 : vector<16x128xf32> to vector<16x128xbf16>
    %c160 = arith.constant 160 : index
    %c0_132 = arith.constant 0 : index
    %181 = vector.load %arg6[%c160, %c0_132] : memref<256x128xbf16, #tpu.memory_space<vmem>>, vector<16x128xbf16>
    tpu.vector_store %arg6[%c160, %c0_132], %180 {strides = array<i32>} : memref<256x128xbf16, #tpu.memory_space<vmem>>, vector<16x128xbf16>,
    %cst_133 = arith.constant dense<0.000000e+00> : vector<128xf32>
    %182 = vector.multi_reduction <add>, %179, %cst_133 [0] : vector<16x128xf32> to vector<128xf32>
    %183 = vector.shape_cast %182 : vector<128xf32> to vector<1x128xf32>
    %184 = arith.addf %174, %183 : vector<1x128xf32>
    %185 = arith.mulf %179, %179 : vector<16x128xf32>
    %cst_134 = arith.constant dense<0.000000e+00> : vector<128xf32>
    %186 = vector.multi_reduction <add>, %185, %cst_134 [0] : vector<16x128xf32> to vector<128xf32>
    %187 = vector.shape_cast %186 : vector<128xf32> to vector<1x128xf32>
    %188 = arith.addf %178, %187 : vector<1x128xf32>
    %c198 = arith.constant 198 : index
    %c0_135 = arith.constant 0 : index
    %189 = vector.load %arg9[%c198, %c0_135] : memref<288x128xf32, #tpu.memory_space<vmem>>, vector<16x128xf32>
    %190 = arith.truncf %189 : vector<16x128xf32> to vector<16x128xbf16>
    %c176 = arith.constant 176 : index
    %c0_136 = arith.constant 0 : index
    %191 = vector.load %arg6[%c176, %c0_136] : memref<256x128xbf16, #tpu.memory_space<vmem>>, vector<16x128xbf16>
    tpu.vector_store %arg6[%c176, %c0_136], %190 {strides = array<i32>} : memref<256x128xbf16, #tpu.memory_space<vmem>>, vector<16x128xbf16>,
    %cst_137 = arith.constant dense<0.000000e+00> : vector<128xf32>
    %192 = vector.multi_reduction <add>, %189, %cst_137 [0] : vector<16x128xf32> to vector<128xf32>
    %193 = vector.shape_cast %192 : vector<128xf32> to vector<1x128xf32>
    %194 = arith.addf %184, %193 : vector<1x128xf32>
    %195 = arith.mulf %189, %189 : vector<16x128xf32>
    %cst_138 = arith.constant dense<0.000000e+00> : vector<128xf32>
    %196 = vector.multi_reduction <add>, %195, %cst_138 [0] : vector<16x128xf32> to vector<128xf32>
    %197 = vector.shape_cast %196 : vector<128xf32> to vector<1x128xf32>
    %198 = arith.addf %188, %197 : vector<1x128xf32>
    %c216 = arith.constant 216 : index
    %c0_139 = arith.constant 0 : index
    %199 = vector.load %arg9[%c216, %c0_139] : memref<288x128xf32, #tpu.memory_space<vmem>>, vector<16x128xf32>
    %200 = arith.truncf %199 : vector<16x128xf32> to vector<16x128xbf16>
    %c192 = arith.constant 192 : index
    %c0_140 = arith.constant 0 : index
    %201 = vector.load %arg6[%c192, %c0_140] : memref<256x128xbf16, #tpu.memory_space<vmem>>, vector<16x128xbf16>
    tpu.vector_store %arg6[%c192, %c0_140], %200 {strides = array<i32>} : memref<256x128xbf16, #tpu.memory_space<vmem>>, vector<16x128xbf16>,
    %cst_141 = arith.constant dense<0.000000e+00> : vector<128xf32>
    %202 = vector.multi_reduction <add>, %199, %cst_141 [0] : vector<16x128xf32> to vector<128xf32>
    %203 = vector.shape_cast %202 : vector<128xf32> to vector<1x128xf32>
    %204 = arith.addf %194, %203 : vector<1x128xf32>
    %205 = arith.mulf %199, %199 : vector<16x128xf32>
    %cst_142 = arith.constant dense<0.000000e+00> : vector<128xf32>
    %206 = vector.multi_reduction <add>, %205, %cst_142 [0] : vector<16x128xf32> to vector<128xf32>
    %207 = vector.shape_cast %206 : vector<128xf32> to vector<1x128xf32>
    %208 = arith.addf %198, %207 : vector<1x128xf32>
    %c234 = arith.constant 234 : index
    %c0_143 = arith.constant 0 : index
    %209 = vector.load %arg9[%c234, %c0_143] : memref<288x128xf32, #tpu.memory_space<vmem>>, vector<16x128xf32>
    %210 = arith.truncf %209 : vector<16x128xf32> to vector<16x128xbf16>
    %c208 = arith.constant 208 : index
    %c0_144 = arith.constant 0 : index
    %211 = vector.load %arg6[%c208, %c0_144] : memref<256x128xbf16, #tpu.memory_space<vmem>>, vector<16x128xbf16>
    tpu.vector_store %arg6[%c208, %c0_144], %210 {strides = array<i32>} : memref<256x128xbf16, #tpu.memory_space<vmem>>, vector<16x128xbf16>,
    %cst_145 = arith.constant dense<0.000000e+00> : vector<128xf32>
    %212 = vector.multi_reduction <add>, %209, %cst_145 [0] : vector<16x128xf32> to vector<128xf32>
    %213 = vector.shape_cast %212 : vector<128xf32> to vector<1x128xf32>
    %214 = arith.addf %204, %213 : vector<1x128xf32>
    %215 = arith.mulf %209, %209 : vector<16x128xf32>
    %cst_146 = arith.constant dense<0.000000e+00> : vector<128xf32>
    %216 = vector.multi_reduction <add>, %215, %cst_146 [0] : vector<16x128xf32> to vector<128xf32>
    %217 = vector.shape_cast %216 : vector<128xf32> to vector<1x128xf32>
    %218 = arith.addf %208, %217 : vector<1x128xf32>
    %c252 = arith.constant 252 : index
    %c0_147 = arith.constant 0 : index
    %219 = vector.load %arg9[%c252, %c0_147] : memref<288x128xf32, #tpu.memory_space<vmem>>, vector<16x128xf32>
    %220 = arith.truncf %219 : vector<16x128xf32> to vector<16x128xbf16>
    %c224 = arith.constant 224 : index
    %c0_148 = arith.constant 0 : index
    %221 = vector.load %arg6[%c224, %c0_148] : memref<256x128xbf16, #tpu.memory_space<vmem>>, vector<16x128xbf16>
    tpu.vector_store %arg6[%c224, %c0_148], %220 {strides = array<i32>} : memref<256x128xbf16, #tpu.memory_space<vmem>>, vector<16x128xbf16>,
    %cst_149 = arith.constant dense<0.000000e+00> : vector<128xf32>
    %222 = vector.multi_reduction <add>, %219, %cst_149 [0] : vector<16x128xf32> to vector<128xf32>
    %223 = vector.shape_cast %222 : vector<128xf32> to vector<1x128xf32>
    %224 = arith.addf %214, %223 : vector<1x128xf32>
    %225 = arith.mulf %219, %219 : vector<16x128xf32>
    %cst_150 = arith.constant dense<0.000000e+00> : vector<128xf32>
    %226 = vector.multi_reduction <add>, %225, %cst_150 [0] : vector<16x128xf32> to vector<128xf32>
    %227 = vector.shape_cast %226 : vector<128xf32> to vector<1x128xf32>
    %228 = arith.addf %218, %227 : vector<1x128xf32>
    %c270 = arith.constant 270 : index
    %c0_151 = arith.constant 0 : index
    %229 = vector.load %arg9[%c270, %c0_151] : memref<288x128xf32, #tpu.memory_space<vmem>>, vector<16x128xf32>
    %230 = arith.truncf %229 : vector<16x128xf32> to vector<16x128xbf16>
    %c240 = arith.constant 240 : index
    %c0_152 = arith.constant 0 : index
    %231 = vector.load %arg6[%c240, %c0_152] : memref<256x128xbf16, #tpu.memory_space<vmem>>, vector<16x128xbf16>
    tpu.vector_store %arg6[%c240, %c0_152], %230 {strides = array<i32>} : memref<256x128xbf16, #tpu.memory_space<vmem>>, vector<16x128xbf16>,
    %cst_153 = arith.constant dense<0.000000e+00> : vector<128xf32>
    %232 = vector.multi_reduction <add>, %229, %cst_153 [0] : vector<16x128xf32> to vector<128xf32>
    %233 = vector.shape_cast %232 : vector<128xf32> to vector<1x128xf32>
    %234 = arith.addf %224, %233 : vector<1x128xf32>
    %235 = arith.mulf %229, %229 : vector<16x128xf32>
    %cst_154 = arith.constant dense<0.000000e+00> : vector<128xf32>
    %236 = vector.multi_reduction <add>, %235, %cst_154 [0] : vector<16x128xf32> to vector<128xf32>
    %237 = vector.shape_cast %236 : vector<128xf32> to vector<1x128xf32>
    %238 = arith.addf %228, %237 : vector<1x128xf32>
    %c0_155 = arith.constant 0 : index
    %c0_156 = arith.constant 0 : index
    %239 = vector.load %arg7[%c0_155, %c0_156] : memref<8x128xf32, #tpu.memory_space<vmem>>, vector<1x128xf32>
    tpu.vector_store %arg7[%c0_155, %c0_156], %234 {strides = array<i32>} : memref<8x128xf32, #tpu.memory_space<vmem>>, vector<1x128xf32>,
    %c1_157 = arith.constant 1 : index
    %c0_158 = arith.constant 0 : index
    %240 = vector.load %arg7[%c1_157, %c0_158] : memref<8x128xf32, #tpu.memory_space<vmem>>, vector<1x128xf32>
    tpu.vector_store %arg7[%c1_157, %c0_158], %238 {strides = array<i32>} : memref<8x128xf32, #tpu.memory_space<vmem>>, vector<1x128xf32>,
    %cst_159 = arith.constant 0.000000e+00 : f32
    %241 = vector.broadcast %cst_159 : f32 to vector<6x128xf32>
    %c2_160 = arith.constant 2 : index
    %c0_161 = arith.constant 0 : index
    %242 = vector.load %arg7[%c2_160, %c0_161] : memref<8x128xf32, #tpu.memory_space<vmem>>, vector<6x128xf32>
    tpu.vector_store %arg7[%c2_160, %c0_161], %241 {strides = array<i32>} : memref<8x128xf32, #tpu.memory_space<vmem>>, vector<6x128xf32>,
    return
  }
  func.func @transform_0(%arg0: i32) -> (i32, i32, i32) {
    %c0_i32 = arith.constant 0 : i32
    %c0_i32_0 = arith.constant 0 : i32
    %c0_i32_1 = arith.constant 0 : i32
    return %arg0, %c0_i32, %c0_i32_0 : i32, i32, i32
  }
  func.func @transform_1(%arg0: i32) -> (i32, i32) {
    %c0_i32 = arith.constant 0 : i32
    %c0_i32_0 = arith.constant 0 : i32
    %c0_i32_1 = arith.constant 0 : i32
    return %c0_i32, %c0_i32_0 : i32, i32
  }
  func.func @transform_2(%arg0: i32) -> (i32, i32) {
    %c0_i32 = arith.constant 0 : i32
    %c0_i32_0 = arith.constant 0 : i32
    %c0_i32_1 = arith.constant 0 : i32
    return %c0_i32, %c0_i32_0 : i32, i32
  }
  func.func @transform_3(%arg0: i32) -> (i32, i32) {
    %c0_i32 = arith.constant 0 : i32
    %c0_i32_0 = arith.constant 0 : i32
    %c0_i32_1 = arith.constant 0 : i32
    return %c0_i32, %c0_i32_0 : i32, i32
  }
  func.func @transform_4(%arg0: i32) -> (i32, i32, i32) {
    %c0_i32 = arith.constant 0 : i32
    %c0_i32_0 = arith.constant 0 : i32
    %c0_i32_1 = arith.constant 0 : i32
    %c0_i32_2 = arith.constant 0 : i32
    return %c0_i32, %c0_i32_0, %c0_i32_1 : i32, i32, i32
  }
  func.func @transform_5(%arg0: i32) -> (i32, i32) {
    %c0_i32 = arith.constant 0 : i32
    %c0_i32_0 = arith.constant 0 : i32
    return %arg0, %c0_i32 : i32, i32
  }
  func.func @transform_6(%arg0: i32) -> (i32, i32) {
    %c0_i32 = arith.constant 0 : i32
    %c0_i32_0 = arith.constant 0 : i32
    return %arg0, %c0_i32 : i32, i32
  }
}

</mosaic_0001>

<bundles_post_ra>
// kernel: bottleneck_forward.4
= control target key start
LH: loop header
LB: loop body
LE: loop exit
PB: predicated region body
PF: predicated region fallthrough
CT: control target
= control target key end

     0   :  { %s864_s12 = smov 0   ;;  %s945_s0 = inlined_call_operand.vmem [shape: bf16[512,128], index: 0, kind: input, shape index: {}]   ;;  %s946_s1 = inlined_call_operand.vmem [shape: bf16[128,128], index: 1, kind: input, shape index: {}]   ;;  %s947_s2 = inlined_call_operand.vmem [shape: bf16[512,128], index: 2, kind: output, shape index: {0}]   ;;  %s948_s3 = inlined_call_operand.vmem [shape: f32[32,128], index: 3, kind: output, shape index: {1}]  }
   0x1 LB: > { %s870_s13 = sadd.s32 4294967295, %s841_s12   ;;  %p643_p0 = scmp.ge.s32.totalorder %s841_s12, 1  ;;  %s841_s12 = sphi %s864_s12, %s14_s12  }
   0x2   : > { %p141_p1 = scmp.lt.s32.totalorder %s841_s12, 5 }
   0x4   : > { %p142_p2 = pnand %p643_p0, %p141_p1 }
   0x5   : > { %s644_s16 = sshll.u32 (!%p142_p2), %s870_s13, 4  ;;  %p181_p4 = scmp.lt.s32.totalorder (!%p142_p2), %s870_s13, 3 }
   0x6   : > { %145 = sbr.rel (%p142_p2) target bundleno = 288 (0x120), region = 28  ;;  %p170_p3 = scmp.lt.s32.totalorder (!%p142_p2), %s644_s16, 63 }
   0xb   : > { %v819_v0 = vld [vmem:[%s946_s1 + $0x38] sm:$0xff]   ;;  %v820_v1 = vld [vmem:[%s946_s1 + $0x30] sm:$0xff]   ;;  %s950_s16 = smov (!%p170_p3, %s644_s16), 63  ;;  %v821_v2 = vld [vmem:[%s946_s1 + $0x28] sm:$0xff]   ;;  %s952_s13 = smov (!%p181_p4, %s870_s13), 3  ;;  %v843_v16 = vmov 0.0  }
   0xc   : > { %762 = vmatprep.subr.bf16.mxu0 %v819_v0  ;;  %794 = vmatprep.subr.bf16.mxu1 %v819_v0  ;;  %s645_s21 = sshll.u32 %s950_s16, 2  ;;  %v822_v3 = vld [vmem:[%s946_s1 + $0x20] sm:$0xff]   ;;  %v823_v5 = vld [vmem:[%s946_s1 + $0x18] sm:$0xff]   ;;  %v824_v7 = vld [vmem:[%s946_s1 + $0x10] sm:$0xff]   ;;  %s648_s8 = sshll.u32 %s952_s13, 3 }
   0xd   : > { %763 = vmatpush3.bf16.msra.mxu0 %v819_v0  ;;  %802 = vmatpush3.bf16.msra.mxu1 %v819_v0  ;;  %s892_s24 = scalar_lea.vmem %s945_s0, %s645_s21  ;;  %v825_v8 = vld [vmem:[%s946_s1 + $0x8] sm:$0xff]   ;;  %v826_v9 = vld [vmem:[%s946_s1] sm:$0xff]   ;;  %s922_s11 = scalar_lea.vmem %s948_s3, %s648_s8 }
   0xe   : > { %764 = vmatprep.subr.bf16.mxu0 %v820_v1  ;;  %795 = vmatprep.subr.bf16.mxu1 %v820_v1  ;;  %v827_v4 = vld [vmem:[%s892_s24] sm:$0xff]   ;;  %v828_v10 = vld [vmem:[%s892_s24 + $0x8] sm:$0xff]   ;;  %v829_v12 = vld [vmem:[%s892_s24 + $0x10] sm:$0xff]   ;;  %551 = vst [vmem:[%s922_s11 + $0x2] sm:$0x3f] %v843_v16  ;;  %s930_s17 = scalar_lea.vmem %s947_s2, %s645_s21 }
   0xf   : > { %778 = vmatprep.mubr.bf16.mxu0 %v827_v4  ;;  %v831_v6 = vld [vmem:[%s892_s24 + $0x20] sm:$0xff]   ;;  %v832_v11 = vld [vmem:[%s892_s24 + $0x28] sm:$0xff]   ;;  %v833_v13 = vld [vmem:[%s892_s24 + $0x30] sm:$0xff]  }
  0x10   : > { %786 = vmatprep.mubr.bf16.mxu1 %v831_v6  ;;  %v830_v14 = vld [vmem:[%s892_s24 + $0x18] sm:$0xff]  }
  0x11   : > { %765 = vmatpush3.bf16.msra.mxu0 %v820_v1  ;;  %803 = vmatpush3.bf16.msra.mxu1 %v820_v1  ;;  %v834_v15 = vld [vmem:[%s892_s24 + $0x38] sm:$0xff]  }
  0x12   : > { %766 = vmatprep.subr.bf16.mxu0 %v821_v2  ;;  %796 = vmatprep.subr.bf16.mxu1 %v821_v2 }
  0x15   : > { %767 = vmatpush3.bf16.msra.mxu0 %v821_v2  ;;  %804 = vmatpush3.bf16.msra.mxu1 %v821_v2 }
  0x16   : > { %768 = vmatprep.subr.bf16.mxu0 %v822_v3  ;;  %797 = vmatprep.subr.bf16.mxu1 %v822_v3 }
  0x19   : > { %769 = vmatpush3.bf16.msra.mxu0 %v822_v3  ;;  %805 = vmatpush3.bf16.msra.mxu1 %v822_v3 }
  0x1a   : > { %770 = vmatprep.subr.bf16.mxu0 %v823_v5  ;;  %798 = vmatprep.subr.bf16.mxu1 %v823_v5 }
  0x1d   : > { %771 = vmatpush3.bf16.msra.mxu0 %v823_v5  ;;  %806 = vmatpush3.bf16.msra.mxu1 %v823_v5 }
  0x1e   : > { %772 = vmatprep.subr.bf16.mxu0 %v824_v7  ;;  %799 = vmatprep.subr.bf16.mxu1 %v824_v7 }
  0x21   : > { %773 = vmatpush3.bf16.msra.mxu0 %v824_v7  ;;  %807 = vmatpush3.bf16.msra.mxu1 %v824_v7 }
  0x22   : > { %774 = vmatprep.subr.bf16.mxu0 %v825_v8  ;;  %800 = vmatprep.subr.bf16.mxu1 %v825_v8 }
  0x25   : > { %775 = vmatpush3.bf16.msra.mxu0 %v825_v8  ;;  %808 = vmatpush3.bf16.msra.mxu1 %v825_v8 }
  0x26   : > { %776 = vmatprep.subr.bf16.mxu0 %v826_v9  ;;  %801 = vmatprep.subr.bf16.mxu1 %v826_v9 }
  0x29   : > { %777 = vmatpush3.bf16.msra.mxu0 %v826_v9  ;;  %809 = vmatpush3.bf16.msra.mxu1 %v826_v9 }
  0x2c   : > { %779 = vmatmul.mubr.bf16.vlgmr.msra.gmra.mxu0 %v828_v10  ;;  %787 = vmatmul.mubr.bf16.vlgmr.msra.gmra.mxu1 %v832_v11 }
  0x2d   : > { %782 = vmatprep.mubr.bf16.mxu0 %v829_v12  ;;  %790 = vmatprep.mubr.bf16.mxu1 %v833_v13 }
  0x34   : > { %783 = vmatmul.mubr.bf16.gmra.mxu0 %v830_v14  ;;  %791 = vmatmul.mubr.bf16.gmra.mxu1 %v834_v15 }
  0xec   : > { %v780_v17 = vpop.f32.mrf.mxu0  ;;  %v788_v18 = vpop.f32.mrf.mxu1 }
  0xed   : > { %v514_v34 = vmul.f32 %v780_v17, %v780_v17  ;;  %v522_v4 = vmul.f32 %v788_v18, %v788_v18 }
  0xee   : > { %v348_v19 = vpop.f32.mrf.mxu0  ;;  %v380_v20 = vpop.f32.mrf.mxu1 }
  0xef   : > { %v512_v25 = vmul.f32 %v348_v19, %v348_v19  ;;  %v520_v62 = vmul.f32 %v380_v20, %v380_v20 }
  0xf0   : > { %v781_v21 = vpop.f32.mrf.mxu0  ;;  %v789_v22 = vpop.f32.mrf.mxu1 }
  0xf1   : > { %v707_v23 = vpack.c.bf16 %v781_v21, %v780_v17  ;;  %v727_v24 = vpack.c.bf16 %v789_v22, %v788_v18  ;;  %v515_v39 = vmul.f32 %v781_v21, %v781_v21  ;;  %v523_v7 = vmul.f32 %v789_v22, %v789_v22 }
  0xf2   : > { %v351_v26 = vpop.f32.mrf.mxu0  ;;  %v383_v27 = vpop.f32.mrf.mxu1 }
  0xf3   : > { %739 = vst [vmem:[%s930_s17 + $0x8] sm:$0xff] %v707_v23   ;;  %v702_v28 = vpack.c.bf16 %v351_v26, %v348_v19  ;;  %v491_v29 = vadd.f32 %v351_v26, %v348_v19  ;;  %v513_v30 = vmul.f32 %v351_v26, %v351_v26  ;;  %743 = vst [vmem:[%s930_s17 + $0x28] sm:$0xff] %v727_v24  }
  0xf4   : > { %v722_v31 = vpack.c.bf16 %v383_v27, %v380_v20  ;;  %v784_v32 = vpop.f32.mrf.mxu0  ;;  %v792_v33 = vpop.f32.mrf.mxu1  ;;  %v521_v2 = vmul.f32 %v383_v27, %v383_v27 }
  0xf5   : > { %703 = vst [vmem:[%s930_s17] sm:$0xff] %v702_v28   ;;  %v492_v35 = vadd.f32 %v780_v17, %v491_v29  ;;  %v528_v36 = vadd.f32 %v513_v30, %v512_v25  ;;  %v518_v56 = vmul.f32 %v784_v32, %v784_v32  ;;  %v526_v16 = vmul.f32 %v792_v33, %v792_v33 }
  0xf6   : > { %742 = vst [vmem:[%s930_s17 + $0x20] sm:$0xff] %v722_v31   ;;  %v364_v37 = vpop.f32.mrf.mxu0  ;;  %v396_v38 = vpop.f32.mrf.mxu1 }
  0xf7   : > { %v529_v40 = vadd.f32 %v528_v36, %v514_v34  ;;  %v493_v41 = vadd.f32 %v781_v21, %v492_v35  ;;  %v516_v45 = vmul.f32 %v364_v37, %v364_v37  ;;  %v524_v11 = vmul.f32 %v396_v38, %v396_v38 }
  0xf8   : > { %v785_v42 = vpop.f32.mrf.mxu0  ;;  %v793_v43 = vpop.f32.mrf.mxu1 }
  0xf9   : > { %v494_v44 = vadd.f32 %v493_v41, %v364_v37  ;;  %v530_v46 = vadd.f32 %v529_v40, %v515_v39  ;;  %v717_v47 = vpack.c.bf16 %v785_v42, %v784_v32  ;;  %v737_v49 = vpack.c.bf16 %v793_v43, %v792_v33 }
  0xfa   : > { %v367_v48 = vpop.f32.mrf.mxu0  ;;  %v399_v50 = vpop.f32.mrf.mxu1  ;;  %v519_v59 = vmul.f32 %v785_v42, %v785_v42  ;;  %v527_v21 = vmul.f32 %v793_v43, %v793_v43 }
  0xfb   : > { %v531_v51 = vadd.f32 %v530_v46, %v516_v45  ;;  %741 = vst [vmem:[%s930_s17 + $0x18] sm:$0xff] %v717_v47   ;;  %v712_v52 = vpack.c.bf16 %v367_v48, %v364_v37  ;;  %v495_v53 = vadd.f32 %v494_v44, %v367_v48  ;;  %v517_v54 = vmul.f32 %v367_v48, %v367_v48 }
  0xfc   : > { %745 = vst [vmem:[%s930_s17 + $0x38] sm:$0xff] %v737_v49   ;;  %v732_v55 = vpack.c.bf16 %v399_v50, %v396_v38  ;;  %v525_v15 = vmul.f32 %v399_v50, %v399_v50 }
  0xfd   : > { %740 = vst [vmem:[%s930_s17 + $0x10] sm:$0xff] %v712_v52   ;;  %v496_v57 = vadd.f32 %v784_v32, %v495_v53  ;;  %v532_v58 = vadd.f32 %v531_v51, %v517_v54 }
  0xfe   : > { %744 = vst [vmem:[%s930_s17 + $0x30] sm:$0xff] %v732_v55  }
  0xff   : > { %v497_v60 = vadd.f32 %v785_v42, %v496_v57  ;;  %v533_v61 = vadd.f32 %v532_v58, %v518_v56 }
 0x101   : > { %v534_v63 = vadd.f32 %v533_v61, %v519_v59  ;;  %v498_v0 = vadd.f32 %v497_v60, %v380_v20 }
 0x103   : > { %v499_v1 = vadd.f32 %v498_v0, %v383_v27  ;;  %v535_v3 = vadd.f32 %v534_v63, %v520_v62 }
 0x105   : > { %v500_v5 = vadd.f32 %v788_v18, %v499_v1  ;;  %v536_v6 = vadd.f32 %v535_v3, %v521_v2 }
 0x107   : > { %v537_v8 = vadd.f32 %v536_v6, %v522_v4  ;;  %v501_v9 = vadd.f32 %v789_v22, %v500_v5 }
 0x109   : > { %v502_v10 = vadd.f32 %v501_v9, %v396_v38  ;;  %v538_v12 = vadd.f32 %v537_v8, %v523_v7 }
 0x10b   : > { %v539_v13 = vadd.f32 %v538_v12, %v524_v11  ;;  %v503_v14 = vadd.f32 %v502_v10, %v399_v50 }
 0x10d   : > { %v504_v17 = vadd.f32 %v792_v33, %v503_v14  ;;  %v540_v19 = vadd.f32 %v539_v13, %v525_v15 }
 0x10f   : > { %v505_v20 = vadd.f32 %v793_v43, %v504_v17  ;;  %v541_v23 = vadd.f32 %v540_v19, %v526_v16 }
 0x111   : > { %v506_v24 = vrot.slane %v505_v20, 4  ;;  %v542_v18 = vadd.f32 %v541_v23, %v527_v21 }
 0x113   : > { %v507_v25 = vadd.f32 %v506_v24, %v505_v20  ;;  %v543_v26 = vrot.slane %v542_v18, 4 }
 0x115   : > { %v508_v27 = vrot.slane %v507_v25, 2  ;;  %v544_v22 = vadd.f32 %v543_v26, %v542_v18 }
 0x117   : > { %v509_v28 = vadd.f32 %v508_v27, %v507_v25  ;;  %v545_v29 = vrot.slane %v544_v22, 2 }
 0x119   : > { %v510_v30 = vrot.slane %v509_v28, 1  ;;  %v546_v31 = vadd.f32 %v545_v29, %v544_v22 }
 0x11b   : > { %v511_v32 = vadd.f32 %v510_v30, %v509_v28  ;;  %v547_v34 = vrot.slane %v546_v31, 1 }
 0x11d   : > { %v548_v35 = vadd.f32 %v547_v34, %v546_v31  ;;  %549 = vst [vmem:[%s922_s11] sm:$0x1] %v511_v32 }
 0x11f   : > { %550 = vst [vmem:[%s922_s11 + $0x1] sm:$0x1] %v548_v35 }
 0x120 PF: > { %s14_s12 = sadd.s32 1, %s841_s12  }
 0x121   : > { %p11_p5 = scmp.ge.s32.totalorder %s14_s12, 6  }
 0x123   :  { %13 = sbr.rel (!%p11_p5) target bundleno = 1 (0x1), region = 70 }

// kernel: bottleneck_forward.6
= control target key start
LH: loop header
LB: loop body
LE: loop exit
PB: predicated region body
PF: predicated region fallthrough
CT: control target
= control target key end

     0   :  { %s991_s18 = smov 0   ;;  %s1114_s0 = inlined_call_operand.vmem [shape: bf16[512,128], index: 0, kind: input, shape index: {}]   ;;  %s1115_s1 = inlined_call_operand.vmem [shape: f32[1,128], index: 1, kind: input, shape index: {}]   ;;  %s1116_s2 = inlined_call_operand.vmem [shape: f32[1,128], index: 2, kind: input, shape index: {}]   ;;  %s1117_s3 = inlined_call_operand.vmem [shape: bf16[128,128], index: 3, kind: input, shape index: {}]   ;;  %s1118_s4 = inlined_call_operand.vmem [shape: bf16[512,128], index: 4, kind: output, shape index: {0}]   ;;  %s1119_s5 = inlined_call_operand.vmem [shape: f32[32,128], index: 5, kind: output, shape index: {1}]  }
   0x1 LB: > { %s997_s19 = sadd.s32 4294967295, %s958_s18   ;;  %p735_p0 = scmp.ge.s32.totalorder %s958_s18, 1  ;;  %s958_s18 = sphi %s991_s18, %s16_s18  }
   0x2   : > { %p191_p1 = scmp.lt.s32.totalorder %s958_s18, 5 }
   0x4   : > { %p192_p2 = pnand %p735_p0, %p191_p1 }
   0x5   : > { %s736_s22 = sshll.u32 (!%p192_p2), %s997_s19, 4  ;;  %p235_p4 = scmp.lt.s32.totalorder (!%p192_p2), %s997_s19, 3 }
   0x6   : > { %195 = sbr.rel (%p192_p2) target bundleno = 288 (0x120), region = 36  ;;  %p224_p3 = scmp.lt.s32.totalorder (!%p192_p2), %s736_s22, 63 }
   0xb   : > { %v944_v0 = vld [vmem:[%s1117_s3 + $0x38] sm:$0xff]   ;;  %v945_v1 = vld [vmem:[%s1117_s3 + $0x30] sm:$0xff]   ;;  %s1121_s22 = smov (!%p224_p3, %s736_s22), 63  ;;  %v946_v2 = vld [vmem:[%s1117_s3 + $0x28] sm:$0xff]   ;;  %s1123_s19 = smov (!%p235_p4, %s997_s19), 3 }
   0xc   : > { %887 = vmatprep.subr.bf16.mxu0 %v944_v0  ;;  %919 = vmatprep.subr.bf16.mxu1 %v944_v0  ;;  %s737_s27 = sshll.u32 %s1121_s22, 2  ;;  %v947_v3 = vld [vmem:[%s1117_s3 + $0x20] sm:$0xff]   ;;  %v948_v16 = vld [vmem:[%s1117_s3 + $0x18] sm:$0xff]   ;;  %v949_v28 = vld [vmem:[%s1117_s3 + $0x10] sm:$0xff]   ;;  %s740_s23 = sshll.u32 %s1123_s19, 3 }
   0xd   : > { %888 = vmatpush3.bf16.msra.mxu0 %v944_v0  ;;  %927 = vmatpush3.bf16.msra.mxu1 %v944_v0  ;;  %s1019_s30 = scalar_lea.vmem %s1114_s0, %s737_s27  ;;  %v1028_v5 = vld [vmem:[%s1115_s1] ss:$0 sm:$0xff]  ;;  %v950_v44 = vld [vmem:[%s1117_s3 + $0x8] sm:$0xff]   ;;  %s1091_s26 = scalar_lea.vmem %s1119_s5, %s740_s23 }
   0xe   : > { %889 = vmatprep.subr.bf16.mxu0 %v945_v1  ;;  %920 = vmatprep.subr.bf16.mxu1 %v945_v1  ;;  %v786_v4 = vld [vmem:[%s1019_s30] sm:$0xff]   ;;  %v857_v8 = vld [vmem:[%s1019_s30 + $0x8] sm:$0xff]   ;;  %v858_v9 = vld [vmem:[%s1019_s30 + $0x10] sm:$0xff]  }
   0xf   : > { %v787_v6 = vunpack.c.l.bf16 %v786_v4  ;;  %v788_v7 = vunpack.c.h.bf16 %v786_v4  ;;  %v1035_v10 = vld [vmem:[%s1116_s2] ss:$0 sm:$0xff]  ;;  %v791_v11 = vunpack.c.l.bf16 %v857_v8  ;;  %v792_v14 = vunpack.c.h.bf16 %v857_v8  ;;  %v859_v22 = vld [vmem:[%s1019_s30 + $0x18] sm:$0xff]   ;;  %v861_v27 = vld [vmem:[%s1019_s30 + $0x28] sm:$0xff]  }
  0x10   : > { %v860_v15 = vld [vmem:[%s1019_s30 + $0x20] sm:$0xff]   ;;  %v795_v17 = vunpack.c.l.bf16 %v858_v9  ;;  %v796_v21 = vunpack.c.h.bf16 %v858_v9  ;;  %v862_v30 = vld [vmem:[%s1019_s30 + $0x30] sm:$0xff]   ;;  %v799_v32 = vunpack.c.l.bf16 %v859_v22  ;;  %v800_v33 = vunpack.c.h.bf16 %v859_v22  ;;  %v863_v39 = vld [vmem:[%s1019_s30 + $0x38] sm:$0xff]   ;;  %s1099_s30 = scalar_lea.vmem %s1118_s4, %s737_s27 }
  0x11   : > { %890 = vmatpush3.bf16.msra.mxu0 %v945_v1  ;;  %928 = vmatpush3.bf16.msra.mxu1 %v945_v1  ;;  %v279_v12 = vmul.f32 %v787_v6, %v1028_v5  ;;  %v280_v13 = vmul.f32 %v788_v7, %v1028_v5  ;;  %v281_v20 = vmul.f32 %v791_v11, %v1028_v5  ;;  %v803_v23 = vunpack.c.l.bf16 %v860_v15  ;;  %v951_v61 = vld [vmem:[%s1117_s3] sm:$0xff]  }
  0x12   : > { %891 = vmatprep.subr.bf16.mxu0 %v946_v2  ;;  %921 = vmatprep.subr.bf16.mxu1 %v946_v2  ;;  %v282_v26 = vmul.f32 %v792_v14, %v1028_v5  ;;  %v283_v29 = vmul.f32 %v795_v17, %v1028_v5  ;;  %v804_v34 = vunpack.c.h.bf16 %v860_v15  ;;  %v284_v36 = vmul.f32 %v796_v21, %v1028_v5 }
  0x13   : > { %v302_v18 = vadd.f32 %v1035_v10, %v279_v12  ;;  %v303_v19 = vadd.f32 %v1035_v10, %v280_v13  ;;  %v304_v35 = vadd.f32 %v1035_v10, %v281_v20  ;;  %v287_v37 = vmul.f32 %v803_v23, %v1028_v5 }
  0x14   : > { %v807_v38 = vunpack.c.l.bf16 %v861_v27  ;;  %v305_v40 = vadd.f32 %v1035_v10, %v282_v26  ;;  %v288_v41 = vmul.f32 %v804_v34, %v1028_v5  ;;  %v808_v42 = vunpack.c.h.bf16 %v861_v27 }
  0x15   : > { %892 = vmatpush3.bf16.msra.mxu0 %v946_v2  ;;  %929 = vmatpush3.bf16.msra.mxu1 %v946_v2  ;;  %v318_v24 = vmax.f32 %v302_v18, 0.0  ;;  %v319_v25 = vmax.f32 %v303_v19, 0.0  ;;  %v811_v43 = vunpack.c.l.bf16 %v862_v30  ;;  %v306_v45 = vadd.f32 %v1035_v10, %v283_v29 }
  0x16   : > { %893 = vmatprep.subr.bf16.mxu0 %v947_v3  ;;  %922 = vmatprep.subr.bf16.mxu1 %v947_v3  ;;  %v310_v46 = vadd.f32 %v1035_v10, %v287_v37  ;;  %v289_v47 = vmul.f32 %v807_v38, %v1028_v5  ;;  %v812_v48 = vunpack.c.h.bf16 %v862_v30  ;;  %v311_v49 = vadd.f32 %v1035_v10, %v288_v41 }
  0x17   : > { %v334_v31 = vpack.c.bf16 %v319_v25, %v318_v24  ;;  %v290_v50 = vmul.f32 %v808_v42, %v1028_v5  ;;  %v291_v51 = vmul.f32 %v811_v43, %v1028_v5  ;;  %v815_v52 = vunpack.c.l.bf16 %v863_v39 }
  0x18   : > { %v326_v53 = vmax.f32 %v310_v46, 0.0  ;;  %v312_v54 = vadd.f32 %v1035_v10, %v289_v47  ;;  %v292_v55 = vmul.f32 %v812_v48, %v1028_v5  ;;  %v816_v56 = vunpack.c.h.bf16 %v863_v39 }
  0x19   : > { %894 = vmatpush3.bf16.msra.mxu0 %v947_v3  ;;  %930 = vmatpush3.bf16.msra.mxu1 %v947_v3  ;;  %v307_v57 = vadd.f32 %v1035_v10, %v284_v36  ;;  %v327_v58 = vmax.f32 %v311_v49, 0.0  ;;  %v313_v59 = vadd.f32 %v1035_v10, %v290_v50  ;;  %v314_v60 = vadd.f32 %v1035_v10, %v291_v51 }
  0x1a   : > { %895 = vmatprep.subr.bf16.mxu0 %v948_v16  ;;  %923 = vmatprep.subr.bf16.mxu1 %v948_v16  ;;  %v285_v62 = vmul.f32 %v799_v32, %v1028_v5  ;;  %v315_v63 = vadd.f32 %v1035_v10, %v292_v55  ;;  %v320_v0 = vmax.f32 %v304_v35, 0.0  ;;  %v321_v1 = vmax.f32 %v305_v40, 0.0 }
  0x1b   : > { %903 = vmatprep.mubr.bf16.mxu0 %v334_v31  ;;  %v286_v2 = vmul.f32 %v800_v33, %v1028_v5  ;;  %v338_v3 = vpack.c.bf16 %v327_v58, %v326_v53  ;;  %v328_v4 = vmax.f32 %v312_v54, 0.0  ;;  %v329_v6 = vmax.f32 %v313_v59, 0.0 }
  0x1c   : > { %v293_v7 = vmul.f32 %v815_v52, %v1028_v5  ;;  %v294_v8 = vmul.f32 %v816_v56, %v1028_v5  ;;  %v322_v9 = vmax.f32 %v306_v45, 0.0  ;;  %v323_v11 = vmax.f32 %v307_v57, 0.0 }
  0x1d   : > { %896 = vmatpush3.bf16.msra.mxu0 %v948_v16  ;;  %931 = vmatpush3.bf16.msra.mxu1 %v948_v16  ;;  %v330_v12 = vmax.f32 %v314_v60, 0.0  ;;  %v331_v13 = vmax.f32 %v315_v63, 0.0  ;;  %v308_v14 = vadd.f32 %v1035_v10, %v285_v62  ;;  %v309_v15 = vadd.f32 %v1035_v10, %v286_v2 }
  0x1e   : > { %897 = vmatprep.subr.bf16.mxu0 %v949_v28  ;;  %924 = vmatprep.subr.bf16.mxu1 %v949_v28  ;;  %v335_v16 = vpack.c.bf16 %v321_v1, %v320_v0  ;;  %v339_v17 = vpack.c.bf16 %v329_v6, %v328_v4  ;;  %v316_v18 = vadd.f32 %v1035_v10, %v293_v7 }
  0x1f   : > { %911 = vmatprep.mubr.bf16.mxu1 %v338_v3  ;;  %v317_v19 = vadd.f32 %v1035_v10, %v294_v8  ;;  %v336_v5 = vpack.c.bf16 %v323_v11, %v322_v9  ;;  %v340_v20 = vpack.c.bf16 %v331_v13, %v330_v12  ;;  %v324_v21 = vmax.f32 %v308_v14, 0.0 }
  0x20   : > { %v325_v22 = vmax.f32 %v309_v15, 0.0  ;;  %v332_v23 = vmax.f32 %v316_v18, 0.0  ;;  %v960_v10 = vmov 0.0  }
  0x21   : > { %898 = vmatpush3.bf16.msra.mxu0 %v949_v28  ;;  %932 = vmatpush3.bf16.msra.mxu1 %v949_v28  ;;  %v333_v24 = vmax.f32 %v317_v19, 0.0  ;;  %643 = vst [vmem:[%s1091_s26 + $0x2] sm:$0x3f] %v960_v10 }
  0x22   : > { %899 = vmatprep.subr.bf16.mxu0 %v950_v44  ;;  %925 = vmatprep.subr.bf16.mxu1 %v950_v44  ;;  %v337_v25 = vpack.c.bf16 %v325_v22, %v324_v21 }
  0x23   : > { %v341_v26 = vpack.c.bf16 %v333_v24, %v332_v23 }
  0x25   : > { %900 = vmatpush3.bf16.msra.mxu0 %v950_v44  ;;  %933 = vmatpush3.bf16.msra.mxu1 %v950_v44 }
  0x26   : > { %901 = vmatprep.subr.bf16.mxu0 %v951_v61  ;;  %926 = vmatprep.subr.bf16.mxu1 %v951_v61 }
  0x29   : > { %902 = vmatpush3.bf16.msra.mxu0 %v951_v61  ;;  %934 = vmatpush3.bf16.msra.mxu1 %v951_v61 }
  0x2c   : > { %904 = vmatmul.mubr.bf16.vlgmr.msra.gmra.mxu0 %v335_v16  ;;  %912 = vmatmul.mubr.bf16.vlgmr.msra.gmra.mxu1 %v339_v17 }
  0x2d   : > { %907 = vmatprep.mubr.bf16.mxu0 %v336_v5  ;;  %915 = vmatprep.mubr.bf16.mxu1 %v340_v20 }
  0x34   : > { %908 = vmatmul.mubr.bf16.gmra.mxu0 %v337_v25  ;;  %916 = vmatmul.mubr.bf16.gmra.mxu1 %v341_v26 }
  0xec   : > { %v905_v27 = vpop.f32.mrf.mxu0  ;;  %v913_v28 = vpop.f32.mrf.mxu1 }
  0xed   : > { %v606_v44 = vmul.f32 %v905_v27, %v905_v27  ;;  %v614_v16 = vmul.f32 %v913_v28, %v913_v28 }
  0xee   : > { %v440_v29 = vpop.f32.mrf.mxu0  ;;  %v472_v30 = vpop.f32.mrf.mxu1 }
  0xef   : > { %v604_v35 = vmul.f32 %v440_v29, %v440_v29  ;;  %v612_v9 = vmul.f32 %v472_v30, %v472_v30 }
  0xf0   : > { %v906_v31 = vpop.f32.mrf.mxu0  ;;  %v914_v32 = vpop.f32.mrf.mxu1 }
  0xf1   : > { %v825_v33 = vpack.c.bf16 %v906_v31, %v905_v27  ;;  %v845_v34 = vpack.c.bf16 %v914_v32, %v913_v28  ;;  %v607_v49 = vmul.f32 %v906_v31, %v906_v31  ;;  %v615_v19 = vmul.f32 %v914_v32, %v914_v32 }
  0xf2   : > { %v443_v36 = vpop.f32.mrf.mxu0  ;;  %v475_v37 = vpop.f32.mrf.mxu1 }
  0xf3   : > { %864 = vst [vmem:[%s1099_s30 + $0x8] sm:$0xff] %v825_v33   ;;  %v820_v38 = vpack.c.bf16 %v443_v36, %v440_v29  ;;  %v583_v39 = vadd.f32 %v443_v36, %v440_v29  ;;  %v605_v40 = vmul.f32 %v443_v36, %v443_v36  ;;  %868 = vst [vmem:[%s1099_s30 + $0x28] sm:$0xff] %v845_v34  }
  0xf4   : > { %v840_v41 = vpack.c.bf16 %v475_v37, %v472_v30  ;;  %v909_v42 = vpop.f32.mrf.mxu0  ;;  %v917_v43 = vpop.f32.mrf.mxu1  ;;  %v613_v14 = vmul.f32 %v475_v37, %v475_v37 }
  0xf5   : > { %821 = vst [vmem:[%s1099_s30] sm:$0xff] %v820_v38   ;;  %v584_v45 = vadd.f32 %v905_v27, %v583_v39  ;;  %v620_v46 = vadd.f32 %v605_v40, %v604_v35  ;;  %v610_v2 = vmul.f32 %v909_v42, %v909_v42  ;;  %v618_v10 = vmul.f32 %v917_v43, %v917_v43 }
  0xf6   : > { %867 = vst [vmem:[%s1099_s30 + $0x20] sm:$0xff] %v840_v41   ;;  %v456_v47 = vpop.f32.mrf.mxu0  ;;  %v488_v48 = vpop.f32.mrf.mxu1 }
  0xf7   : > { %v621_v50 = vadd.f32 %v620_v46, %v606_v44  ;;  %v585_v51 = vadd.f32 %v906_v31, %v584_v45  ;;  %v608_v55 = vmul.f32 %v456_v47, %v456_v47  ;;  %v616_v22 = vmul.f32 %v488_v48, %v488_v48 }
  0xf8   : > { %v910_v52 = vpop.f32.mrf.mxu0  ;;  %v918_v53 = vpop.f32.mrf.mxu1 }
  0xf9   : > { %v586_v54 = vadd.f32 %v585_v51, %v456_v47  ;;  %v622_v56 = vadd.f32 %v621_v50, %v607_v49  ;;  %v835_v57 = vpack.c.bf16 %v910_v52, %v909_v42  ;;  %v855_v59 = vpack.c.bf16 %v918_v53, %v917_v43 }
  0xfa   : > { %v459_v58 = vpop.f32.mrf.mxu0  ;;  %v491_v60 = vpop.f32.mrf.mxu1  ;;  %v611_v6 = vmul.f32 %v910_v52, %v910_v52  ;;  %v619_v31 = vmul.f32 %v918_v53, %v918_v53 }
  0xfb   : > { %v623_v61 = vadd.f32 %v622_v56, %v608_v55  ;;  %866 = vst [vmem:[%s1099_s30 + $0x18] sm:$0xff] %v835_v57   ;;  %v830_v62 = vpack.c.bf16 %v459_v58, %v456_v47  ;;  %v587_v63 = vadd.f32 %v586_v54, %v459_v58  ;;  %v609_v0 = vmul.f32 %v459_v58, %v459_v58 }
  0xfc   : > { %870 = vst [vmem:[%s1099_s30 + $0x38] sm:$0xff] %v855_v59   ;;  %v850_v1 = vpack.c.bf16 %v491_v60, %v488_v48  ;;  %v617_v26 = vmul.f32 %v491_v60, %v491_v60 }
  0xfd   : > { %865 = vst [vmem:[%s1099_s30 + $0x10] sm:$0xff] %v830_v62   ;;  %v588_v3 = vadd.f32 %v909_v42, %v587_v63  ;;  %v624_v4 = vadd.f32 %v623_v61, %v609_v0 }
  0xfe   : > { %869 = vst [vmem:[%s1099_s30 + $0x30] sm:$0xff] %v850_v1  }
  0xff   : > { %v589_v7 = vadd.f32 %v910_v52, %v588_v3  ;;  %v625_v8 = vadd.f32 %v624_v4, %v610_v2 }
 0x101   : > { %v626_v11 = vadd.f32 %v625_v8, %v611_v6  ;;  %v590_v12 = vadd.f32 %v589_v7, %v472_v30 }
 0x103   : > { %v591_v13 = vadd.f32 %v590_v12, %v475_v37  ;;  %v627_v15 = vadd.f32 %v626_v11, %v612_v9 }
 0x105   : > { %v592_v17 = vadd.f32 %v913_v28, %v591_v13  ;;  %v628_v18 = vadd.f32 %v627_v15, %v613_v14 }
 0x107   : > { %v629_v5 = vadd.f32 %v628_v18, %v614_v16  ;;  %v593_v20 = vadd.f32 %v914_v32, %v592_v17 }
 0x109   : > { %v594_v21 = vadd.f32 %v593_v20, %v488_v48  ;;  %v630_v23 = vadd.f32 %v629_v5, %v615_v19 }
 0x10b   : > { %v631_v24 = vadd.f32 %v630_v23, %v616_v22  ;;  %v595_v25 = vadd.f32 %v594_v21, %v491_v60 }
 0x10d   : > { %v596_v27 = vadd.f32 %v917_v43, %v595_v25  ;;  %v632_v29 = vadd.f32 %v631_v24, %v617_v26 }
 0x10f   : > { %v597_v30 = vadd.f32 %v918_v53, %v596_v27  ;;  %v633_v33 = vadd.f32 %v632_v29, %v618_v10 }
 0x111   : > { %v598_v34 = vrot.slane %v597_v30, 4  ;;  %v634_v28 = vadd.f32 %v633_v33, %v619_v31 }
 0x113   : > { %v599_v35 = vadd.f32 %v598_v34, %v597_v30  ;;  %v635_v36 = vrot.slane %v634_v28, 4 }
 0x115   : > { %v600_v37 = vrot.slane %v599_v35, 2  ;;  %v636_v32 = vadd.f32 %v635_v36, %v634_v28 }
 0x117   : > { %v601_v38 = vadd.f32 %v600_v37, %v599_v35  ;;  %v637_v39 = vrot.slane %v636_v32, 2 }
 0x119   : > { %v602_v40 = vrot.slane %v601_v38, 1  ;;  %v638_v41 = vadd.f32 %v637_v39, %v636_v32 }
 0x11b   : > { %v603_v42 = vadd.f32 %v602_v40, %v601_v38  ;;  %v639_v44 = vrot.slane %v638_v41, 1 }
 0x11d   : > { %v640_v45 = vadd.f32 %v639_v44, %v638_v41  ;;  %641 = vst [vmem:[%s1091_s26] sm:$0x1] %v603_v42 }
 0x11f   : > { %642 = vst [vmem:[%s1091_s26 + $0x1] sm:$0x1] %v640_v45 }
 0x120 PF: > { %s16_s18 = sadd.s32 1, %s958_s18  }
 0x121   : > { %p13_p5 = scmp.ge.s32.totalorder %s16_s18, 6  }
 0x123   :  { %15 = sbr.rel (!%p13_p5) target bundleno = 1 (0x1), region = 78 }

// kernel: bottleneck_forward.7
= control target key start
LH: loop header
LB: loop body
LE: loop exit
PB: predicated region body
PF: predicated region fallthrough
CT: control target
= control target key end

     0   :  { %s726_s15 = smov 0   ;;  %s823_s0 = inlined_call_operand.vmem [shape: bf16[512,128], index: 0, kind: input, shape index: {}]   ;;  %s824_s1 = inlined_call_operand.vmem [shape: f32[1,128], index: 1, kind: input, shape index: {}]   ;;  %s825_s2 = inlined_call_operand.vmem [shape: f32[1,128], index: 2, kind: input, shape index: {}]   ;;  %s826_s3 = inlined_call_operand.vmem [shape: bf16[512,128], index: 3, kind: input, shape index: {}]   ;;  %s827_s4 = inlined_call_operand.vmem [shape: bf16[512,128], index: 4, kind: output, shape index: {}]  }
   0x1 LB: > { %s513_s16 = sadd.s32 4294967295, %s699_s15   ;;  %p517_p0 = scmp.ge.s32.totalorder %s699_s15, 1  ;;  %s699_s15 = sphi %s726_s15, %s14_s15  }
   0x2   : > { %p174_p1 = scmp.lt.s32.totalorder %s699_s15, 5 }
   0x4   : > { %p175_p2 = pnand %p517_p0, %p174_p1 }
   0x5   : > { %s518_s17 = sshll.u32 (!%p175_p2), %s513_s16, 4 }
   0x6   : > { %178 = sbr.rel (%p175_p2) target bundleno = 48 (0x30), region = 36  ;;  %p206_p3 = scmp.lt.s32.totalorder (!%p175_p2), %s518_s17, 63 }
   0xb   : > { %s829_s17 = smov (!%p206_p3, %s518_s17), 63  ;;  %v751_v0 = vld [vmem:[%s824_s1] ss:$0 sm:$0xff] }
   0xc   : > { %s734_s18 = sshll.u32 %s829_s17, 2  ;;  %v762_v11 = vld [vmem:[%s825_s2] ss:$0 sm:$0xff] }
   0xd   : > { %s740_s21 = scalar_lea.vmem %s823_s0, %s734_s18  ;;  %s746_s24 = scalar_lea.vmem %s826_s3, %s734_s18 }
   0xe   : > { %v561_v1 = vld [vmem:[%s740_s21] sm:$0xff]   ;;  %v664_v3 = vld [vmem:[%s740_s21 + $0x8] sm:$0xff]   ;;  %v665_v9 = vld [vmem:[%s740_s21 + $0x10] sm:$0xff]   ;;  %s785_s5 = scalar_lea.vmem %s827_s4, %s734_s18 }
   0xf   : > { %v593_v2 = vld [vmem:[%s746_s24] sm:$0xff]   ;;  %v562_v4 = vunpack.c.l.bf16 %v561_v1  ;;  %v563_v5 = vunpack.c.h.bf16 %v561_v1  ;;  %v671_v8 = vld [vmem:[%s746_s24 + $0x8] sm:$0xff]   ;;  %v672_v10 = vld [vmem:[%s746_s24 + $0x10] sm:$0xff]   ;;  %v566_v12 = vunpack.c.l.bf16 %v664_v3  ;;  %v567_v13 = vunpack.c.h.bf16 %v664_v3 }
  0x10   : > { %v594_v6 = vunpack.c.l.bf16 %v593_v2  ;;  %v595_v7 = vunpack.c.h.bf16 %v593_v2  ;;  %v598_v14 = vunpack.c.l.bf16 %v671_v8  ;;  %v599_v15 = vunpack.c.h.bf16 %v671_v8  ;;  %v666_v20 = vld [vmem:[%s740_s21 + $0x18] sm:$0xff]   ;;  %v667_v46 = vld [vmem:[%s740_s21 + $0x20] sm:$0xff]   ;;  %v668_v56 = vld [vmem:[%s740_s21 + $0x28] sm:$0xff]  }
  0x11   : > { %v262_v16 = vmul.f32 %v562_v4, %v751_v0  ;;  %v263_v17 = vmul.f32 %v563_v5, %v751_v0  ;;  %v570_v18 = vunpack.c.l.bf16 %v665_v9  ;;  %v571_v19 = vunpack.c.h.bf16 %v665_v9  ;;  %v673_v41 = vld [vmem:[%s746_s24 + $0x18] sm:$0xff]   ;;  %v674_v51 = vld [vmem:[%s746_s24 + $0x20] sm:$0xff]   ;;  %v675_v61 = vld [vmem:[%s746_s24 + $0x28] sm:$0xff]  }
  0x12   : > { %v264_v21 = vmul.f32 %v566_v12, %v751_v0  ;;  %v265_v22 = vmul.f32 %v567_v13, %v751_v0  ;;  %v602_v23 = vunpack.c.l.bf16 %v672_v10  ;;  %v603_v24 = vunpack.c.h.bf16 %v672_v10  ;;  %v676_v8 = vld [vmem:[%s746_s24 + $0x30] sm:$0xff]  }
  0x13   : > { %v285_v25 = vadd.f32 %v762_v11, %v262_v16  ;;  %v286_v26 = vadd.f32 %v762_v11, %v263_v17  ;;  %v266_v27 = vmul.f32 %v570_v18, %v751_v0  ;;  %v267_v28 = vmul.f32 %v571_v19, %v751_v0 }
  0x14   : > { %v287_v29 = vadd.f32 %v762_v11, %v264_v21  ;;  %v288_v30 = vadd.f32 %v762_v11, %v265_v22  ;;  %v574_v31 = vunpack.c.l.bf16 %v666_v20  ;;  %v575_v32 = vunpack.c.h.bf16 %v666_v20  ;;  %v670_v22 = vld [vmem:[%s740_s21 + $0x38] sm:$0xff]  }
  0x15   : > { %v333_v33 = vadd.f32 %v594_v6, %v285_v25  ;;  %v334_v34 = vadd.f32 %v595_v7, %v286_v26  ;;  %v289_v35 = vadd.f32 %v762_v11, %v266_v27  ;;  %v290_v36 = vadd.f32 %v762_v11, %v267_v28  ;;  %v669_v7 = vld [vmem:[%s740_s21 + $0x30] sm:$0xff]  }
  0x16   : > { %v335_v37 = vadd.f32 %v598_v14, %v287_v29  ;;  %v336_v38 = vadd.f32 %v599_v15, %v288_v30  ;;  %v268_v39 = vmul.f32 %v574_v31, %v751_v0  ;;  %v269_v40 = vmul.f32 %v575_v32, %v751_v0  ;;  %v677_v31 = vld [vmem:[%s746_s24 + $0x38] sm:$0xff]  }
  0x17   : > { %v349_v42 = vmax.f32 %v333_v33, 0.0  ;;  %v350_v43 = vmax.f32 %v334_v34, 0.0  ;;  %v337_v44 = vadd.f32 %v602_v23, %v289_v35  ;;  %v338_v45 = vadd.f32 %v603_v24, %v290_v36 }
  0x18   : > { %v351_v47 = vmax.f32 %v335_v37, 0.0  ;;  %v352_v48 = vmax.f32 %v336_v38, 0.0  ;;  %v291_v49 = vadd.f32 %v762_v11, %v268_v39  ;;  %v292_v50 = vadd.f32 %v762_v11, %v269_v40 }
  0x19   : > { %v627_v52 = vpack.c.bf16 %v350_v43, %v349_v42  ;;  %v353_v53 = vmax.f32 %v337_v44, 0.0  ;;  %v354_v54 = vmax.f32 %v338_v45, 0.0  ;;  %v606_v55 = vunpack.c.l.bf16 %v673_v41 }
  0x1a   : > { %v632_v57 = vpack.c.bf16 %v352_v48, %v351_v47  ;;  %v607_v58 = vunpack.c.h.bf16 %v673_v41  ;;  %v578_v59 = vunpack.c.l.bf16 %v667_v46  ;;  %v579_v60 = vunpack.c.h.bf16 %v667_v46 }
  0x1b   : > { %628 = vst [vmem:[%s785_s5] sm:$0xff] %v627_v52   ;;  %v637_v62 = vpack.c.bf16 %v354_v54, %v353_v53  ;;  %v339_v63 = vadd.f32 %v606_v55, %v291_v49  ;;  %v610_v1 = vunpack.c.l.bf16 %v674_v51  ;;  %v611_v2 = vunpack.c.h.bf16 %v674_v51 }
  0x1c   : > { %678 = vst [vmem:[%s785_s5 + $0x8] sm:$0xff] %v632_v57   ;;  %v340_v3 = vadd.f32 %v607_v58, %v292_v50  ;;  %v270_v4 = vmul.f32 %v578_v59, %v751_v0  ;;  %v271_v5 = vmul.f32 %v579_v60, %v751_v0  ;;  %v582_v6 = vunpack.c.l.bf16 %v668_v56 }
  0x1d   : > { %679 = vst [vmem:[%s785_s5 + $0x10] sm:$0xff] %v637_v62   ;;  %v355_v9 = vmax.f32 %v339_v63, 0.0  ;;  %v583_v10 = vunpack.c.h.bf16 %v668_v56  ;;  %v614_v12 = vunpack.c.l.bf16 %v675_v61  ;;  %v615_v13 = vunpack.c.h.bf16 %v675_v61 }
  0x1e   : > { %v356_v14 = vmax.f32 %v340_v3, 0.0  ;;  %v293_v15 = vadd.f32 %v762_v11, %v270_v4  ;;  %v294_v16 = vadd.f32 %v762_v11, %v271_v5  ;;  %v272_v17 = vmul.f32 %v582_v6, %v751_v0 }
  0x1f   : > { %v273_v18 = vmul.f32 %v583_v10, %v751_v0  ;;  %v586_v19 = vunpack.c.l.bf16 %v669_v7  ;;  %v587_v20 = vunpack.c.h.bf16 %v669_v7  ;;  %v618_v21 = vunpack.c.l.bf16 %v676_v8 }
  0x20   : > { %v642_v23 = vpack.c.bf16 %v356_v14, %v355_v9  ;;  %v341_v24 = vadd.f32 %v610_v1, %v293_v15  ;;  %v342_v25 = vadd.f32 %v611_v2, %v294_v16  ;;  %v295_v26 = vadd.f32 %v762_v11, %v272_v17 }
  0x21   : > { %v296_v27 = vadd.f32 %v762_v11, %v273_v18  ;;  %v274_v28 = vmul.f32 %v586_v19, %v751_v0  ;;  %v275_v29 = vmul.f32 %v587_v20, %v751_v0  ;;  %v619_v30 = vunpack.c.h.bf16 %v676_v8 }
  0x22   : > { %680 = vst [vmem:[%s785_s5 + $0x18] sm:$0xff] %v642_v23   ;;  %v357_v32 = vmax.f32 %v341_v24, 0.0  ;;  %v358_v33 = vmax.f32 %v342_v25, 0.0  ;;  %v343_v34 = vadd.f32 %v614_v12, %v295_v26  ;;  %v590_v35 = vunpack.c.l.bf16 %v670_v22 }
  0x23   : > { %v344_v36 = vadd.f32 %v615_v13, %v296_v27  ;;  %v297_v37 = vadd.f32 %v762_v11, %v274_v28  ;;  %v298_v38 = vadd.f32 %v762_v11, %v275_v29  ;;  %v591_v39 = vunpack.c.h.bf16 %v670_v22 }
  0x24   : > { %v647_v40 = vpack.c.bf16 %v358_v33, %v357_v32  ;;  %v359_v41 = vmax.f32 %v343_v34, 0.0  ;;  %v276_v42 = vmul.f32 %v590_v35, %v751_v0  ;;  %v622_v43 = vunpack.c.l.bf16 %v677_v31 }
  0x25   : > { %v360_v44 = vmax.f32 %v344_v36, 0.0  ;;  %v345_v45 = vadd.f32 %v618_v21, %v297_v37  ;;  %v346_v46 = vadd.f32 %v619_v30, %v298_v38  ;;  %v277_v47 = vmul.f32 %v591_v39, %v751_v0 }
  0x26   : > { %681 = vst [vmem:[%s785_s5 + $0x20] sm:$0xff] %v647_v40   ;;  %v299_v48 = vadd.f32 %v762_v11, %v276_v42  ;;  %v623_v49 = vunpack.c.h.bf16 %v677_v31 }
  0x27   : > { %v652_v50 = vpack.c.bf16 %v360_v44, %v359_v41  ;;  %v361_v51 = vmax.f32 %v345_v45, 0.0  ;;  %v362_v52 = vmax.f32 %v346_v46, 0.0  ;;  %v300_v53 = vadd.f32 %v762_v11, %v277_v47 }
  0x28   : > { %v347_v54 = vadd.f32 %v622_v43, %v299_v48 }
  0x29   : > { %682 = vst [vmem:[%s785_s5 + $0x28] sm:$0xff] %v652_v50   ;;  %v657_v55 = vpack.c.bf16 %v362_v52, %v361_v51  ;;  %v348_v56 = vadd.f32 %v623_v49, %v300_v53 }
  0x2a   : > { %v363_v57 = vmax.f32 %v347_v54, 0.0 }
  0x2b   : > { %683 = vst [vmem:[%s785_s5 + $0x30] sm:$0xff] %v657_v55   ;;  %v364_v58 = vmax.f32 %v348_v56, 0.0 }
  0x2d   : > { %v662_v59 = vpack.c.bf16 %v364_v58, %v363_v57 }
  0x2f   : > { %684 = vst [vmem:[%s785_s5 + $0x38] sm:$0xff] %v662_v59  }
  0x30 PF: > { %s14_s15 = sadd.s32 1, %s699_s15  }
  0x31   : > { %p11_p4 = scmp.ge.s32.totalorder %s14_s15, 6  }
  0x33   :  { %13 = sbr.rel (!%p11_p4) target bundleno = 1 (0x1), region = 69 }

// kernel: bottleneck_forward.5
= control target key start
LH: loop header
LB: loop body
LE: loop exit
PB: predicated region body
PF: predicated region fallthrough
CT: control target
= control target key end

     0   :  { %s8491_s21 = smov 0   ;;  %s9847_s0 = inlined_call_operand.vmem [shape: bf16[2,328,128], index: 0, kind: input, shape index: {}]   ;;  %s9848_s1 = inlined_call_operand.vmem [shape: f32[328,1], index: 1, kind: input, shape index: {}]   ;;  %s9849_s2 = inlined_call_operand.vmem [shape: f32[1,128], index: 2, kind: input, shape index: {}]   ;;  %s9850_s3 = inlined_call_operand.vmem [shape: f32[1,128], index: 3, kind: input, shape index: {}]   ;;  %s9851_s4 = inlined_call_operand.vmem [shape: bf16[9,128,128], index: 4, kind: input, shape index: {}]   ;;  %s9852_s5 = inlined_call_operand.vmem [shape: bf16[512,128], index: 5, kind: output, shape index: {0}]   ;;  %s9853_s6 = inlined_call_operand.vmem [shape: f32[16,128], index: 6, kind: output, shape index: {1}]  }
   0x1 LB: > { %s8497_s22 = sadd.s32 4294967295, %s8452_s21   ;;  %p6635_p0 = scmp.ge.s32.totalorder %s8452_s21, 1  ;;  %s8452_s21 = sphi %s8491_s21, %s17_s21  }
   0x2   : > { %p215_p1 = scmp.lt.s32.totalorder %s8452_s21, 3 }
   0x4   : > { %p216_p2 = pnand %p6635_p0, %p215_p1 }
   0x5   : > { %p249_p3 = scmp.lt.s32.totalorder (!%p216_p2), %s8497_s22, 1 }
   0x6   : > { %219 = sbr.rel (%p216_p2) target bundleno = 748 (0x2ec), region = 40 }
   0xb   : > { %v365_v0 = vld [vmem:[%s9848_s1 + $0x90] sm:$0xff]  ;;  %v363_v1 = vld [vmem:[%s9848_s1 + $0x80] sm:$0xff]  ;;  %v8454_v2 = vmov 0   ;;  %v366_v3 = vld [vmem:[%s9848_s1 + $0x98] sm:$0xff]  ;;  %s8611_s27 = scalar_select %p249_p3, %s8497_s22, 1  ;;  %vm2192_vm1 = vcmask 1046528  }
   0xc   : > { %8203 = vset.pattern.permute.xlu1 %v8454_v2  ;;  %8202 = vset.pattern.permute.xlu0 %v8454_v2  ;;  %v364_v4 = vld [vmem:[%s9848_s1 + $0x88] sm:$0xff]  ;;  %v367_v6 = vld [vmem:[%s9848_s1 + $0xa0] sm:$0xff]  ;;  %v370_v7 = vld [vmem:[%s9848_s1 + $0xb8] sm:$0xff]  ;;  %vm1545_vm0 = vsmask.f32 7424  ;;  %vm3932_vm3 = vcmask 1045504  }
   0xd   : > { %617 = vperm.xlu1 %8203, %v365_v0   ;;  %607 = vperm.xlu0 %8202, %v363_v1   ;;  %v368_v5 = vld [vmem:[%s9848_s1 + $0xa8] sm:$0xff]  ;;  %v369_v8 = vld [vmem:[%s9848_s1 + $0xb0] sm:$0xff]  ;;  %v371_v10 = vld [vmem:[%s9848_s1 + $0xc0] sm:$0xff]  ;;  %s8191_s8 = smul.u32 164, %s8611_s27  ;;  %vm3263_vm2 = vsmask.f32 6400 }
   0xe   : > { %v372_v9 = vld [vmem:[%s9848_s1 + $0xc8] sm:$0xff]  ;;  %v8204_v11 = vld [vmem:[%s9851_s4 + $0x38] sm:$0xff]   ;;  %v8205_v12 = vld [vmem:[%s9851_s4 + $0x30] sm:$0xff]   ;;  %vm5003_vm4 = vsmask.f32 5376  ;;  %vm5672_vm5 = vcmask 1044480  }
   0xf   : > { %8175 = vmatprep.subr.bf16.mxu1 %v8204_v11  ;;  %7707 = vmatprep.subr.bf16.mxu0 %v8204_v11  ;;  %v374_v13 = vld [vmem:[%s9848_s1 + $0xd8] sm:$0xff]  ;;  %v373_v14 = vld [vmem:[%s9848_s1 + $0xd0] sm:$0xff]  ;;  %v8206_v15 = vld [vmem:[%s9851_s4 + $0x28] sm:$0xff]   ;;  %s8638_s19 = scalar_lea.vmem %s9847_s0, %s8191_s8  ;;  %s6639_s24 = sshll.u32 %s8611_s27, 3 }
  0x10   : > { %8183 = vmatpush3.bf16.msra.mxu1 %v8204_v11  ;;  %7708 = vmatpush3.bf16.msra.mxu0 %v8204_v11  ;;  %v348_v16 = vld [vmem:[%s9848_s1 + $0x8] sm:$0xff]  ;;  %v347_v17 = vld [vmem:[%s9848_s1] sm:$0xff]  ;;  %v350_v19 = vld [vmem:[%s9848_s1 + $0x18] sm:$0xff]  ;;  %s9670_s28 = scalar_lea.vmem %s9853_s6, %s6639_s24  ;;  %s6637_s27 = sshll.u32 %s8497_s22, 5 }
  0x11   : > { %622 = vperm.xlu1 %8203, %v366_v3   ;;  %612 = vperm.xlu0 %8202, %v364_v4   ;;  %v8207_v18 = vld [vmem:[%s9851_s4 + $0x20] sm:$0xff]   ;;  %v349_v20 = vld [vmem:[%s9848_s1 + $0x10] sm:$0xff]  ;;  %v8208_v21 = vld [vmem:[%s9851_s4 + $0x18] sm:$0xff]   ;;  %p255_p4 = scmp.lt.s32.totalorder %s6637_s27, 63 }
  0x12   : > { %8176 = vmatprep.subr.bf16.mxu1 %v8205_v12  ;;  %7709 = vmatprep.subr.bf16.mxu0 %v8205_v12  ;;  %v376_v22 = vld [vmem:[%s9848_s1 + $0xe8] sm:$0xff]  ;;  %v375_v23 = vld [vmem:[%s9848_s1 + $0xe0] sm:$0xff]  ;;  %v8209_v24 = vld [vmem:[%s9851_s4 + $0x10] sm:$0xff]  }
  0x13   : > { %v378_v25 = vld [vmem:[%s9848_s1 + $0xf8] sm:$0xff]  ;;  %v377_v26 = vld [vmem:[%s9848_s1 + $0xf0] sm:$0xff]  ;;  %v8210_v27 = vld [vmem:[%s9851_s4 + $0x8] sm:$0xff]   ;;  %s9855_s27 = smov (!%p255_p4, %s6637_s27), 63 }
  0x14   : > { %8184 = vmatpush3.bf16.msra.mxu1 %v8205_v12  ;;  %7710 = vmatpush3.bf16.msra.mxu0 %v8205_v12  ;;  %v352_v28 = vld [vmem:[%s9848_s1 + $0x28] sm:$0xff]  ;;  %v351_v29 = vld [vmem:[%s9848_s1 + $0x20] sm:$0xff]  ;;  %v354_v31 = vld [vmem:[%s9848_s1 + $0x38] sm:$0xff]  ;;  %s6638_s22 = sshll.u32 %s9855_s27, 2 }
  0x15   : > { %632 = vperm.xlu1 %8203, %v368_v5   ;;  %627 = vperm.xlu0 %8202, %v367_v6   ;;  %v8211_v30 = vld [vmem:[%s9851_s4] sm:$0xff]   ;;  %v353_v32 = vld [vmem:[%s9848_s1 + $0x30] sm:$0xff]  ;;  %v8600_v33 = vld [vmem:[%s9851_s4 + $0x78] sm:$0xff]   ;;  %s9695_s7 = scalar_lea.vmem %s9852_s5, %s6638_s22 }
  0x16   : > { %8177 = vmatprep.subr.bf16.mxu1 %v8206_v15  ;;  %7711 = vmatprep.subr.bf16.mxu0 %v8206_v15  ;;  %v380_v34 = vld [vmem:[%s9848_s1 + $0x108] sm:$0xff]  ;;  %v379_v35 = vld [vmem:[%s9848_s1 + $0x100] sm:$0xff]  ;;  %v382_v36 = vld [vmem:[%s9848_s1 + $0x118] sm:$0xff] }
  0x17   : > { %v381_v37 = vld [vmem:[%s9848_s1 + $0x110] sm:$0xff]  ;;  %v356_v38 = vld [vmem:[%s9848_s1 + $0x48] sm:$0xff]  ;;  %v355_v39 = vld [vmem:[%s9848_s1 + $0x40] sm:$0xff] }
  0x18   : > { %8185 = vmatpush3.bf16.msra.mxu1 %v8206_v15  ;;  %7712 = vmatpush3.bf16.msra.mxu0 %v8206_v15  ;;  %v8629_v40 = vld [vmem:[%s9851_s4 + $0xb8] sm:$0xff]   ;;  %v357_v42 = vld [vmem:[%s9848_s1 + $0x50] sm:$0xff]  ;;  %v8646_v43 = vld [vmem:[%s9849_s2] ss:$0 sm:$0xff] }
  0x19   : > { %642 = vperm.xlu1 %8203, %v370_v7   ;;  %637 = vperm.xlu0 %8202, %v369_v8   ;;  %v358_v41 = vld [vmem:[%s9848_s1 + $0x58] sm:$0xff]  ;;  %v360_v47 = vld [vmem:[%s9848_s1 + $0x68] sm:$0xff]  ;;  %v359_v50 = vld [vmem:[%s9848_s1 + $0x60] sm:$0xff] }
  0x1a   : > { %8178 = vmatprep.subr.bf16.mxu1 %v8207_v18  ;;  %7713 = vmatprep.subr.bf16.mxu0 %v8207_v18  ;;  %v7426_v44 = vld [vmem:[%s8638_s19 + $0x38] sm:$0xff]   ;;  %v8660_v51 = vld [vmem:[%s9850_s3] ss:$0 sm:$0xff]  ;;  %v7437_v52 = vld [vmem:[%s8638_s19 + $0x90] sm:$0xff]  }
  0x1b   : > { %v7191_v45 = vunpack.c.h.bf16 %v7426_v44  ;;  %v7190_v46 = vunpack.c.l.bf16 %v7426_v44  ;;  %v7235_v55 = vunpack.c.h.bf16 %v7437_v52  ;;  %v7234_v56 = vunpack.c.l.bf16 %v7437_v52  ;;  %v362_v59 = vld [vmem:[%s9848_s1 + $0x78] sm:$0xff]  ;;  %v361_v60 = vld [vmem:[%s9848_s1 + $0x70] sm:$0xff]  ;;  %v384_v2 = vld [vmem:[%s9848_s1 + $0x128] sm:$0xff] }
  0x1c   : > { %8186 = vmatpush3.bf16.msra.mxu1 %v8207_v18  ;;  %7714 = vmatpush3.bf16.msra.mxu0 %v8207_v18  ;;  %v7438_v61 = vld [vmem:[%s8638_s19 + $0x98] sm:$0xff]   ;;  %v383_v5 = vld [vmem:[%s9848_s1 + $0x120] sm:$0xff]  ;;  %v385_v12 = vld [vmem:[%s9848_s1 + $0x130] sm:$0xff] }
  0x1d   : > { %652 = vperm.xlu1 %8203, %v372_v9   ;;  %647 = vperm.xlu0 %8202, %v371_v10   ;;  %v410_v48 = vmul.f32 %v7191_v45, %v8646_v43  ;;  %v409_v49 = vmul.f32 %v7190_v46, %v8646_v43  ;;  %v432_v57 = vmul.f32 %v7235_v55, %v8646_v43  ;;  %v7239_v0 = vunpack.c.h.bf16 %v7438_v61  ;;  %v305_v6 = vld [vmem:[%s8638_s19 + $0xa0] sm:$0xf]  ;;  %v386_v10 = vld [vmem:[%s9848_s1 + $0x138] sm:$0xff]  ;;  %v7428_v15 = vld [vmem:[%s8638_s19 + $0x48] sm:$0xff]  }
  0x1e   : > { %8179 = vmatprep.subr.bf16.mxu1 %v8208_v21  ;;  %7715 = vmatprep.subr.bf16.mxu0 %v8208_v21  ;;  %v431_v58 = vmul.f32 %v7234_v56, %v8646_v43  ;;  %v7238_v1 = vunpack.c.l.bf16 %v7438_v61  ;;  %v346_v9 = vunpack.c.l.bf16 %v305_v6  ;;  %v7198_v18 = vunpack.c.l.bf16 %v7428_v15 }
  0x1f   : > { %v8664_v53 = vadd.f32 %v8660_v51, %v410_v48  ;;  %v8667_v54 = vadd.f32 %v8660_v51, %v409_v49  ;;  %v8679_v62 = vadd.f32 %v8660_v51, %v432_v57  ;;  %v434_v3 = vmul.f32 %v7239_v0, %v8646_v43  ;;  %v7432_v49 = vld [vmem:[%s8638_s19 + $0x68] sm:$0xff]  }
  0x20   : > { %8187 = vmatpush3.bf16.msra.mxu1 %v8208_v21  ;;  %7716 = vmatpush3.bf16.msra.mxu0 %v8208_v21  ;;  %v8682_v63 = vadd.f32 %v8660_v51, %v431_v58  ;;  %v433_v4 = vmul.f32 %v7238_v1, %v8646_v43  ;;  %v435_v11 = vmul.f32 %v8646_v43, %v346_v9 }
  0x21   : > { %662 = vperm.xlu1 %8203, %v374_v13   ;;  %657 = vperm.xlu0 %8202, %v373_v14   ;;  %v8694_v7 = vadd.f32 %v8660_v51, %v434_v3  ;;  %v387_v14 = vld [vmem:[%s9848_s1 + $0x140] sm:$0xff] }
  0x22   : > { %8180 = vmatprep.subr.bf16.mxu1 %v8209_v24  ;;  %7717 = vmatprep.subr.bf16.mxu0 %v8209_v24  ;;  %v8697_v8 = vadd.f32 %v8660_v51, %v433_v4  ;;  %v8707_v13 = vadd.f32 %v8660_v51, %v435_v11 }
  0x24   : > { %8188 = vmatpush3.bf16.msra.mxu1 %v8209_v24  ;;  %7718 = vmatpush3.bf16.msra.mxu0 %v8209_v24  ;;  %v413_v24 = vmul.f32 %v7198_v18, %v8646_v43 }
  0x25   : > { %532 = vperm.xlu1 %8203, %v348_v16   ;;  %527 = vperm.xlu0 %8202, %v347_v17   ;;  %v7427_v16 = vld [vmem:[%s8638_s19 + $0x40] sm:$0xff]   ;;  %v7429_v17 = vld [vmem:[%s8638_s19 + $0x50] sm:$0xff]  }
  0x26   : > { %8181 = vmatprep.subr.bf16.mxu1 %v8210_v27  ;;  %7719 = vmatprep.subr.bf16.mxu0 %v8210_v27  ;;  %v7195_v21 = vunpack.c.h.bf16 %v7427_v16 }
  0x28   : > { %8189 = vmatpush3.bf16.msra.mxu1 %v8210_v27  ;;  %7720 = vmatpush3.bf16.msra.mxu0 %v8210_v27  ;;  %v412_v27 = vmul.f32 %v7195_v21, %v8646_v43 }
  0x29   : > { %542 = vperm.xlu1 %8203, %v350_v19   ;;  %537 = vperm.xlu0 %8202, %v349_v20   ;;  %v7194_v19 = vunpack.c.l.bf16 %v7427_v16  ;;  %v7199_v20 = vunpack.c.h.bf16 %v7428_v15 }
  0x2a   : > { %8182 = vmatprep.subr.bf16.mxu1 %v8211_v30  ;;  %7721 = vmatprep.subr.bf16.mxu0 %v8211_v30 }
  0x2c   : > { %8190 = vmatpush3.bf16.msra.mxu1 %v8211_v30  ;;  %7722 = vmatpush3.bf16.msra.mxu0 %v8211_v30 }
  0x2d   : > { %672 = vperm.xlu1 %8203, %v376_v22   ;;  %667 = vperm.xlu0 %8202, %v375_v23   ;;  %v7203_v22 = vunpack.c.h.bf16 %v7429_v17  ;;  %v7202_v23 = vunpack.c.l.bf16 %v7429_v17 }
  0x2e   : > { %7759 = vmatprep.subr.bf16.mxu1 %v8600_v33  ;;  %7811 = vmatprep.subr.bf16.mxu0 %v8629_v40 }
  0x2f   : > { %v415_v30 = vmul.f32 %v7202_v23, %v8646_v43 }
  0x31   : > { %682 = vperm.xlu1 %8203, %v378_v25   ;;  %677 = vperm.xlu0 %8202, %v377_v26   ;;  %v411_v25 = vmul.f32 %v7194_v19, %v8646_v43  ;;  %v414_v26 = vmul.f32 %v7199_v20, %v8646_v43 }
  0x35   : > { %552 = vperm.xlu1 %8203, %v352_v28   ;;  %547 = vperm.xlu0 %8202, %v351_v29   ;;  %v7430_v28 = vld [vmem:[%s8638_s19 + $0x58] sm:$0xff]   ;;  %v416_v29 = vmul.f32 %v7203_v22, %v8646_v43 }
  0x39   : > { %562 = vperm.xlu1 %8203, %v354_v31   ;;  %557 = vperm.xlu0 %8202, %v353_v32   ;;  %v7207_v31 = vunpack.c.h.bf16 %v7430_v28  ;;  %v7206_v32 = vunpack.c.l.bf16 %v7430_v28 }
  0x3b   : > { %v418_v45 = vmul.f32 %v7207_v31, %v8646_v43  ;;  %v417_v46 = vmul.f32 %v7206_v32, %v8646_v43 }
  0x3d   : > { %692 = vperm.xlu1 %8203, %v380_v34   ;;  %687 = vperm.xlu0 %8202, %v379_v35   ;;  %v461_v34 = vadd.f32 %v8660_v51, %v413_v24  ;;  %v459_v35 = vadd.f32 %v8660_v51, %v411_v25  ;;  %v466_v1 = vadd.f32 %v8660_v51, %v418_v45 }
  0x3f   : > { %v500_v52 = vmax.f32 %v459_v35, 0.0  ;;  %v507_v19 = vmax.f32 %v466_v1, 0.0 }
  0x41   : > { %702 = vperm.xlu1 %8203, %v382_v36   ;;  %697 = vperm.xlu0 %8202, %v381_v37   ;;  %v462_v36 = vadd.f32 %v8660_v51, %v414_v26  ;;  %v460_v37 = vadd.f32 %v8660_v51, %v412_v27  ;;  %v7420_v27 = vld [vmem:[%s8638_s19 + $0x8] sm:$0xff]  }
  0x43   : > { %v503_v55 = vmax.f32 %v462_v36, 0.0  ;;  %v501_v56 = vmax.f32 %v460_v37, 0.0  ;;  %v7167_v37 = vunpack.c.h.bf16 %v7420_v27 }
  0x45   : > { %572 = vperm.xlu1 %8203, %v356_v38   ;;  %567 = vperm.xlu0 %8202, %v355_v39   ;;  %v7431_v38 = vld [vmem:[%s8638_s19 + $0x60] sm:$0xff]   ;;  %v464_v39 = vadd.f32 %v8660_v51, %v416_v29 }
  0x46   : > { %v7210_v48 = vunpack.c.l.bf16 %v7431_v38 }
  0x47   : > { %v505_v57 = vmax.f32 %v464_v39, 0.0 }
  0x48   : > { %v419_v4 = vmul.f32 %v7210_v48, %v8646_v43  ;;  %v7434_v48 = vld [vmem:[%s8638_s19 + $0x78] sm:$0xff]  }
  0x49   : > { %582 = vperm.xlu1 %8203, %v358_v41   ;;  %577 = vperm.xlu0 %8202, %v357_v42   ;;  %v463_v41 = vadd.f32 %v8660_v51, %v415_v30 }
  0x4a   : > { %v467_v26 = vadd.f32 %v8660_v51, %v419_v4 }
  0x4b   : > { %v504_v58 = vmax.f32 %v463_v41, 0.0 }
  0x4c   : > { %v508_v41 = vmax.f32 %v467_v26, 0.0 }
  0x4d   : > { %592 = vperm.xlu1 %8203, %v360_v47   ;;  %587 = vperm.xlu0 %8202, %v359_v50   ;;  %v7211_v47 = vunpack.c.h.bf16 %v7431_v38  ;;  %v502_v50 = vmax.f32 %v461_v34, 0.0 }
  0x4f   : > { %v420_v3 = vmul.f32 %v7211_v47, %v8646_v43 }
  0x51   : > { %602 = vperm.xlu1 %8203, %v362_v59   ;;  %597 = vperm.xlu0 %8202, %v361_v60   ;;  %v7215_v59 = vunpack.c.h.bf16 %v7432_v49  ;;  %v7214_v60 = vunpack.c.l.bf16 %v7432_v49  ;;  %v468_v20 = vadd.f32 %v8660_v51, %v420_v3  ;;  %v8221_v49 = vld [vmem:[%s9851_s4 + $0x70] sm:$0xff]  }
  0x53   : > { %v422_v15 = vmul.f32 %v7215_v59, %v8646_v43  ;;  %v421_v21 = vmul.f32 %v7214_v60, %v8646_v43  ;;  %v509_v34 = vmax.f32 %v468_v20, 0.0 }
  0x55   : > { %712 = vperm.xlu1 %8203, %v384_v2   ;;  %707 = vperm.xlu0 %8202, %v383_v5   ;;  %v465_v2 = vadd.f32 %v8660_v51, %v417_v46  ;;  %v7161_v5 = vld [vmem:[%s8638_s19] sm:$0xff]   ;;  %v470_v29 = vadd.f32 %v8660_v51, %v422_v15  ;;  %v469_v35 = vadd.f32 %v8660_v51, %v421_v21  ;;  %v8223_v21 = vld [vmem:[%s9851_s4 + $0x68] sm:$0xff]  }
  0x56   : > { %v7163_v16 = vunpack.c.h.bf16 %v7161_v5  ;;  %v7162_v22 = vunpack.c.l.bf16 %v7161_v5  ;;  %v7223_v5 = vunpack.c.h.bf16 %v7434_v48 }
  0x57   : > { %v506_v25 = vmax.f32 %v465_v2, 0.0  ;;  %v511_v46 = vmax.f32 %v470_v29, 0.0 }
  0x58   : > { %v396_v30 = vmul.f32 %v7163_v16, %v8646_v43  ;;  %v395_v36 = vmul.f32 %v7162_v22, %v8646_v43  ;;  %v7222_v16 = vunpack.c.l.bf16 %v7434_v48 }
  0x59   : > { %722 = vperm.xlu1 %8203, %v386_v10   ;;  %717 = vperm.xlu0 %8202, %v385_v12  }
  0x5a   : > { %v444_v47 = vadd.f32 %v8660_v51, %v396_v30  ;;  %v425_v30 = vmul.f32 %v7222_v16, %v8646_v43 }
  0x5c   : > { %v485_v4 = vmax.f32 %v444_v47, 0.0  ;;  %v473_v48 = vadd.f32 %v8660_v51, %v425_v30  ;;  %v8235_v30 = vld [vmem:[%s9851_s4 + $0x48] sm:$0xff]  }
  0x5d   : > { %727 = vperm.xlu0 %8202, %v387_v14  }
  0x88   : > { %v618_v42 = vpop.permute.xlu1 %617  ;;  %v608_v44 = vpop.permute.xlu0 %607 }
  0x89   : > { %v748_v6 = vmul.f32 %v618_v42, %v502_v50  ;;  %v746_v9 = vmul.f32 %v608_v44, %v500_v52  ;;  %v7166_v42 = vunpack.c.l.bf16 %v7420_v27  ;;  %v7433_v44 = vld [vmem:[%s8638_s19 + $0x70] sm:$0xff]  }
  0x8a   : > { %v7219_v59 = vunpack.c.h.bf16 %v7433_v44  ;;  %v7218_v2 = vunpack.c.l.bf16 %v7433_v44 }
  0x8b   : > { %v397_v1 = vmul.f32 %v7166_v42, %v8646_v43  ;;  %v7435_v42 = vld [vmem:[%s8638_s19 + $0x80] sm:$0xff]  }
  0x8c   : > { %v623_v61 = vpop.permute.xlu1 %622  ;;  %v613_v0 = vpop.permute.xlu0 %612  ;;  %v424_v15 = vmul.f32 %v7219_v59, %v8646_v43  ;;  %v423_v20 = vmul.f32 %v7218_v2, %v8646_v43 }
  0x8d   : > { %v749_v10 = vmul.f32 %v623_v61, %v503_v55  ;;  %v747_v11 = vmul.f32 %v613_v0, %v501_v56  ;;  %v510_v56 = vmax.f32 %v469_v35, 0.0 }
  0x8e   : > { %v472_v29 = vadd.f32 %v8660_v51, %v424_v15  ;;  %v8232_v15 = vld [vmem:[%s9851_s4 + $0x50] sm:$0xff]  }
  0x8f   : > { %v7288_v12 = vpack.c.bf16 %v749_v10, %v748_v6  ;;  %v7283_v14 = vpack.c.bf16 %v747_v11, %v746_v9  ;;  %v7421_v6 = vld [vmem:[%s8638_s19 + $0x10] sm:$0xff]  }
  0x90   : > { %v633_v17 = vpop.permute.xlu1 %632  ;;  %v628_v18 = vpop.permute.xlu0 %627  ;;  %v513_v47 = vmax.f32 %v472_v29, 0.0 }
  0x91   : > { %7447 = vst [vmem:[#allocation2 + $0x48] sm:$0xff] %v7288_v12   ;;  %7446 = vst [vmem:[#allocation2 + $0x40] sm:$0xff] %v7283_v14   ;;  %v751_v23 = vmul.f32 %v633_v17, %v505_v57  ;;  %v750_v24 = vmul.f32 %v628_v18, %v504_v58  ;;  %v443_v57 = vadd.f32 %v8660_v51, %v395_v36 }
  0x92   : > { %v398_v58 = vmul.f32 %v7167_v37, %v8646_v43  ;;  %v471_v36 = vadd.f32 %v8660_v51, %v423_v20  ;;  %v8226_v37 = vld [vmem:[%s9851_s4 + $0x60] sm:$0xff]  }
  0x93   : > { %v7293_v28 = vpack.c.bf16 %v751_v23, %v750_v24  ;;  %v484_v12 = vmax.f32 %v443_v57, 0.0  ;;  %v426_v23 = vmul.f32 %v7223_v5, %v8646_v43  ;;  %v7171_v24 = vunpack.c.h.bf16 %v7421_v6 }
  0x94   : > { %v643_v31 = vpop.permute.xlu1 %642  ;;  %v638_v32 = vpop.permute.xlu0 %637  ;;  %v446_v14 = vadd.f32 %v8660_v51, %v398_v58  ;;  %v8229_v58 = vld [vmem:[%s9851_s4 + $0x58] sm:$0xff]  }
  0x95   : > { %7448 = vst [vmem:[#allocation2 + $0x50] sm:$0xff] %v7293_v28   ;;  %v753_v38 = vmul.f32 %v643_v31, %v507_v19  ;;  %v752_v39 = vmul.f32 %v638_v32, %v506_v25  ;;  %v445_v19 = vadd.f32 %v8660_v51, %v397_v1  ;;  %v7422_v25 = vld [vmem:[%s8638_s19 + $0x18] sm:$0xff]   ;;  %v7170_v31 = vunpack.c.l.bf16 %v7421_v6 }
  0x96   : > { %v487_v27 = vmax.f32 %v446_v14, 0.0  ;;  %v7174_v57 = vunpack.c.l.bf16 %v7422_v25  ;;  %v7226_v14 = vunpack.c.l.bf16 %v7435_v42 }
  0x97   : > { %v7298_v45 = vpack.c.bf16 %v753_v38, %v752_v39  ;;  %v486_v35 = vmax.f32 %v445_v19, 0.0  ;;  %v474_v39 = vadd.f32 %v8660_v51, %v426_v23  ;;  %v7423_v19 = vld [vmem:[%s8638_s19 + $0x20] sm:$0xff]  }
  0x98   : > { %v653_v50 = vpop.permute.xlu1 %652  ;;  %v648_v52 = vpop.permute.xlu0 %647  ;;  %v8212_v55 = vld [vmem:[#allocation2 + $0x40] sm:$0xff]   ;;  %v8213_v0 = vld [vmem:[#allocation2 + $0x48] sm:$0xff]   ;;  %v427_v29 = vmul.f32 %v7226_v14, %v8646_v43 }
  0x99   : > { %7449 = vst [vmem:[#allocation2 + $0x58] sm:$0xff] %v7298_v45   ;;  %v755_v60 = vmul.f32 %v653_v50, %v509_v34  ;;  %v754_v61 = vmul.f32 %v648_v52, %v508_v41  ;;  %7739 = vmatprep.mubr.bf16.mxu1 %v8212_v55  ;;  %v400_v41 = vmul.f32 %v7171_v24, %v8646_v43  ;;  %v7175_v50 = vunpack.c.h.bf16 %v7422_v25 }
  0x9a   : > { %7740 = vmatmul.mubr.bf16.vlgmr.msra.gmra.mxu1 %v8213_v0  ;;  %v7436_v0 = vld [vmem:[%s8638_s19 + $0x88] sm:$0xff]  }
  0x9b   : > { %v7303_v3 = vpack.c.bf16 %v755_v60, %v754_v61  ;;  %7760 = vmatpush3.bf16.msra.mxu1 %v8600_v33  ;;  %v515_v60 = vmax.f32 %v474_v39, 0.0  ;;  %v448_v61 = vadd.f32 %v8660_v51, %v400_v41  ;;  %v402_v6 = vmul.f32 %v7175_v50, %v8646_v43  ;;  %v8240_v50 = vld [vmem:[%s9851_s4 + $0x40] sm:$0xff]  }
  0x9c   : > { %v663_v9 = vpop.permute.xlu1 %662  ;;  %v658_v10 = vpop.permute.xlu0 %657  ;;  %v8214_v11 = vld [vmem:[#allocation2 + $0x50] sm:$0xff]   ;;  %7761 = vmatprep.subr.bf16.mxu1 %v8221_v49  ;;  %v7231_v16 = vunpack.c.h.bf16 %v7436_v0 }
  0x9d   : > { %7450 = vst [vmem:[#allocation2 + $0x60] sm:$0xff] %v7303_v3   ;;  %v757_v17 = vmul.f32 %v663_v9, %v511_v46  ;;  %v756_v18 = vmul.f32 %v658_v10, %v510_v56  ;;  %7743 = vmatprep.mubr.bf16.mxu1 %v8214_v11  ;;  %v512_v56 = vmax.f32 %v471_v36, 0.0  ;;  %v514_v3 = vmax.f32 %v473_v48, 0.0  ;;  %v8230_v36 = vld [vmem:[%s9851_s4 + $0xb0] sm:$0xff]  }
  0x9e   : > { %v7227_v9 = vunpack.c.h.bf16 %v7435_v42  ;;  %v450_v24 = vadd.f32 %v8660_v51, %v402_v6 }
  0x9f   : > { %v7308_v22 = vpack.c.bf16 %v757_v17, %v756_v18  ;;  %7762 = vmatpush3.bf16.msra.mxu1 %v8221_v49  ;;  %v399_v49 = vmul.f32 %v7170_v31, %v8646_v43  ;;  %v489_v18 = vmax.f32 %v448_v61, 0.0  ;;  %v430_v31 = vmul.f32 %v7231_v16, %v8646_v43  ;;  %v8238_v16 = vld [vmem:[%s9851_s4 + $0xa0] sm:$0xff]  }
  0xa0   : > { %v533_v26 = vpop.permute.xlu1 %532  ;;  %v528_v33 = vpop.permute.xlu0 %527  ;;  %v8215_v28 = vld [vmem:[#allocation2 + $0x58] sm:$0xff]   ;;  %7763 = vmatprep.subr.bf16.mxu1 %v8223_v21  ;;  %v428_v25 = vmul.f32 %v7227_v9, %v8646_v43  ;;  %v491_v41 = vmax.f32 %v450_v24, 0.0 }
  0xa1   : > { %7451 = vst [vmem:[#allocation2 + $0x68] sm:$0xff] %v7308_v22   ;;  %v731_v32 = vmul.f32 %v533_v26, %v485_v4  ;;  %v730_v34 = vmul.f32 %v528_v33, %v484_v12  ;;  %v447_v5 = vadd.f32 %v8660_v51, %v399_v49  ;;  %v401_v12 = vmul.f32 %v7174_v57, %v8646_v43  ;;  %v8819_v9 = vld [vmem:[%s9851_s4 + $0xf8] sm:$0xff]  }
  0xa2   : > { %7744 = vmatmul.mubr.bf16.gmra.mxu1 %v8215_v28  ;;  %v7230_v26 = vunpack.c.l.bf16 %v7436_v0  ;;  %v476_v42 = vadd.f32 %v8660_v51, %v428_v25  ;;  %v475_v49 = vadd.f32 %v8660_v51, %v427_v29 }
  0xa3   : > { %v7243_v38 = vpack.c.bf16 %v731_v32, %v730_v34  ;;  %7764 = vmatpush3.bf16.msra.mxu1 %v8223_v21  ;;  %v488_v23 = vmax.f32 %v447_v5, 0.0  ;;  %v449_v28 = vadd.f32 %v8660_v51, %v401_v12  ;;  %v7179_v34 = vunpack.c.h.bf16 %v7423_v19 }
  0xa4   : > { %v543_v44 = vpop.permute.xlu1 %542  ;;  %v538_v45 = vpop.permute.xlu0 %537  ;;  %v8216_v46 = vld [vmem:[#allocation2 + $0x60] sm:$0xff]   ;;  %7765 = vmatprep.subr.bf16.mxu1 %v8226_v37  ;;  %v516_v6 = vmax.f32 %v475_v49, 0.0 }
  0xa5   : > { %7244 = vst [vmem:[#allocation2] sm:$0xff] %v7243_v38   ;;  %v733_v52 = vmul.f32 %v543_v44, %v487_v27  ;;  %v732_v55 = vmul.f32 %v538_v45, %v486_v35  ;;  %7747 = vmatprep.mubr.bf16.mxu1 %v8216_v46  ;;  %v7424_v35 = vld [vmem:[%s8638_s19 + $0x28] sm:$0xff]   ;;  %v429_v44 = vmul.f32 %v7230_v26, %v8646_v43  ;;  %v7178_v45 = vunpack.c.l.bf16 %v7423_v19 }
  0xa6   : > { %v490_v48 = vmax.f32 %v449_v28, 0.0  ;;  %v404_v57 = vmul.f32 %v7179_v34, %v8646_v43 }
  0xa7   : > { %v7248_v59 = vpack.c.bf16 %v733_v52, %v732_v55  ;;  %7766 = vmatpush3.bf16.msra.mxu1 %v8226_v37  ;;  %v478_v52 = vadd.f32 %v8660_v51, %v430_v31  ;;  %v7425_v55 = vld [vmem:[%s8638_s19 + $0x30] sm:$0xff]  }
  0xa8   : > { %v673_v1 = vpop.permute.xlu1 %672  ;;  %v668_v2 = vpop.permute.xlu0 %667  ;;  %v8217_v4 = vld [vmem:[#allocation2 + $0x68] sm:$0xff]   ;;  %7767 = vmatprep.subr.bf16.mxu1 %v8229_v58  ;;  %v452_v12 = vadd.f32 %v8660_v51, %v404_v57  ;;  %v7186_v25 = vunpack.c.l.bf16 %v7425_v55 }
  0xa9   : > { %7439 = vst [vmem:[#allocation2 + $0x8] sm:$0xff] %v7248_v59   ;;  %v759_v10 = vmul.f32 %v673_v1, %v513_v47  ;;  %v758_v11 = vmul.f32 %v668_v2, %v512_v56  ;;  %v8233_v59 = vld [vmem:[%s9851_s4 + $0xa8] sm:$0xff]   ;;  %v517_v1 = vmax.f32 %v476_v42, 0.0  ;;  %v477_v2 = vadd.f32 %v8660_v51, %v429_v44 }
  0xaa   : > { %7748 = vmatmul.mubr.bf16.gmra.mxu1 %v8217_v4 }
  0xab   : > { %v7313_v17 = vpack.c.bf16 %v759_v10, %v758_v11  ;;  %7768 = vmatpush3.bf16.msra.mxu1 %v8229_v58  ;;  %v7183_v58 = vunpack.c.h.bf16 %v7424_v35  ;;  %v519_v10 = vmax.f32 %v478_v52, 0.0 }
  0xac   : > { %v683_v20 = vpop.permute.xlu1 %682  ;;  %v678_v21 = vpop.permute.xlu0 %677  ;;  %v8218_v22 = vld [vmem:[#allocation2] sm:$0xff]   ;;  %7769 = vmatprep.subr.bf16.mxu1 %v8232_v15 }
  0xad   : > { %7452 = vst [vmem:[#allocation2 + $0x70] sm:$0xff] %v7313_v17   ;;  %v761_v33 = vmul.f32 %v683_v20, %v515_v60  ;;  %v760_v27 = vmul.f32 %v678_v21, %v514_v3  ;;  %7723 = vmatprep.mubr.bf16.mxu0 %v8218_v22  ;;  %v403_v3 = vmul.f32 %v7178_v45, %v8646_v43  ;;  %v518_v20 = vmax.f32 %v477_v2, 0.0  ;;  %v8236_v29 = vld [vmem:[#allocation2] sm:$0xff]  }
  0xae   : > { %v406_v14 = vmul.f32 %v7183_v58, %v8646_v43  ;;  %v8248_v58 = vld [vmem:[%s9851_s4 + $0x88] sm:$0xff]  }
  0xaf   : > { %v7318_v32 = vpack.c.bf16 %v761_v33, %v760_v27  ;;  %7770 = vmatpush3.bf16.msra.mxu1 %v8232_v15  ;;  %v7187_v15 = vunpack.c.h.bf16 %v7425_v55  ;;  %v451_v21 = vadd.f32 %v8660_v51, %v403_v3  ;;  %v493_v33 = vmax.f32 %v452_v12, 0.0  ;;  %v8254_v12 = vld [vmem:[%s9851_s4 + $0x80] sm:$0xff]  }
  0xb0   : > { %v553_v37 = vpop.permute.xlu1 %552  ;;  %v548_v38 = vpop.permute.xlu0 %547  ;;  %v8220_v39 = vld [vmem:[#allocation2 + $0x8] sm:$0xff]   ;;  %7771 = vmatprep.subr.bf16.mxu1 %v8235_v30  ;;  %v454_v27 = vadd.f32 %v8660_v51, %v406_v14 }
  0xb1   : > { %7453 = vst [vmem:[#allocation2 + $0x78] sm:$0xff] %v7318_v32   ;;  %v735_v46 = vmul.f32 %v553_v37, %v489_v18  ;;  %v734_v47 = vmul.f32 %v548_v38, %v488_v23  ;;  %7724 = vmatmul.mubr.bf16.vlgmr.msra.gmra.mxu0 %v8220_v39  ;;  %v408_v28 = vmul.f32 %v7187_v15, %v8646_v43 }
  0xb2   : > { %7812 = vmatpush3.bf16.msra.mxu0 %v8629_v40  ;;  %v7182_v40 = vunpack.c.l.bf16 %v7424_v35  ;;  %v492_v35 = vmax.f32 %v451_v21, 0.0  ;;  %v407_v39 = vmul.f32 %v7186_v25, %v8646_v43  ;;  %v495_v44 = vmax.f32 %v454_v27, 0.0 }
  0xb3   : > { %v7253_v56 = vpack.c.bf16 %v735_v46, %v734_v47  ;;  %7813 = vmatprep.subr.bf16.mxu0 %v8230_v36  ;;  %7772 = vmatpush3.bf16.msra.mxu1 %v8235_v30  ;;  %v8241_v30 = vld [vmem:[%s9851_s4 + $0x98] sm:$0xff]   ;;  %v456_v45 = vadd.f32 %v8660_v51, %v408_v28  ;;  %v8245_v46 = vld [vmem:[%s9851_s4 + $0x90] sm:$0xff]   ;;  %v499_v21 = vmax.f32 %v8664_v53, 0.0  ;;  %v520_v25 = vmax.f32 %v8682_v63, 0.0 }
  0xb4   : > { %v563_v60 = vpop.permute.xlu1 %562  ;;  %v558_v61 = vpop.permute.xlu0 %557  ;;  %v8222_v0 = vld [vmem:[#allocation2 + $0x70] sm:$0xff]   ;;  %7773 = vmatprep.subr.bf16.mxu1 %v8240_v50  ;;  %v405_v24 = vmul.f32 %v7182_v40, %v8646_v43  ;;  %v523_v27 = vmax.f32 %v8694_v7, 0.0  ;;  %v8865_v53 = vld [vmem:[%s9851_s4 + $0x138] sm:$0xff]  }
  0xb5   : > { %7440 = vst [vmem:[#allocation2 + $0x10] sm:$0xff] %v7253_v56   ;;  %v737_v4 = vmul.f32 %v563_v60, %v491_v41  ;;  %v736_v5 = vmul.f32 %v558_v61, %v490_v48  ;;  %7751 = vmatprep.mubr.bf16.mxu1 %v8222_v0  ;;  %v8836_v41 = vld [vmem:[#allocation2 + $0x8] sm:$0xff]   ;;  %v455_v56 = vadd.f32 %v8660_v51, %v407_v39  ;;  %v497_v60 = vmax.f32 %v456_v45, 0.0 }
  0xb6   : > { %7814 = vmatpush3.bf16.msra.mxu0 %v8230_v36  ;;  %v453_v38 = vadd.f32 %v8660_v51, %v405_v24  ;;  %v1554_v57 = vshll.u32 %v8836_v41, 16  ;;  %v521_v24 = vmax.f32 %v8679_v62, 0.0  ;;  %v8873_v39 = vld [vmem:[#allocation2 + $0x8] sm:$0xff]  }
  0xb7   : > { %v7258_v11 = vpack.c.bf16 %v737_v4, %v736_v5  ;;  %7815 = vmatprep.subr.bf16.mxu0 %v8233_v59  ;;  %7774 = vmatpush3.bf16.msra.mxu1 %v8240_v50  ;;  %v1549_v50 = vshll.u32 %v8236_v29, 16  ;;  %v496_v5 = vmax.f32 %v455_v56, 0.0 }
  0xb8   : > { %v693_v17 = vpop.permute.xlu1 %692  ;;  %v688_v18 = vpop.permute.xlu0 %687  ;;  %v8224_v19 = vld [vmem:[#allocation2 + $0x78] sm:$0xff]   ;;  %7863 = vmatprep.subr.bf16.mxu1 %v8819_v9  ;;  %v494_v55 = vmax.f32 %v453_v38, 0.0  ;;  %v1556_v40 = vrot.slane %v1554_v57, 1  ;;  %v522_v38 = vmax.f32 %v8697_v8, 0.0 }
  0xb9   : > { %7441 = vst [vmem:[#allocation2 + $0x18] sm:$0xff] %v7258_v11   ;;  %v763_v22 = vmul.f32 %v693_v17, %v517_v1  ;;  %v762_v23 = vmul.f32 %v688_v18, %v516_v6  ;;  %7752 = vmatmul.mubr.bf16.gmra.mxu1 %v8224_v19  ;;  %v1551_v3 = vrot.slane %v1549_v50, 1  ;;  %v1547_v6 = vshrl.u32 %v8236_v29, 16 }
  0xba   : > { %7816 = vmatpush3.bf16.msra.mxu0 %v8233_v59  ;;  %v524_v50 = vmax.f32 %v8707_v13, 0.0 }
  0xbb   : > { %v7323_v26 = vpack.c.bf16 %v763_v22, %v762_v23  ;;  %7817 = vmatprep.subr.bf16.mxu0 %v8238_v16  ;;  %v1552_v17 = vor.u32 %v1551_v3, %v1547_v6  ;;  %v498_v22 = vmax.f32 %v8667_v54, 0.0 }
  0xbc   : > { %v703_v31 = vpop.permute.xlu1 %702  ;;  %v698_v32 = vpop.permute.xlu0 %697  ;;  %v8225_v34 = vld [vmem:[#allocation2 + $0x10] sm:$0xff]  }
  0xbd   : > { %7454 = vst [vmem:[#allocation2 + $0x80] sm:$0xff] %v7323_v26   ;;  %v765_v36 = vmul.f32 %v703_v31, %v519_v10  ;;  %v764_v37 = vmul.f32 %v698_v32, %v518_v20  ;;  %7727 = vmatprep.mubr.bf16.mxu0 %v8225_v34  ;;  %v8847_v61 = vld [vmem:[#allocation2 + $0x10] sm:$0xff]   ;;  %v1557_v23 = vsel %vm1545_vm0, %v1552_v17, %v1556_v40  ;;  %v1558_v31 = vshrl.u32 %v8836_v41, 16 }
  0xbe   : > { %7818 = vmatpush3.bf16.msra.mxu0 %v8238_v16  ;;  %v1562_v18 = vshll.u32 %v8847_v61, 16  ;;  %v1566_v7 = vshrl.u32 %v8847_v61, 16 }
  0xbf   : > { %v7328_v42 = vpack.c.bf16 %v765_v36, %v764_v37  ;;  %7819 = vmatprep.subr.bf16.mxu0 %v8241_v30  ;;  %v1560_v37 = vor.u32 %v1558_v31, %v1556_v40  ;;  %v8258_v40 = vld [vmem:[#allocation2 + $0x10] sm:$0xff]  }
  0xc0   : > { %v573_v47 = vpop.permute.xlu1 %572  ;;  %v568_v48 = vpop.permute.xlu0 %567  ;;  %v8228_v49 = vld [vmem:[#allocation2 + $0x18] sm:$0xff]   ;;  %v8264_v31 = vld [vmem:[%s9851_s4 + $0x130] sm:$0xff]  }
  0xc1   : > { %7455 = vst [vmem:[#allocation2 + $0x88] sm:$0xff] %v7328_v42   ;;  %v739_v52 = vmul.f32 %v573_v47, %v493_v33  ;;  %v738_v43 = vmul.f32 %v568_v48, %v492_v35  ;;  %7728 = vmatmul.mubr.bf16.gmra.mxu0 %v8228_v49  ;;  %v8849_v10 = vld [vmem:[#allocation2 + $0x18] sm:$0xff]   ;;  %v8255_v35 = vld [vmem:[%s9851_s4 + $0xf0] sm:$0xff]  }
  0xc2   : > { %7820 = vmatpush3.bf16.msra.mxu0 %v8241_v30  ;;  %v1570_v26 = vshll.u32 %v8849_v10, 16  ;;  %v1564_v30 = vrot.slane %v1562_v18, 1 }
  0xc3   : > { %v7263_v59 = vpack.c.bf16 %v739_v52, %v738_v43  ;;  %7821 = vmatprep.subr.bf16.mxu0 %v8245_v46  ;;  %v8252_v43 = vld [vmem:[#allocation2] sm:$0xfe]  }
  0xc4   : > { %v583_v0 = vpop.permute.xlu1 %582  ;;  %v578_v1 = vpop.permute.xlu0 %577  ;;  %v8231_v2 = vld [vmem:[#allocation2 + $0x80] sm:$0xff]   ;;  %v1572_v34 = vrot.slane %v1570_v26, 1  ;;  %v1568_v41 = vor.u32 %v1566_v7, %v1564_v30  ;;  %v1565_v49 = vsel %vm1545_vm0, %v1560_v37, %v1564_v30 }
  0xc5   : > { %7442 = vst [vmem:[#allocation2 + $0x20] sm:$0xff] %v7263_v59   ;;  %v741_v4 = vmul.f32 %v583_v0, %v495_v44  ;;  %v740_v51 = vmul.f32 %v578_v1, %v494_v55  ;;  %7755 = vmatprep.mubr.bf16.mxu1 %v8231_v2  ;;  %v8261_v55 = vld [vmem:[%s9851_s4 + $0xe8] sm:$0xff]   ;;  %v1574_v2 = vshrl.u32 %v8849_v10, 16 }
  0xc6   : > { %7822 = vmatpush3.bf16.msra.mxu0 %v8245_v46  ;;  %v1573_v8 = vsel %vm1545_vm0, %v1568_v41, %v1572_v34  ;;  %v8272_v41 = vld [vmem:[%s9851_s4 + $0x128] sm:$0xff]  }
  0xc7   : > { %v7268_v11 = vpack.c.bf16 %v741_v4, %v740_v51  ;;  %7823 = vmatprep.subr.bf16.mxu0 %v8248_v58  ;;  %v1576_v6 = vor.u32 %v1574_v2, %v1572_v34  ;;  %v8273_v2 = vld [vmem:[#allocation2 + $0x60] sm:$0xff]  }
  0xc8   : > { %v593_v14 = vpop.permute.xlu1 %592  ;;  %v588_v15 = vpop.permute.xlu0 %587  ;;  %v8234_v16 = vld [vmem:[#allocation2 + $0x88] sm:$0xff]  }
  0xc9   : > { %7443 = vst [vmem:[#allocation2 + $0x28] sm:$0xff] %v7268_v11   ;;  %v743_v19 = vmul.f32 %v593_v14, %v497_v60  ;;  %v742_v20 = vmul.f32 %v588_v15, %v496_v5  ;;  %7756 = vmatmul.mubr.bf16.gmra.mxu1 %v8234_v16  ;;  %v8269_v11 = vld [vmem:[%s9851_s4 + $0xe0] sm:$0xff]  }
  0xca   : > { %7775 = vmatprep.mubr.bf16.mxu1 %v1557_v23  ;;  %7824 = vmatpush3.bf16.msra.mxu0 %v8248_v58  ;;  %v2194_v58 = vrot.slane %v8873_v39, 1  ;;  %v8283_v39 = vld [vmem:[%s9851_s4 + $0xd0] sm:$0xff]  }
  0xcb   : > { %v7273_v33 = vpack.c.bf16 %v743_v19, %v742_v20  ;;  %7825 = vmatprep.subr.bf16.mxu0 %v8254_v12 }
  0xcc   : > { %v603_v54 = vpop.permute.xlu1 %602  ;;  %v598_v28 = vpop.permute.xlu0 %597  ;;  %v8239_v29 = vld [vmem:[#allocation2 + $0x20] sm:$0xff]  }
  0xcd   : > { %7444 = vst [vmem:[#allocation2 + $0x30] sm:$0xff] %v7273_v33   ;;  %v745_v62 = vmul.f32 %v603_v54, %v499_v21  ;;  %v744_v63 = vmul.f32 %v598_v28, %v498_v22  ;;  %v8250_v32 = vld [vmem:[#allocation2 + $0x20] sm:$0xff]   ;;  %7731 = vmatprep.mubr.bf16.mxu0 %v8239_v29  ;;  %v2196_v33 = vrot.slane %v8258_v40, 1 }
  0xce   : > { %7826 = vmatpush3.bf16.msra.mxu0 %v8254_v12  ;;  %v1578_v46 = vshll.u32 %v8250_v32, 16  ;;  %v1582_v4 = vshrl.u32 %v8250_v32, 16  ;;  %v8262_v21 = vld [vmem:[#allocation2 + $0x40] sm:$0xff]   ;;  %v8897_v32 = vld [vmem:[#allocation2 + $0x48] sm:$0xff]  }
  0xcf   : > { %v7278_v36 = vpack.c.bf16 %v745_v62, %v744_v63  ;;  %7915 = vmatprep.subr.bf16.mxu0 %v8865_v53  ;;  %v1610_v29 = vshll.u32 %v8262_v21, 16  ;;  %v2197_v34 = vsel %vm2192_vm1, %v2194_v58, %v2196_v33 }
  0xd0   : > { %v713_v42 = vpop.permute.xlu1 %712  ;;  %v708_v44 = vpop.permute.xlu0 %707  ;;  %v8242_v45 = vld [vmem:[#allocation2 + $0x28] sm:$0xff]   ;;  %v1580_v61 = vrot.slane %v1578_v46, 1  ;;  %v1618_v46 = vshll.u32 %v8897_v32, 16 }
  0xd1   : > { %7445 = vst [vmem:[#allocation2 + $0x38] sm:$0xff] %v7278_v36   ;;  %v767_v47 = vmul.f32 %v713_v42, %v521_v24  ;;  %v766_v48 = vmul.f32 %v708_v44, %v520_v25  ;;  %v8251_v52 = vld [vmem:[#allocation2 + $0x28] sm:$0xff]   ;;  %7732 = vmatmul.mubr.bf16.gmra.mxu0 %v8242_v45  ;;  %7776 = vmatmul.mubr.bf16.vlgmr.msra.gmra.mxu1 %v1565_v49  ;;  %v8260_v24 = vld [vmem:[#allocation2 + $0x18] sm:$0xff]   ;;  %v1612_v37 = vrot.slane %v1610_v29, 1  ;;  %v1614_v45 = vshrl.u32 %v8262_v21, 16 }
  0xd2   : > { %7779 = vmatprep.mubr.bf16.mxu1 %v1573_v8  ;;  %7864 = vmatpush3.bf16.msra.mxu1 %v8819_v9  ;;  %v1586_v57 = vshll.u32 %v8251_v52, 16  ;;  %v2193_v9 = vrot.slane %v8252_v43, 1  ;;  %v1584_v15 = vor.u32 %v1582_v4, %v1580_v61  ;;  %v1581_v17 = vsel %vm1545_vm0, %v1576_v6, %v1580_v61  ;;  %v8278_v8 = vld [vmem:[%s9851_s4 + $0x120] sm:$0xff]   ;;  %v8289_v43 = vld [vmem:[%s9851_s4 + $0xc8] sm:$0xff]  }
  0xd3   : > { %v7333_v56 = vpack.c.bf16 %v767_v47, %v766_v48  ;;  %7865 = vmatprep.subr.bf16.mxu1 %v8255_v35  ;;  %v1590_v26 = vshrl.u32 %v8251_v52, 16  ;;  %v2198_v62 = vrot.slane %v8260_v24, 1  ;;  %v8267_v47 = vld [vmem:[#allocation2 + $0x50] sm:$0xff]  }
  0xd4   : > { %v723_v59 = vpop.permute.xlu1 %722  ;;  %v718_v60 = vpop.permute.xlu0 %717  ;;  %v8246_v13 = vld [vmem:[#allocation2 + $0x30] sm:$0xff]   ;;  %v1588_v51 = vrot.slane %v1586_v57, 1  ;;  %v2195_v20 = vsel %vm2192_vm1, %v2193_v9, %v2194_v58 }
  0xd5   : > { %7456 = vst [vmem:[#allocation2 + $0x90] sm:$0xff] %v7333_v56   ;;  %v769_v0 = vmul.f32 %v723_v59, %v523_v27  ;;  %v768_v1 = vmul.f32 %v718_v60, %v522_v38  ;;  %v8257_v3 = vld [vmem:[#allocation2 + $0x30] sm:$0xff]   ;;  %7735 = vmatprep.mubr.bf16.mxu0 %v8246_v13  ;;  %v8277_v27 = vld [vmem:[%s9851_s4 + $0xd8] sm:$0xff]   ;;  %v8266_v38 = vld [vmem:[#allocation2 + $0x28] sm:$0xff]   ;;  %v2199_v42 = vsel %vm2192_vm1, %v2196_v33, %v2198_v62  ;;  %v1626_v56 = vshll.u32 %v8267_v47, 16 }
  0xd6   : > { %7866 = vmatpush3.bf16.msra.mxu1 %v8255_v35  ;;  %v1594_v16 = vshll.u32 %v8257_v3, 16  ;;  %v1589_v19 = vsel %vm1545_vm0, %v1584_v15, %v1588_v51  ;;  %v1598_v54 = vshrl.u32 %v8257_v3, 16  ;;  %v1592_v30 = vor.u32 %v1590_v26, %v1588_v51  ;;  %v8263_v35 = vld [vmem:[#allocation2 + $0x20] sm:$0xff]   ;;  %v8268_v59 = vld [vmem:[#allocation2 + $0x30] sm:$0xff]   ;;  %v8934_v15 = vld [vmem:[%s9851_s4 + $0x178] sm:$0xff]  }
  0xd7   : > { %v7338_v5 = vpack.c.bf16 %v769_v0, %v768_v1  ;;  %7867 = vmatprep.subr.bf16.mxu1 %v8261_v55  ;;  %v2200_v49 = vrot.slane %v8263_v35, 1  ;;  %v2202_v52 = vrot.slane %v8266_v38, 1  ;;  %v8296_v13 = vld [vmem:[%s9851_s4 + $0xc0] sm:$0xff]   ;;  %v1622_v3 = vshrl.u32 %v8897_v32, 16  ;;  %v8297_v26 = vld [vmem:[%s9851_s4 + $0x108] sm:$0xff]   ;;  %v8280_v32 = vld [vmem:[#allocation2 + $0x50] sm:$0xff]  }
  0xd8   : > { %v728_v12 = vpop.permute.xlu0 %727  ;;  %v8249_v14 = vld [vmem:[#allocation2 + $0x38] sm:$0xff]   ;;  %v1596_v25 = vrot.slane %v1594_v16, 1  ;;  %v1628_v4 = vrot.slane %v1626_v56, 1  ;;  %v1630_v51 = vshrl.u32 %v8267_v47, 16  ;;  %v2204_v6 = vrot.slane %v8268_v59, 1  ;;  %v8303_v35 = vld [vmem:[%s9851_s4 + $0x100] sm:$0xff]  }
  0xd9   : > { %7457 = vst [vmem:[#allocation2 + $0x98] sm:$0xff] %v7338_v5   ;;  %v770_v10 = vmul.f32 %v728_v12, %v524_v50  ;;  %v8259_v18 = vld [vmem:[#allocation2 + $0x38] sm:$0xff]   ;;  %7736 = vmatmul.mubr.bf16.gmra.mxu0 %v8249_v14  ;;  %7780 = vmatmul.mubr.bf16.gmra.mxu1 %v1581_v17  ;;  %v2201_v58 = vsel %vm2192_vm1, %v2198_v62, %v2200_v49  ;;  %v1642_v14 = vshll.u32 %v8273_v2, 16  ;;  %v8286_v56 = vld [vmem:[#allocation2 + $0x60] sm:$0xff]  }
  0xda   : > { %7783 = vmatprep.mubr.bf16.mxu1 %v1589_v19  ;;  %7827 = vmatprep.mubr.bf16.mxu0 %v2195_v20  ;;  %v1602_v23 = vshll.u32 %v8259_v18, 16  ;;  %v1600_v63 = vor.u32 %v1598_v54, %v1596_v25  ;;  %v1597_v7 = vsel %vm1545_vm0, %v1592_v30, %v1596_v25  ;;  %v1606_v44 = vshrl.u32 %v8259_v18, 16  ;;  %v8911_v50 = vld [vmem:[#allocation2 + $0x58] sm:$0xff]   ;;  %v8274_v18 = vld [vmem:[#allocation2 + $0x40] sm:$0xff]   ;;  %v8290_v19 = vld [vmem:[%s9851_s4 + $0x110] sm:$0xff]  }
  0xdb   : > { %v7127_v22 = vpack.c.bf16 %v770_v10, %v770_v10  ;;  %7868 = vmatpush3.bf16.msra.mxu1 %v8261_v55  ;;  %v1620_v55 = vrot.slane %v1618_v46, 1  ;;  %v1634_v60 = vshll.u32 %v8911_v50, 16  ;;  %v2203_v0 = vsel %vm2192_vm1, %v2200_v49, %v2202_v52  ;;  %v8271_v1 = vld [vmem:[#allocation2 + $0x38] sm:$0xff]   ;;  %v8279_v25 = vld [vmem:[#allocation2 + $0x70] sm:$0xff]  }
  0xdc   : > { %7869 = vmatprep.subr.bf16.mxu1 %v8269_v11  ;;  %v1604_v28 = vrot.slane %v1602_v23, 1  ;;  %v8284_v5 = vld [vmem:[%s9851_s4 + $0x118] sm:$0xff]   ;;  %v2206_v40 = vrot.slane %v8271_v1, 1  ;;  %v1632_v16 = vor.u32 %v1630_v51, %v1628_v4  ;;  %v2205_v17 = vsel %vm2192_vm1, %v2202_v52, %v2204_v6  ;;  %v8276_v23 = vld [vmem:[#allocation2 + $0x48] sm:$0xff]  }
  0xdd   : > { %976 = vst [vmem:[#allocation2 + $0xa0] sm:$0xf] %v7127_v22  ;;  %v1636_v9 = vrot.slane %v1634_v60, 1  ;;  %v1624_v12 = vor.u32 %v1622_v3, %v1620_v55  ;;  %v1644_v24 = vrot.slane %v1642_v14, 1  ;;  %v1638_v33 = vshrl.u32 %v8911_v50, 16  ;;  %v8281_v30 = vld [vmem:[#allocation2 + $0x78] sm:$0xff]  }
  0xde   : > { %v1605_v36 = vsel %vm1545_vm0, %v1600_v63, %v1604_v28  ;;  %v1608_v48 = vor.u32 %v1606_v44, %v1604_v28  ;;  %v2207_v21 = vsel %vm2192_vm1, %v2204_v6, %v2206_v40  ;;  %v1646_v54 = vshrl.u32 %v8273_v2, 16  ;;  %v8285_v44 = vld [vmem:[#allocation2 + $0x80] sm:$0xff]   ;;  %v8958_v46 = vld [vmem:[%s9851_s4 + $0x1b8] sm:$0xff]   ;;  %v8287_v50 = vld [vmem:[#allocation2 + $0x88] sm:$0xff]  }
  0xdf   : > { %7870 = vmatpush3.bf16.msra.mxu1 %v8269_v11  ;;  %v8275_v11 = vld [vmem:[#allocation2 + $0x68] sm:$0xff]   ;;  %v1629_v10 = vsel %vm1545_vm0, %v1624_v12, %v1628_v4  ;;  %v1637_v20 = vsel %vm1545_vm0, %v1632_v16, %v1636_v9  ;;  %v2210_v29 = vrot.slane %v8276_v23, 1  ;;  %v1640_v62 = vor.u32 %v1638_v33, %v1636_v9  ;;  %v8293_v16 = vld [vmem:[#allocation2 + $0x78] sm:$0xff]  }
  0xe0   : > { %7871 = vmatprep.subr.bf16.mxu1 %v8277_v27  ;;  %v1613_v57 = vsel %vm1545_vm0, %v1608_v48, %v1612_v37  ;;  %v1650_v22 = vshll.u32 %v8275_v11, 16  ;;  %v1648_v63 = vor.u32 %v1646_v54, %v1644_v24  ;;  %v1666_v38 = vshll.u32 %v8281_v30, 16  ;;  %v8288_v60 = vld [vmem:[#allocation2 + $0x68] sm:$0xff]   ;;  %v8299_v33 = vld [vmem:[#allocation2 + $0x18] sm:$0xff]  }
  0xe1   : > { %7784 = vmatmul.mubr.bf16.gmra.mxu1 %v1597_v7  ;;  %7828 = vmatmul.mubr.bf16.vlgmr.msra.gmra.mxu0 %v2197_v34  ;;  %v1645_v7 = vsel %vm1545_vm0, %v1640_v62, %v1644_v24  ;;  %v1662_v47 = vshrl.u32 %v8279_v25, 16  ;;  %v1682_v59 = vshll.u32 %v8287_v50, 16  ;;  %v2216_v1 = vrot.slane %v8286_v56, 1  ;;  %v8298_v24 = vld [vmem:[#allocation2 + $0x80] sm:$0xff]   ;;  %v8315_v56 = vld [vmem:[%s9851_s4 + $0x168] sm:$0xff]  }
  0xe2   : > { %7916 = vmatpush3.bf16.msra.mxu0 %v8865_v53  ;;  %7787 = vmatprep.mubr.bf16.mxu1 %v1605_v36  ;;  %v1616_v53 = vor.u32 %v1614_v45, %v1612_v37  ;;  %v1652_v28 = vrot.slane %v1650_v22, 1  ;;  %v1654_v45 = vshrl.u32 %v8275_v11, 16  ;;  %v1668_v48 = vrot.slane %v1666_v38, 1  ;;  %v8292_v11 = vld [vmem:[#allocation2 + $0x70] sm:$0xff]  }
  0xe3   : > { %7831 = vmatprep.mubr.bf16.mxu0 %v2199_v42  ;;  %7917 = vmatprep.subr.bf16.mxu0 %v8264_v31  ;;  %v1678_v2 = vshrl.u32 %v8285_v44, 16  ;;  %v1684_v3 = vrot.slane %v1682_v59, 1  ;;  %v2218_v4 = vrot.slane %v8288_v60, 1  ;;  %v8304_v38 = vld [vmem:[#allocation2 + $0x90] ss:$0 sps:$4 sm:$0x11]  }
  0xe4   : > { %7872 = vmatpush3.bf16.msra.mxu1 %v8277_v27  ;;  %v1621_v61 = vsel %vm1545_vm0, %v1616_v53, %v1620_v55  ;;  %v2208_v27 = vrot.slane %v8274_v18, 1  ;;  %v1653_v36 = vsel %vm1545_vm0, %v1648_v63, %v1652_v28  ;;  %v1656_v53 = vor.u32 %v1654_v45, %v1652_v28  ;;  %v8308_v63 = vld [vmem:[#allocation2 + $0x10] sm:$0xff]  }
  0xe5   : > { %7873 = vmatprep.subr.bf16.mxu1 %v8283_v39  ;;  %v2219_v14 = vsel %vm2192_vm1, %v2216_v1, %v2218_v4  ;;  %v1686_v18 = vshrl.u32 %v8287_v50, 16  ;;  %v2228_v60 = vrot.slane %v8304_v38, 1 }
  0xe6   : > { %7918 = vmatpush3.bf16.msra.mxu0 %v8264_v31  ;;  %v1658_v31 = vshll.u32 %v8279_v25, 16  ;;  %v2209_v34 = vsel %vm2192_vm1, %v2206_v40, %v2208_v27  ;;  %v2211_v37 = vsel %vm2192_vm1, %v2208_v27, %v2210_v29  ;;  %v8307_v25 = vld [vmem:[#allocation2 + $0x8] sm:$0xfe]  }
  0xe7   : > { %7919 = vmatprep.subr.bf16.mxu0 %v8272_v41  ;;  %v1688_v23 = vor.u32 %v1686_v18, %v1684_v3  ;;  %v8300_v27 = vld [vmem:[#allocation2 + $0x88] sm:$0xff]   ;;  %v3268_v45 = vshll.u32 %v8307_v25, 16 }
  0xe8   : > { %7874 = vmatpush3.bf16.msra.mxu1 %v8283_v39  ;;  %v8282_v39 = vld [vmem:[#allocation2 + $0x58] sm:$0xff]   ;;  %v1660_v42 = vrot.slane %v1658_v31, 1  ;;  %v2224_v31 = vrot.slane %v8298_v24, 1 }
  0xe9   : > { %7788 = vmatmul.mubr.bf16.gmra.mxu1 %v1613_v57  ;;  %7832 = vmatmul.mubr.bf16.gmra.mxu0 %v2201_v58  ;;  %v2214_v49 = vrot.slane %v8282_v39, 1  ;;  %v8305_v39 = vld [vmem:[#allocation2 + $0x28] sm:$0xff]  }
  0xea   : > { %7791 = vmatprep.mubr.bf16.mxu1 %v1621_v61  ;;  %7835 = vmatprep.mubr.bf16.mxu0 %v2203_v0  ;;  %v1664_v52 = vor.u32 %v1662_v47, %v1660_v42  ;;  %v8291_v61 = vld [vmem:[#allocation2 + $0x90] ss:$0 sps:$4 sm:$0x11]   ;;  %v1670_v0 = vshrl.u32 %v8281_v30, 16 }
  0xeb   : > { %7920 = vmatpush3.bf16.msra.mxu0 %v8272_v41  ;;  %7875 = vmatprep.subr.bf16.mxu1 %v8289_v43  ;;  %v2212_v41 = vrot.slane %v8280_v32, 1  ;;  %v2217_v9 = vsel %vm2192_vm1, %v2214_v49, %v2216_v1  ;;  %v1690_v40 = vshll.u32 %v8291_v61, 16  ;;  %v2731_v32 = vrot.slane %v8299_v33, 1  ;;  %v8318_v33 = vld [vmem:[%s9851_s4 + $0x1b0] sm:$0xff]  }
  0xec   : > { %7921 = vmatprep.subr.bf16.mxu0 %v8278_v8  ;;  %7876 = vmatpush3.bf16.msra.mxu1 %v8289_v43  ;;  %v1661_v43 = vsel %vm1545_vm0, %v1656_v53, %v1660_v42  ;;  %v1669_v57 = vsel %vm1545_vm0, %v1664_v52, %v1668_v48  ;;  %v1672_v51 = vor.u32 %v1670_v0, %v1668_v48  ;;  %v8309_v42 = vld [vmem:[%s9851_s4 + $0x170] sm:$0xff]  }
  0xed   : > { %7877 = vmatprep.subr.bf16.mxu1 %v8296_v13  ;;  %v2213_v55 = vsel %vm2192_vm1, %v2210_v29, %v2212_v41  ;;  %v2215_v58 = vsel %vm2192_vm1, %v2212_v41, %v2214_v49  ;;  %v8301_v29 = vld [vmem:[#allocation2 + $0x20] sm:$0xff]   ;;  %v8312_v41 = vld [vmem:[#allocation2 + $0x18] sm:$0xff]  }
  0xee   : > { %v8314_v49 = vld [vmem:[#allocation2 + $0x20] sm:$0xff]   ;;  %v3282_v59 = vshrl.u32 %v8312_v41, 16 }
  0xef   : > { %7922 = vmatpush3.bf16.msra.mxu0 %v8278_v8  ;;  %v1674_v8 = vshll.u32 %v8285_v44, 16  ;;  %v8976_v44 = vld [vmem:[#allocation2 + $0x30] sm:$0xff]   ;;  %v3291_v1 = vshrl.u32 %v8314_v49, 16 }
  0xf0   : > { %7923 = vmatprep.subr.bf16.mxu0 %v8284_v5  ;;  %7878 = vmatpush3.bf16.msra.mxu1 %v8296_v13  ;;  %v2737_v61 = vrot.slane %v8976_v44, 1 }
  0xf1   : > { %7792 = vmatmul.mubr.bf16.gmra.mxu1 %v1629_v10  ;;  %7836 = vmatmul.mubr.bf16.gmra.mxu0 %v2205_v17  ;;  %v1676_v13 = vrot.slane %v1674_v8, 1  ;;  %v8295_v10 = vld [vmem:[#allocation2 + $0x10] sm:$0xff]   ;;  %v8294_v17 = vld [vmem:[#allocation2 + $0x8] sm:$0xfe]  }
  0xf2   : > { %7795 = vmatprep.mubr.bf16.mxu1 %v1637_v20  ;;  %7839 = vmatprep.mubr.bf16.mxu0 %v2207_v21  ;;  %v2220_v20 = vrot.slane %v8292_v11, 1  ;;  %v2222_v21 = vrot.slane %v8293_v16, 1  ;;  %v2729_v22 = vrot.slane %v8295_v10, 1  ;;  %v8313_v16 = vld [vmem:[#allocation2 + $0x40] sm:$0xff]   ;;  %v3293_v10 = vrot.slane %v3291_v1, 1 }
  0xf3   : > { %7924 = vmatpush3.bf16.msra.mxu0 %v8284_v5  ;;  %7967 = vmatprep.subr.bf16.mxu1 %v8934_v15  ;;  %v1680_v5 = vor.u32 %v1678_v2, %v1676_v13  ;;  %v1677_v6 = vsel %vm1545_vm0, %v1672_v51, %v1676_v13  ;;  %v3285_v13 = vshll.u32 %v8312_v41, 16  ;;  %v3294_v2 = vshll.u32 %v8314_v49, 16  ;;  %v8343_v49 = vld [vmem:[%s9851_s4 + $0x148] sm:$0xff]  }
  0xf4   : > { %7925 = vmatprep.subr.bf16.mxu0 %v8290_v19  ;;  %v2221_v28 = vsel %vm2192_vm1, %v2218_v4, %v2220_v20  ;;  %v2223_v30 = vsel %vm2192_vm1, %v2220_v20, %v2222_v21  ;;  %v2225_v47 = vsel %vm2192_vm1, %v2222_v21, %v2224_v31  ;;  %v2732_v48 = vsel %vm2192_vm1, %v2729_v22, %v2731_v32 }
  0xf5   : > { %v1685_v12 = vsel %vm1545_vm0, %v1680_v5, %v1684_v3  ;;  %v8317_v3 = vld [vmem:[#allocation2 + $0x28] sm:$0xff]   ;;  %v3284_v51 = vrot.slane %v3282_v59, 1  ;;  %v8320_v5 = vld [vmem:[#allocation2 + $0x30] sm:$0xff]   ;;  %v2741_v24 = vrot.slane %v8313_v16, 1  ;;  %v8350_v59 = vld [vmem:[%s9851_s4 + $0x140] sm:$0xff]  }
  0xf6   : > { %v3300_v18 = vshrl.u32 %v8317_v3, 16  ;;  %v3309_v21 = vshrl.u32 %v8320_v5, 16 }
  0xf7   : > { %7926 = vmatpush3.bf16.msra.mxu0 %v8290_v19  ;;  %v1692_v19 = vrot.slane %v1690_v40, 1  ;;  %v8323_v40 = vld [vmem:[%s9851_s4 + $0x160] sm:$0xff]  }
  0xf8   : > { %7927 = vmatprep.subr.bf16.mxu0 %v8297_v26 }
  0xf9   : > { %7796 = vmatmul.mubr.bf16.gmra.mxu1 %v1645_v7  ;;  %7840 = vmatmul.mubr.bf16.gmra.mxu0 %v2209_v34  ;;  %v1693_v54 = vsel %vm1545_vm0, %v1688_v23, %v1692_v19  ;;  %v2226_v7 = vrot.slane %v8300_v27, 1  ;;  %v2733_v34 = vrot.slane %v8301_v29, 1  ;;  %v3303_v19 = vshll.u32 %v8317_v3, 16 }
  0xfa   : > { %7799 = vmatprep.mubr.bf16.mxu1 %v1653_v36  ;;  %7843 = vmatprep.mubr.bf16.mxu0 %v2211_v37  ;;  %v3273_v36 = vshrl.u32 %v8308_v63, 16  ;;  %v3276_v37 = vshll.u32 %v8308_v63, 16  ;;  %v3312_v23 = vshll.u32 %v8320_v5, 16  ;;  %v3302_v27 = vrot.slane %v3300_v18, 1  ;;  %v8344_v18 = vld [vmem:[%s9851_s4 + $0x190] sm:$0xff]  }
  0xfb   : > { %7928 = vmatpush3.bf16.msra.mxu0 %v8297_v26  ;;  %v2728_v26 = vrot.slane %v8294_v17, 1  ;;  %v2227_v50 = vsel %vm2192_vm1, %v2224_v31, %v2226_v7  ;;  %v2734_v53 = vsel %vm2192_vm1, %v2731_v32, %v2733_v34  ;;  %v3296_v17 = vrot.slane %v3294_v2, 2 }
  0xfc   : > { %7929 = vmatprep.subr.bf16.mxu0 %v8303_v35  ;;  %v3275_v52 = vrot.slane %v3273_v36, 1  ;;  %v3278_v8 = vrot.slane %v3276_v37, 2  ;;  %v3311_v63 = vrot.slane %v3309_v21, 1  ;;  %v3314_v32 = vrot.slane %v3312_v23, 2  ;;  %v8326_v36 = vld [vmem:[%s9851_s4 + $0x1a8] sm:$0xff]  }
  0xfd   : > { %v2730_v62 = vsel %vm2192_vm1, %v2728_v26, %v2729_v22  ;;  %v8331_v22 = vld [vmem:[%s9851_s4 + $0x158] sm:$0xff]   ;;  %v8316_v26 = vld [vmem:[#allocation2 + $0x48] sm:$0xff]  }
  0xfe   : > { %v3279_v0 = vor.u32 %v3278_v8, %v3275_v52  ;;  %v2743_v37 = vrot.slane %v8316_v26, 1 }
  0xff   : > { %7930 = vmatpush3.bf16.msra.mxu0 %v8303_v35  ;;  %v3265_v35 = vshrl.u32 %v8307_v25, 16  ;;  %v3297_v25 = vor.u32 %v3296_v17, %v3293_v10 }
 0x100   : > { %8019 = vmatprep.subr.bf16.mxu0 %v8958_v46 }
 0x101   : > { %7800 = vmatmul.mubr.bf16.gmra.mxu1 %v1661_v43  ;;  %7844 = vmatmul.mubr.bf16.gmra.mxu0 %v2213_v55  ;;  %v2735_v43 = vrot.slane %v8305_v39, 1  ;;  %v3267_v55 = vrot.slane %v3265_v35, 1  ;;  %v8325_v35 = vld [vmem:[#allocation2 + $0x40] sm:$0xff]  }
 0x102   : > { %7803 = vmatprep.mubr.bf16.mxu1 %v1669_v57  ;;  %7847 = vmatprep.mubr.bf16.mxu0 %v2215_v58  ;;  %v3270_v57 = vrot.slane %v3268_v45, 2  ;;  %v8311_v58 = vld [vmem:[#allocation2 + $0x38] sm:$0xff]   ;;  %v3315_v45 = vor.u32 %v3314_v32, %v3311_v63  ;;  %v3327_v41 = vshrl.u32 %v8325_v35, 16  ;;  %v8335_v32 = vld [vmem:[#allocation2 + $0x80] sm:$0xff]  }
 0x103   : > { %v2738_v11 = vsel %vm2192_vm1, %v2735_v43, %v2737_v61 }
 0x104   : > { %v3271_v4 = vor.u32 %v3270_v57, %v3267_v55  ;;  %v8330_v55 = vld [vmem:[#allocation2 + $0x50] sm:$0xff]  }
 0x105   : > { %v3348_v5 = vshll.u32 %v8330_v55, 16 }
 0x109   : > { %7804 = vmatmul.mubr.bf16.gmra.mxu1 %v1677_v6  ;;  %7848 = vmatmul.mubr.bf16.gmra.mxu0 %v2217_v9  ;;  %v2229_v6 = vsel %vm2192_vm1, %v2226_v7, %v2228_v60  ;;  %v3287_v9 = vrot.slane %v3285_v13, 2  ;;  %v8337_v7 = vld [vmem:[%s9851_s4 + $0x150] sm:$0xff]   ;;  %v3329_v60 = vrot.slane %v3327_v41, 1  ;;  %v2757_v41 = vrot.slane %v8335_v32, 1 }
 0x10a   : > { %7807 = vmatprep.mubr.bf16.mxu1 %v1685_v12  ;;  %7851 = vmatprep.mubr.bf16.mxu0 %v2219_v14  ;;  %v3280_v12 = vsel %vm3263_vm2, %v3271_v4, %v3279_v0  ;;  %v2739_v14 = vrot.slane %v8311_v58, 1  ;;  %v8338_v4 = vld [vmem:[%s9851_s4 + $0x198] sm:$0xff]  }
 0x10b   : > { %v3288_v20 = vor.u32 %v3287_v9, %v3284_v51  ;;  %v3345_v51 = vshrl.u32 %v8330_v55, 16 }
 0x10c   : > { %v2740_v29 = vsel %vm2192_vm1, %v2737_v61, %v2739_v14  ;;  %v2742_v31 = vsel %vm2192_vm1, %v2739_v14, %v2741_v24  ;;  %v9038_v14 = vld [vmem:[%s9851_s4 + $0x1f8] sm:$0xff]  }
 0x10d   : > { %v3347_v21 = vrot.slane %v3345_v51, 1 }
 0x111   : > { %7808 = vmatmul.mubr.bf16.gmra.mxu1 %v1693_v54  ;;  %7852 = vmatmul.mubr.bf16.gmra.mxu0 %v2221_v28  ;;  %v9000_v54 = vld [vmem:[#allocation2 + $0x50] sm:$0xff]   ;;  %v8322_v28 = vld [vmem:[#allocation2 + $0x38] sm:$0xff]  }
 0x112   : > { %7855 = vmatprep.mubr.bf16.mxu0 %v2223_v30  ;;  %7879 = vmatprep.mubr.bf16.mxu1 %v2730_v62  ;;  %v3289_v30 = vsel %vm3263_vm2, %v3279_v0, %v3288_v20  ;;  %v3305_v62 = vrot.slane %v3303_v19, 2  ;;  %v3318_v39 = vshrl.u32 %v8322_v28, 16  ;;  %v2745_v44 = vrot.slane %v9000_v54, 1 }
 0x114   : > { %v3306_v38 = vor.u32 %v3305_v62, %v3302_v27  ;;  %v3320_v52 = vrot.slane %v3318_v39, 1  ;;  %v2746_v57 = vsel %vm2192_vm1, %v2743_v37, %v2745_v44  ;;  %v8351_v27 = vld [vmem:[%s9851_s4 + $0x188] sm:$0xff]   ;;  %v8333_v62 = vld [vmem:[#allocation2 + $0x78] sm:$0xff]  }
 0x116   : > { %v3316_v58 = vsel %vm3263_vm2, %v3306_v38, %v3315_v45 }
 0x119   : > { %7856 = vmatmul.mubr.bf16.gmra.mxu0 %v2225_v47  ;;  %7880 = vmatmul.mubr.bf16.vlgmr.msra.gmra.mxu1 %v2732_v48  ;;  %v8328_v47 = vld [vmem:[#allocation2 + $0x48] sm:$0xff]   ;;  %v3330_v48 = vshll.u32 %v8325_v35, 16 }
 0x11a   : > { %7859 = vmatprep.mubr.bf16.mxu0 %v2227_v50  ;;  %7883 = vmatprep.mubr.bf16.mxu1 %v2734_v53  ;;  %v2744_v50 = vsel %vm2192_vm1, %v2741_v24, %v2743_v37  ;;  %v3307_v53 = vsel %vm3263_vm2, %v3297_v25, %v3306_v38  ;;  %v3336_v61 = vshrl.u32 %v8328_v47, 16  ;;  %v3339_v3 = vshll.u32 %v8328_v47, 16 }
 0x11b   : > { %7968 = vmatpush3.bf16.msra.mxu1 %v8934_v15  ;;  %v2736_v15 = vsel %vm2192_vm1, %v2733_v34, %v2735_v43  ;;  %v3298_v34 = vsel %vm3263_vm2, %v3288_v20, %v3297_v25  ;;  %v9019_v43 = vld [vmem:[#allocation2 + $0x60] sm:$0xff]   ;;  %v3332_v13 = vrot.slane %v3330_v48, 2  ;;  %v9062_v48 = vld [vmem:[%s9851_s4 + $0x238] sm:$0xff]  }
 0x11c   : > { %7969 = vmatprep.subr.bf16.mxu1 %v8309_v42  ;;  %v2749_v2 = vrot.slane %v9019_v43, 1  ;;  %v3338_v9 = vrot.slane %v3336_v61, 1  ;;  %v3341_v17 = vrot.slane %v3339_v3, 2  ;;  %v8341_v43 = vld [vmem:[#allocation2 + $0x90] sm:$0xff]  }
 0x11d   : > { %v2761_v3 = vrot.slane %v8341_v43, 1 }
 0x11e   : > { %v3342_v26 = vor.u32 %v3341_v17, %v3338_v9  ;;  %v8345_v9 = vld [vmem:[#allocation2 + $0x98] ss:$0 sps:$4 sm:$0x11]  }
 0x11f   : > { %7970 = vmatpush3.bf16.msra.mxu1 %v8309_v42  ;;  %v3321_v42 = vshll.u32 %v8322_v28, 16 }
 0x120   : > { %7971 = vmatprep.subr.bf16.mxu1 %v8315_v56 }
 0x121   : > { %7860 = vmatmul.mubr.bf16.gmra.mxu0 %v2229_v6  ;;  %7884 = vmatmul.mubr.bf16.gmra.mxu1 %v2736_v15  ;;  %v3323_v8 = vrot.slane %v3321_v42, 2  ;;  %v8327_v6 = vld [vmem:[#allocation2 + $0x68] sm:$0xff]   ;;  %v3333_v15 = vor.u32 %v3332_v13, %v3329_v60  ;;  %v8342_v42 = vld [vmem:[#allocation2 + $0x70] sm:$0xff]  }
 0x122   : > { %7887 = vmatprep.mubr.bf16.mxu1 %v2738_v11  ;;  %7931 = vmatprep.mubr.bf16.mxu0 %v3280_v12  ;;  %v8334_v11 = vld [vmem:[#allocation2 + $0x58] sm:$0xff]   ;;  %v8336_v12 = vld [vmem:[#allocation2 + $0x60] sm:$0xff]   ;;  %v2751_v25 = vrot.slane %v8327_v6, 1 }
 0x123   : > { %7972 = vmatpush3.bf16.msra.mxu1 %v8315_v56  ;;  %v8332_v56 = vld [vmem:[%s9851_s4 + $0x1a0] sm:$0xff]   ;;  %v3324_v1 = vor.u32 %v3323_v8, %v3320_v52  ;;  %v3354_v23 = vshrl.u32 %v8334_v11, 16  ;;  %v3357_v24 = vshll.u32 %v8334_v11, 16  ;;  %v8339_v52 = vld [vmem:[#allocation2 + $0x88] sm:$0xff]  }
 0x124   : > { %7973 = vmatprep.subr.bf16.mxu1 %v8323_v40  ;;  %v8352_v11 = vld [vmem:[#allocation2 + $0x88] sm:$0xff]  }
 0x125   : > { %v3325_v10 = vsel %vm3263_vm2, %v3315_v45, %v3324_v1  ;;  %v3334_v20 = vsel %vm3263_vm2, %v3324_v1, %v3333_v15  ;;  %v3356_v63 = vrot.slane %v3354_v23, 1  ;;  %v2755_v45 = vrot.slane %v8333_v62, 1  ;;  %v8348_v23 = vld [vmem:[#allocation2 + $0x8] sm:$0xfc]   ;;  %v8353_v62 = vld [vmem:[#allocation2 + $0x18] sm:$0xff]  }
 0x126   : > { %v2759_v1 = vrot.slane %v8339_v52, 1  ;;  %v8359_v52 = vld [vmem:[#allocation2 + $0x28] sm:$0xff]  }
 0x127   : > { %7974 = vmatpush3.bf16.msra.mxu1 %v8323_v40  ;;  %v9033_v40 = vld [vmem:[#allocation2 + $0x70] sm:$0xff]  }
 0x128   : > { %7975 = vmatprep.subr.bf16.mxu1 %v8331_v22  ;;  %v2753_v54 = vrot.slane %v9033_v40, 1  ;;  %v8349_v40 = vld [vmem:[#allocation2 + $0x10] sm:$0xff]  }
 0x129   : > { %7888 = vmatmul.mubr.bf16.gmra.mxu1 %v2740_v29  ;;  %7932 = vmatmul.mubr.bf16.vlgmr.msra.gmra.mxu0 %v3289_v30  ;;  %v3366_v29 = vshll.u32 %v8336_v12, 16  ;;  %v8340_v30 = vld [vmem:[#allocation2 + $0x68] sm:$0xff]  }
 0x12a   : > { %8020 = vmatpush3.bf16.msra.mxu0 %v8958_v46  ;;  %7891 = vmatprep.mubr.bf16.mxu1 %v2742_v31  ;;  %v8321_v46 = vld [vmem:[#allocation2 + $0x58] sm:$0xff]   ;;  %v3359_v31 = vrot.slane %v3357_v24, 2  ;;  %v2754_v37 = vsel %vm2192_vm1, %v2751_v25, %v2753_v54  ;;  %v3375_v47 = vshll.u32 %v8340_v30, 16  ;;  %v2756_v55 = vsel %vm2192_vm1, %v2753_v54, %v2755_v45 }
 0x12b   : > { %7935 = vmatprep.mubr.bf16.mxu0 %v3298_v34  ;;  %8021 = vmatprep.subr.bf16.mxu0 %v8318_v33  ;;  %v2747_v0 = vrot.slane %v8321_v46, 1  ;;  %v3343_v34 = vsel %vm3263_vm2, %v3333_v15, %v3342_v26  ;;  %v3368_v39 = vrot.slane %v3366_v29, 2  ;;  %v2763_v24 = vrot.slane %v8345_v9, 1 }
 0x12c   : > { %7976 = vmatpush3.bf16.msra.mxu1 %v8331_v22  ;;  %v3350_v22 = vrot.slane %v3348_v5, 2  ;;  %v3360_v46 = vor.u32 %v3359_v31, %v3356_v63  ;;  %v8355_v31 = vld [vmem:[#allocation2 + $0x20] sm:$0xff]  }
 0x12d   : > { %7977 = vmatprep.subr.bf16.mxu1 %v8337_v7  ;;  %v2748_v16 = vsel %vm2192_vm1, %v2745_v44, %v2747_v0  ;;  %v2750_v19 = vsel %vm2192_vm1, %v2747_v0, %v2749_v2  ;;  %v3372_v44 = vshrl.u32 %v8340_v30, 16  ;;  %v8347_v0 = vld [vmem:[#allocation2 + $0x80] sm:$0xff]   ;;  %v3933_v30 = vrot.slane %v8348_v23, 2 }
 0x12e   : > { %8022 = vmatpush3.bf16.msra.mxu0 %v8318_v33  ;;  %v3363_v33 = vshrl.u32 %v8336_v12, 16  ;;  %v3351_v28 = vor.u32 %v3350_v22, %v3347_v21  ;;  %v3399_v6 = vshrl.u32 %v8347_v0, 16  ;;  %v3402_v15 = vshll.u32 %v8347_v0, 16  ;;  %v8354_v22 = vld [vmem:[#allocation2 + $0x90] sm:$0xff]  }
 0x12f   : > { %8023 = vmatprep.subr.bf16.mxu0 %v8326_v36  ;;  %v3374_v8 = vrot.slane %v3372_v44, 1  ;;  %v2760_v12 = vsel %vm2192_vm1, %v2757_v41, %v2759_v1  ;;  %v3420_v29 = vshll.u32 %v8354_v22, 16  ;;  %v2764_v32 = vsel %vm2192_vm1, %v2761_v3, %v2763_v24 }
 0x130   : > { %7978 = vmatpush3.bf16.msra.mxu1 %v8337_v7  ;;  %v2752_v7 = vsel %vm2192_vm1, %v2749_v2, %v2751_v25  ;;  %v3365_v35 = vrot.slane %v3363_v33, 1  ;;  %v3352_v38 = vsel %vm3263_vm2, %v3342_v26, %v3351_v28  ;;  %v3404_v21 = vrot.slane %v3402_v15, 2 }
 0x131   : > { %7892 = vmatmul.mubr.bf16.gmra.mxu1 %v2744_v50  ;;  %7936 = vmatmul.mubr.bf16.gmra.mxu0 %v3307_v53  ;;  %v3381_v50 = vshrl.u32 %v8342_v42, 16  ;;  %v3384_v53 = vshll.u32 %v8342_v42, 16  ;;  %v3408_v25 = vshrl.u32 %v8352_v11, 16  ;;  %v3934_v33 = vrot.slane %v8349_v40, 2 }
 0x132   : > { %7895 = vmatprep.mubr.bf16.mxu1 %v2746_v57  ;;  %7939 = vmatprep.mubr.bf16.mxu0 %v3316_v58  ;;  %v3377_v57 = vrot.slane %v3375_v47, 2  ;;  %v8346_v58 = vld [vmem:[#allocation2 + $0x78] sm:$0xff]  }
 0x133   : > { %8024 = vmatpush3.bf16.msra.mxu0 %v8326_v36  ;;  %7979 = vmatprep.subr.bf16.mxu1 %v8343_v49  ;;  %v8357_v36 = vld [vmem:[%s9851_s4 + $0x180] sm:$0xff]   ;;  %v3383_v13 = vrot.slane %v3381_v50, 1  ;;  %v3386_v61 = vrot.slane %v3384_v53, 2  ;;  %v3393_v51 = vshll.u32 %v8346_v58, 16  ;;  %v3410_v63 = vrot.slane %v3408_v25, 1  ;;  %v8385_v25 = vld [vmem:[%s9851_s4 + $0x1d8] sm:$0xff]  }
 0x134   : > { %8025 = vmatprep.subr.bf16.mxu0 %v8332_v56  ;;  %7980 = vmatpush3.bf16.msra.mxu1 %v8343_v49  ;;  %v3369_v49 = vor.u32 %v3368_v39, %v3365_v35  ;;  %v3378_v2 = vor.u32 %v3377_v57, %v3374_v8  ;;  %v8358_v35 = vld [vmem:[#allocation2 + $0x98] ss:$0 sps:$4 sm:$0x33]   ;;  %v3422_v39 = vrot.slane %v3420_v29, 2  ;;  %v3938_v50 = vrot.slane %v8355_v31, 2 }
 0x135   : > { %7981 = vmatprep.subr.bf16.mxu1 %v8350_v59  ;;  %v3387_v5 = vor.u32 %v3386_v61, %v3383_v13  ;;  %v3395_v17 = vrot.slane %v3393_v51, 2  ;;  %v3429_v47 = vshll.u32 %v8358_v35, 16  ;;  %v8362_v61 = vld [vmem:[#allocation2 + $0x18] sm:$0xff]   ;;  %v8369_v51 = vld [vmem:[%s9851_s4 + $0x1e8] sm:$0xff]  }
 0x136   : > { %v3370_v60 = vsel %vm3263_vm2, %v3360_v46, %v3369_v49 }
 0x137   : > { %8026 = vmatpush3.bf16.msra.mxu0 %v8332_v56  ;;  %v3361_v56 = vsel %vm3263_vm2, %v3351_v28, %v3360_v46  ;;  %v3417_v28 = vshrl.u32 %v8354_v22, 16  ;;  %v3936_v46 = vrot.slane %v8353_v62, 2  ;;  %v3431_v57 = vrot.slane %v3429_v47, 2  ;;  %v8370_v62 = vld [vmem:[#allocation2 + $0x48] sm:$0xff]   ;;  %v8376_v47 = vld [vmem:[#allocation2 + $0x40] sm:$0xff]  }
 0x138   : > { %8027 = vmatprep.subr.bf16.mxu0 %v8338_v4  ;;  %7982 = vmatpush3.bf16.msra.mxu1 %v8350_v59  ;;  %v2758_v59 = vsel %vm2192_vm1, %v2755_v45, %v2757_v41  ;;  %v3426_v41 = vshrl.u32 %v8358_v35, 16 }
 0x139   : > { %7896 = vmatmul.mubr.bf16.gmra.mxu1 %v2748_v16  ;;  %7940 = vmatmul.mubr.bf16.gmra.mxu0 %v3325_v10  ;;  %v3379_v16 = vsel %vm3263_vm2, %v3369_v49, %v3378_v2  ;;  %v3939_v13 = vsel %vm3932_vm3, %v3936_v46, %v3938_v50 }
 0x13a   : > { %7899 = vmatprep.mubr.bf16.mxu1 %v2750_v19  ;;  %7943 = vmatprep.mubr.bf16.mxu0 %v3334_v20  ;;  %v3388_v19 = vsel %vm3263_vm2, %v3378_v2, %v3387_v5  ;;  %v3401_v20 = vrot.slane %v3399_v6, 1  ;;  %v4469_v6 = vrot.slane %v8362_v61, 2  ;;  %v4479_v61 = vrot.slane %v8376_v47, 2  ;;  %v9167_v47 = vld [vmem:[#allocation2 + $0x78] sm:$0xff]  }
 0x13b   : > { %8028 = vmatpush3.bf16.msra.mxu0 %v8338_v4  ;;  %8071 = vmatprep.subr.bf16.mxu1 %v9038_v14  ;;  %v3390_v4 = vshrl.u32 %v8346_v58, 16  ;;  %v8360_v58 = vld [vmem:[#allocation2 + $0x30] sm:$0xff]  }
 0x13c   : > { %8029 = vmatprep.subr.bf16.mxu0 %v8344_v18  ;;  %v3405_v54 = vor.u32 %v3404_v21, %v3401_v20  ;;  %v8368_v20 = vld [vmem:[#allocation2 + $0x28] sm:$0xff]   ;;  %v8367_v21 = vld [vmem:[#allocation2 + $0x40] sm:$0xff]  }
 0x13d   : > { %v3392_v10 = vrot.slane %v3390_v4, 1  ;;  %v3940_v4 = vrot.slane %v8359_v52, 2 }
 0x13f   : > { %8030 = vmatpush3.bf16.msra.mxu0 %v8344_v18  ;;  %v2762_v18 = vsel %vm2192_vm1, %v2759_v1, %v2761_v3  ;;  %v3396_v26 = vor.u32 %v3395_v17, %v3392_v10  ;;  %v8361_v1 = vld [vmem:[#allocation2 + $0x10] sm:$0xfc]   ;;  %v8377_v10 = vld [vmem:[%s9851_s4 + $0x1e0] sm:$0xff]  }
 0x140   : > { %8031 = vmatprep.subr.bf16.mxu0 %v8351_v27  ;;  %v4468_v9 = vrot.slane %v8361_v1, 2 }
 0x141   : > { %7900 = vmatmul.mubr.bf16.gmra.mxu1 %v2752_v7  ;;  %7944 = vmatmul.mubr.bf16.gmra.mxu0 %v3343_v34  ;;  %v3397_v7 = vsel %vm3263_vm2, %v3387_v5, %v3396_v26  ;;  %v3942_v5 = vrot.slane %v8360_v58, 2 }
 0x142   : > { %7903 = vmatprep.mubr.bf16.mxu1 %v2754_v37  ;;  %7947 = vmatprep.mubr.bf16.mxu0 %v3352_v38  ;;  %v3935_v37 = vsel %vm3932_vm3, %v3933_v30, %v3934_v33  ;;  %v3419_v38 = vrot.slane %v3417_v28, 1 }
 0x143   : > { %8032 = vmatpush3.bf16.msra.mxu0 %v8351_v27  ;;  %v3411_v27 = vshll.u32 %v8352_v11, 16  ;;  %v3943_v17 = vsel %vm3932_vm3, %v3940_v4, %v3942_v5 }
 0x144   : > { %8033 = vmatprep.subr.bf16.mxu0 %v8357_v36  ;;  %v3423_v49 = vor.u32 %v3422_v39, %v3419_v38 }
 0x145   : > { %v3413_v34 = vrot.slane %v3411_v27, 2  ;;  %v3946_v27 = vrot.slane %v8367_v21, 2 }
 0x147   : > { %8034 = vmatpush3.bf16.msra.mxu0 %v8357_v36  ;;  %v3406_v36 = vsel %vm3263_vm2, %v3396_v26, %v3405_v54  ;;  %v3414_v45 = vor.u32 %v3413_v34, %v3410_v63  ;;  %v8371_v63 = vld [vmem:[#allocation2 + $0x30] sm:$0xff]  }
 0x148   : > { %8123 = vmatprep.subr.bf16.mxu0 %v9062_v48  ;;  %v8391_v34 = vld [vmem:[%s9851_s4 + $0x1d0] sm:$0xff]   ;;  %v4475_v38 = vrot.slane %v8371_v63, 2 }
 0x149   : > { %7904 = vmatmul.mubr.bf16.gmra.mxu1 %v2756_v55  ;;  %7948 = vmatmul.mubr.bf16.gmra.mxu0 %v3361_v56  ;;  %v3415_v43 = vsel %vm3263_vm2, %v3405_v54, %v3414_v45  ;;  %v3937_v55 = vsel %vm3932_vm3, %v3934_v33, %v3936_v46  ;;  %v3428_v56 = vrot.slane %v3426_v41, 1  ;;  %v4473_v33 = vrot.slane %v8368_v20, 2  ;;  %v8372_v54 = vld [vmem:[%s9851_s4 + $0x230] sm:$0xff]   ;;  %v8375_v41 = vld [vmem:[#allocation2 + $0x58] sm:$0xff]  }
 0x14a   : > { %7907 = vmatprep.mubr.bf16.mxu1 %v2758_v59  ;;  %7951 = vmatprep.mubr.bf16.mxu0 %v3370_v60  ;;  %v8363_v59 = vld [vmem:[%s9851_s4 + $0x1f0] sm:$0xff]   ;;  %v3424_v60 = vsel %vm3263_vm2, %v3414_v45, %v3423_v49  ;;  %v3952_v58 = vrot.slane %v8375_v41, 2 }
 0x14b   : > { %v3432_v3 = vor.u32 %v3431_v57, %v3428_v56  ;;  %v4476_v46 = vsel %vm3932_vm3, %v4473_v33, %v4475_v38  ;;  %v8404_v56 = vld [vmem:[%s9851_s4 + $0x1c0] sm:$0xff]   ;;  %v8395_v41 = vld [vmem:[#allocation2 + $0x90] sm:$0xff]  }
 0x14d   : > { %v3433_v11 = vsel %vm3263_vm2, %v3423_v49, %v3432_v3  ;;  %v8386_v49 = vld [vmem:[%s9851_s4 + $0x220] sm:$0xff]  }
 0x151   : > { %7908 = vmatmul.mubr.bf16.gmra.mxu1 %v2760_v12  ;;  %7952 = vmatmul.mubr.bf16.gmra.mxu0 %v3379_v16  ;;  %v8365_v12 = vld [vmem:[#allocation2 + $0x38] sm:$0xff]   ;;  %v8366_v16 = vld [vmem:[#allocation2 + $0x20] sm:$0xff]  }
 0x152   : > { %7911 = vmatprep.mubr.bf16.mxu1 %v2762_v18  ;;  %7955 = vmatprep.mubr.bf16.mxu0 %v3388_v19  ;;  %v4470_v18 = vsel %vm3932_vm3, %v4468_v9, %v4469_v6  ;;  %v3944_v23 = vrot.slane %v8365_v12, 2  ;;  %v4471_v24 = vrot.slane %v8366_v16, 2 }
 0x154   : > { %v3945_v29 = vsel %vm3932_vm3, %v3942_v5, %v3944_v23  ;;  %v4472_v30 = vsel %vm3932_vm3, %v4469_v6, %v4471_v24  ;;  %v3947_v31 = vsel %vm3932_vm3, %v3944_v23, %v3946_v27  ;;  %v4474_v35 = vsel %vm3932_vm3, %v4471_v24, %v4473_v33  ;;  %v8382_v5 = vld [vmem:[#allocation2 + $0x50] sm:$0xff]   ;;  %v8387_v23 = vld [vmem:[#allocation2 + $0x78] sm:$0xff]   ;;  %v8388_v24 = vld [vmem:[#allocation2 + $0x60] sm:$0xff]  }
 0x155   : > { %v8398_v6 = vld [vmem:[%s9851_s4 + $0x210] sm:$0xff]   ;;  %v4487_v63 = vrot.slane %v8388_v24, 2 }
 0x159   : > { %7912 = vmatmul.mubr.bf16.gmra.mxu1 %v2764_v32  ;;  %7956 = vmatmul.mubr.bf16.gmra.mxu0 %v3397_v7  ;;  %v8373_v32 = vld [vmem:[#allocation2 + $0x50] sm:$0xff]   ;;  %v8374_v7 = vld [vmem:[#allocation2 + $0x38] sm:$0xff]  }
 0x15a   : > { %v7741_v42 = vpop.f32.mrf.mxu1  ;;  %7959 = vmatprep.mubr.bf16.mxu0 %v3406_v36  ;;  %7983 = vmatprep.mubr.bf16.mxu1 %v3935_v37  ;;  %v8380_v36 = vld [vmem:[%s9851_s4 + $0x228] sm:$0xff]   ;;  %v3948_v37 = vrot.slane %v8370_v62, 2  ;;  %v3960_v62 = vrot.slane %v8387_v23, 2 }
 0x15b   : > { %1380 = vst [vmem:[#allocation3 + $0x90] sm:$0xff] %v7741_v42  ;;  %v3950_v42 = vrot.slane %v8373_v32, 2 }
 0x15c   : > { %v1283_v44 = vpop.f32.mrf.mxu1  ;;  %v3949_v45 = vsel %vm3932_vm3, %v3946_v27, %v3948_v37 }
 0x15d   : > { %1378 = vst [vmem:[#allocation3 + $0x80] sm:$0xff] %v1283_v44  ;;  %v4477_v44 = vrot.slane %v8374_v7, 2  ;;  %v3951_v52 = vsel %vm3932_vm3, %v3948_v37, %v3950_v42  ;;  %v3953_v3 = vsel %vm3932_vm3, %v3950_v42, %v3952_v58  ;;  %v8394_v42 = vld [vmem:[#allocation2 + $0x70] sm:$0xff]  }
 0x15e   : > { %v7742_v53 = vpop.f32.mrf.mxu1 }
 0x15f   : > { %1381 = vst [vmem:[#allocation3 + $0x98] sm:$0xff] %v7742_v53 }
 0x160   : > { %v1286_v8 = vpop.f32.mrf.mxu1 }
 0x161   : > { %1379 = vst [vmem:[#allocation3 + $0x88] sm:$0xff] %v1286_v8  ;;  %7960 = vmatmul.mubr.bf16.gmra.mxu0 %v3415_v43  ;;  %7984 = vmatmul.mubr.bf16.vlgmr.msra.gmra.mxu1 %v3937_v55  ;;  %v4478_v8 = vsel %vm3932_vm3, %v4475_v38, %v4477_v44  ;;  %v8378_v43 = vld [vmem:[#allocation2 + $0x60] sm:$0xff]   ;;  %v8379_v55 = vld [vmem:[#allocation2 + $0x48] sm:$0xff]  }
 0x162   : > { %v7745_v0 = vpop.f32.mrf.mxu1  ;;  %7963 = vmatprep.mubr.bf16.mxu0 %v3424_v60  ;;  %7987 = vmatprep.mubr.bf16.mxu1 %v3939_v13  ;;  %v4481_v1 = vrot.slane %v8379_v55, 2  ;;  %v8393_v38 = vld [vmem:[#allocation2 + $0x88] sm:$0xff]  }
 0x163   : > { %1384 = vst [vmem:[#allocation3 + $0xb0] sm:$0xff] %v7745_v0  ;;  %8072 = vmatpush3.bf16.msra.mxu1 %v9038_v14  ;;  %v3941_v14 = vsel %vm3932_vm3, %v3938_v50, %v3940_v4  ;;  %v3954_v0 = vrot.slane %v8378_v43, 2  ;;  %v4480_v4 = vsel %vm3932_vm3, %v4477_v44, %v4479_v61  ;;  %v8402_v43 = vld [vmem:[#allocation2 + $0x10] sm:$0xfc]  }
 0x164   : > { %v1299_v2 = vpop.f32.mrf.mxu1  ;;  %8073 = vmatprep.subr.bf16.mxu1 %v8363_v59 }
 0x165   : > { %1382 = vst [vmem:[#allocation3 + $0xa0] sm:$0xff] %v1299_v2  ;;  %v3955_v9 = vsel %vm3932_vm3, %v3952_v58, %v3954_v0 }
 0x166   : > { %v7746_v15 = vpop.f32.mrf.mxu1 }
 0x167   : > { %1385 = vst [vmem:[#allocation3 + $0xb8] sm:$0xff] %v7746_v15  ;;  %8074 = vmatpush3.bf16.msra.mxu1 %v8363_v59  ;;  %v8392_v59 = vld [vmem:[%s9851_s4 + $0x218] sm:$0xff]  }
 0x168   : > { %v1302_v40 = vpop.f32.mrf.mxu1  ;;  %8075 = vmatprep.subr.bf16.mxu1 %v8369_v51 }
 0x169   : > { %1383 = vst [vmem:[#allocation3 + $0xa8] sm:$0xff] %v1302_v40  ;;  %7964 = vmatmul.mubr.bf16.gmra.mxu0 %v3433_v11  ;;  %7988 = vmatmul.mubr.bf16.gmra.mxu1 %v3941_v14  ;;  %v4482_v40 = vsel %vm3932_vm3, %v4479_v61, %v4481_v1  ;;  %v8383_v11 = vld [vmem:[#allocation2 + $0x70] sm:$0xff]   ;;  %v8384_v14 = vld [vmem:[#allocation2 + $0x58] sm:$0xff]   ;;  %v4493_v61 = vrot.slane %v9167_v47, 2 }
 0x16a   : > { %v7749_v19 = vpop.f32.mrf.mxu1  ;;  %7991 = vmatprep.mubr.bf16.mxu1 %v3943_v17  ;;  %8035 = vmatprep.mubr.bf16.mxu0 %v4470_v18  ;;  %v8405_v17 = vld [vmem:[%s9851_s4 + $0x208] sm:$0xff]   ;;  %v3958_v18 = vrot.slane %v8383_v11, 2  ;;  %v8407_v11 = vld [vmem:[#allocation2 + $0x20] sm:$0xff]  }
 0x16b   : > { %1388 = vst [vmem:[#allocation3 + $0xd0] sm:$0xff] %v7749_v19  ;;  %8076 = vmatpush3.bf16.msra.mxu1 %v8369_v51  ;;  %v8381_v51 = vld [vmem:[#allocation2 + $0x68] sm:$0xff]   ;;  %v4485_v19 = vrot.slane %v8384_v14, 2 }
 0x16c   : > { %v1315_v22 = vpop.f32.mrf.mxu1  ;;  %8077 = vmatprep.subr.bf16.mxu1 %v8377_v10  ;;  %v3956_v16 = vrot.slane %v8381_v51, 2  ;;  %v5005_v51 = vshrl.u32 %v8402_v43, 16 }
 0x16d   : > { %1386 = vst [vmem:[#allocation3 + $0xc0] sm:$0xff] %v1315_v22  ;;  %v4488_v37 = vsel %vm3932_vm3, %v4485_v19, %v4487_v63 }
 0x16e   : > { %v7750_v26 = vpop.f32.mrf.mxu1  ;;  %v3957_v21 = vsel %vm3932_vm3, %v3954_v0, %v3956_v16  ;;  %v3959_v33 = vsel %vm3932_vm3, %v3956_v16, %v3958_v18 }
 0x16f   : > { %1389 = vst [vmem:[#allocation3 + $0xd8] sm:$0xff] %v7750_v26  ;;  %8078 = vmatpush3.bf16.msra.mxu1 %v8377_v10  ;;  %v4483_v10 = vrot.slane %v8382_v5, 2 }
 0x170   : > { %v1318_v28 = vpop.f32.mrf.mxu1  ;;  %8079 = vmatprep.subr.bf16.mxu1 %v8385_v25 }
 0x171   : > { %1387 = vst [vmem:[#allocation3 + $0xc8] sm:$0xff] %v1318_v28  ;;  %7992 = vmatmul.mubr.bf16.gmra.mxu1 %v3945_v29  ;;  %8036 = vmatmul.mubr.bf16.vlgmr.msra.gmra.mxu0 %v4472_v30  ;;  %v9112_v39 = vpop.f32.mrf.mxu0  ;;  %v4484_v22 = vsel %vm3932_vm3, %v4481_v1, %v4483_v10  ;;  %v4486_v27 = vsel %vm3932_vm3, %v4483_v10, %v4485_v19  ;;  %v8390_v28 = vld [vmem:[#allocation2 + $0x68] sm:$0xff]  }
 0x172   : > { %8124 = vmatpush3.bf16.msra.mxu0 %v9062_v48  ;;  %7995 = vmatprep.mubr.bf16.mxu1 %v3947_v31  ;;  %v8397_v48 = vld [vmem:[%s9851_s4 + $0x1c8] sm:$0xff]   ;;  %v4489_v7 = vrot.slane %v8390_v28, 2  ;;  %v5025_v28 = vshll.u32 %v8407_v11, 16 }
 0x173   : > { %8039 = vmatprep.mubr.bf16.mxu0 %v4474_v35  ;;  %8125 = vmatprep.subr.bf16.mxu0 %v8372_v54  ;;  %v9122_v50 = vpop.f32.mrf.mxu0  ;;  %v8409_v19 = vld [vmem:[#allocation2 + $0x28] sm:$0xff]  }
 0x174   : > { %8080 = vmatpush3.bf16.msra.mxu1 %v8385_v25  ;;  %v8410_v25 = vld [vmem:[%s9851_s4 + $0x200] sm:$0xff]  }
 0x175   : > { %8081 = vmatprep.subr.bf16.mxu1 %v8391_v34  ;;  %v9132_v60 = vpop.f32.mrf.mxu0 }
 0x176   : > { %8126 = vmatpush3.bf16.msra.mxu0 %v8372_v54  ;;  %v8389_v54 = vld [vmem:[#allocation2 + $0x80] sm:$0xff]  }
 0x177   : > { %8127 = vmatprep.subr.bf16.mxu0 %v8380_v36  ;;  %v9139_v15 = vpop.f32.mrf.mxu0  ;;  %v3962_v32 = vrot.slane %v8389_v54, 2  ;;  %v5022_v54 = vshrl.u32 %v8407_v11, 16 }
 0x178   : > { %8082 = vmatpush3.bf16.msra.mxu1 %v8391_v34 }
 0x179   : > { %v7753_v53 = vpop.f32.mrf.mxu1  ;;  %7996 = vmatmul.mubr.bf16.gmra.mxu1 %v3949_v45  ;;  %8040 = vmatmul.mubr.bf16.gmra.mxu0 %v4476_v46  ;;  %v3963_v45 = vsel %vm3932_vm3, %v3960_v62, %v3962_v32  ;;  %v4490_v46 = vsel %vm3932_vm3, %v4487_v63, %v4489_v7 }
 0x17a   : > { %1392 = vst [vmem:[#allocation3 + $0xf0] sm:$0xff] %v7753_v53  ;;  %7999 = vmatprep.mubr.bf16.mxu1 %v3951_v52  ;;  %8043 = vmatprep.mubr.bf16.mxu0 %v4478_v8 }
 0x17b   : > { %v1331_v57 = vpop.f32.mrf.mxu1  ;;  %8128 = vmatpush3.bf16.msra.mxu0 %v8380_v36  ;;  %8083 = vmatprep.subr.bf16.mxu1 %v8397_v48  ;;  %v3961_v36 = vsel %vm3932_vm3, %v3958_v18, %v3960_v62 }
 0x17c   : > { %1390 = vst [vmem:[#allocation3 + $0xe0] sm:$0xff] %v1331_v57  ;;  %8129 = vmatprep.subr.bf16.mxu0 %v8386_v49  ;;  %8084 = vmatpush3.bf16.msra.mxu1 %v8397_v48  ;;  %v4491_v57 = vrot.slane %v8394_v42, 2 }
 0x17d   : > { %v7754_v13 = vpop.f32.mrf.mxu1  ;;  %8085 = vmatprep.subr.bf16.mxu1 %v8404_v56 }
 0x17e   : > { %1393 = vst [vmem:[#allocation3 + $0xf8] sm:$0xff] %v7754_v13  ;;  %v3966_v13 = vrot.slane %v8395_v41, 2  ;;  %v4494_v10 = vsel %vm3932_vm3, %v4491_v57, %v4493_v61  ;;  %v5027_v41 = vrot.slane %v5025_v28, 3 }
 0x17f   : > { %v1334_v2 = vpop.f32.mrf.mxu1  ;;  %8130 = vmatpush3.bf16.msra.mxu0 %v8386_v49  ;;  %v8403_v49 = vld [vmem:[#allocation2 + $0x18] sm:$0xff]  }
 0x180   : > { %1391 = vst [vmem:[#allocation3 + $0xe8] sm:$0xff] %v1334_v2  ;;  %8131 = vmatprep.subr.bf16.mxu0 %v8392_v59  ;;  %8086 = vmatpush3.bf16.msra.mxu1 %v8404_v56  ;;  %v3964_v56 = vrot.slane %v8393_v38, 2  ;;  %v5013_v0 = vshrl.u32 %v8403_v49, 16  ;;  %v8412_v38 = vld [vmem:[#allocation2 + $0x30] sm:$0xff]  }
 0x181   : > { %8000 = vmatmul.mubr.bf16.gmra.mxu1 %v3953_v3  ;;  %8044 = vmatmul.mubr.bf16.gmra.mxu0 %v4480_v4  ;;  %v9143_v12 = vpop.f32.mrf.mxu0  ;;  %v8399_v4 = vld [vmem:[#allocation2 + $0x98] ss:$0 sps:$4 sm:$0x33]  }
 0x182   : > { %8003 = vmatprep.mubr.bf16.mxu1 %v3955_v9  ;;  %8047 = vmatprep.mubr.bf16.mxu0 %v4482_v40  ;;  %v4492_v9 = vsel %vm3932_vm3, %v4489_v7, %v4491_v57  ;;  %v8400_v40 = vld [vmem:[#allocation2 + $0x80] sm:$0xff]   ;;  %v5015_v18 = vrot.slane %v5013_v0, 2  ;;  %v3968_v24 = vrot.slane %v8399_v4, 2 }
 0x183   : > { %8132 = vmatpush3.bf16.msra.mxu0 %v8392_v59  ;;  %v9148_v20 = vpop.f32.mrf.mxu0 }
 0x184   : > { %8133 = vmatprep.subr.bf16.mxu0 %v8398_v6 }
 0x185   : > { %v9157_v29 = vpop.f32.mrf.mxu0 }
 0x187   : > { %8134 = vmatpush3.bf16.msra.mxu0 %v8398_v6  ;;  %v9159_v34 = vpop.f32.mrf.mxu0  ;;  %v3965_v6 = vsel %vm3932_vm3, %v3962_v32, %v3964_v56  ;;  %v5034_v32 = vshll.u32 %v8409_v19, 16 }
 0x188   : > { %8135 = vmatprep.subr.bf16.mxu0 %v8405_v17 }
 0x189   : > { %v7757_v26 = vpop.f32.mrf.mxu1  ;;  %8004 = vmatmul.mubr.bf16.gmra.mxu1 %v3957_v21  ;;  %8048 = vmatmul.mubr.bf16.gmra.mxu0 %v4484_v22  ;;  %v5036_v57 = vrot.slane %v5034_v32, 3 }
 0x18a   : > { %1396 = vst [vmem:[#allocation3 + $0x110] sm:$0xff] %v7757_v26  ;;  %8007 = vmatprep.mubr.bf16.mxu1 %v3959_v33  ;;  %8051 = vmatprep.mubr.bf16.mxu0 %v4486_v27  ;;  %v4495_v27 = vrot.slane %v8400_v40, 2 }
 0x18b   : > { %v1347_v30 = vpop.f32.mrf.mxu1  ;;  %8136 = vmatpush3.bf16.msra.mxu0 %v8405_v17  ;;  %v9194_v17 = vld [vmem:[#allocation2 + $0x88] sm:$0xff]  }
 0x18c   : > { %1394 = vst [vmem:[#allocation3 + $0x100] sm:$0xff] %v1347_v30  ;;  %8137 = vmatprep.subr.bf16.mxu0 %v8410_v25 }
 0x18d   : > { %v7758_v31 = vpop.f32.mrf.mxu1 }
 0x18e   : > { %1397 = vst [vmem:[#allocation3 + $0x118] sm:$0xff] %v7758_v31  ;;  %v5031_v31 = vshrl.u32 %v8409_v19, 16 }
 0x18f   : > { %v1350_v35 = vpop.f32.mrf.mxu1  ;;  %8138 = vmatpush3.bf16.msra.mxu0 %v8410_v25  ;;  %v5007_v25 = vrot.slane %v5005_v51, 2 }
 0x190   : > { %1395 = vst [vmem:[#allocation3 + $0x108] sm:$0xff] %v1350_v35 }
 0x191   : > { %v9163_v44 = vpop.f32.mrf.mxu0  ;;  %v7777_v48 = vpop.f32.mrf.mxu1  ;;  %8008 = vmatmul.mubr.bf16.gmra.mxu1 %v3961_v36  ;;  %8052 = vmatmul.mubr.bf16.gmra.mxu0 %v4488_v37 }
 0x192   : > { %v9170_v53 = vadd.f32 %v7777_v48, %v9112_v39  ;;  %8011 = vmatprep.mubr.bf16.mxu1 %v3963_v45  ;;  %8055 = vmatprep.mubr.bf16.mxu0 %v4490_v46  ;;  %v5016_v39 = vshll.u32 %v8403_v49, 16  ;;  %v4496_v48 = vsel %vm3932_vm3, %v4493_v61, %v4495_v27  ;;  %v8406_v45 = vld [vmem:[#allocation2 + $0x90] sm:$0xff]   ;;  %v5024_v46 = vrot.slane %v5022_v54, 2 }
 0x193   : > { %v9172_v52 = vpop.f32.mrf.mxu0  ;;  %v1794_v8 = vpop.f32.mrf.mxu1 }
 0x194   : > { %v9175_v55 = vadd.f32 %v1794_v8, %v9122_v50  ;;  %v5008_v50 = vshll.u32 %v8402_v43, 16  ;;  %v9219_v43 = vld [vmem:[#allocation2 + $0x98] sm:$0xff]  }
 0x195   : > { %v9177_v58 = vpop.f32.mrf.mxu0  ;;  %v7778_v59 = vpop.f32.mrf.mxu1  ;;  %v4501_v40 = vrot.slane %v9219_v43, 2 }
 0x196   : > { %v9181_v1 = vadd.f32 %v7778_v59, %v9132_v60  ;;  %v3967_v60 = vsel %vm3932_vm3, %v3964_v56, %v3966_v13  ;;  %v5010_v26 = vrot.slane %v5008_v50, 3  ;;  %v5033_v56 = vrot.slane %v5031_v31, 2  ;;  %v8413_v59 = vld [vmem:[#allocation2 + $0x38] sm:$0xff]   ;;  %v8418_v31 = vld [vmem:[#allocation2 + $0x48] sm:$0xff]  }
 0x197   : > { %v9183_v2 = vpop.f32.mrf.mxu0  ;;  %v1797_v3 = vpop.f32.mrf.mxu1  ;;  %v4499_v50 = vrot.slane %v8406_v45, 2  ;;  %v5049_v11 = vshrl.u32 %v8413_v59, 16 }
 0x198   : > { %v9186_v5 = vadd.f32 %v1797_v3, %v9139_v15  ;;  %v5018_v15 = vrot.slane %v5016_v39, 3  ;;  %v5011_v37 = vor.u32 %v5010_v26, %v5007_v25  ;;  %v5040_v39 = vshrl.u32 %v8412_v38, 16 }
 0x199   : > { %v9190_v14 = vpop.f32.mrf.mxu0  ;;  %v7781_v16 = vpop.f32.mrf.mxu1  ;;  %8012 = vmatmul.mubr.bf16.gmra.mxu1 %v3965_v6  ;;  %8056 = vmatmul.mubr.bf16.gmra.mxu0 %v4492_v9  ;;  %v5043_v3 = vshll.u32 %v8412_v38, 16  ;;  %v5028_v6 = vor.u32 %v5027_v41, %v5024_v46  ;;  %v5051_v28 = vrot.slane %v5049_v11, 2  ;;  %v8419_v11 = vld [vmem:[#allocation2 + $0x28] sm:$0xff]  }
 0x19a   : > { %v9197_v21 = vadd.f32 %v7781_v16, %v9143_v12  ;;  %8015 = vmatprep.mubr.bf16.mxu1 %v3967_v60  ;;  %8059 = vmatprep.mubr.bf16.mxu0 %v4494_v10  ;;  %v4497_v12 = vrot.slane %v9194_v17, 2  ;;  %v5019_v63 = vor.u32 %v5018_v15, %v5015_v18  ;;  %v5052_v16 = vshll.u32 %v8413_v59, 16  ;;  %v8411_v18 = vld [vmem:[#allocation2 + $0xa0] ss:$0 sps:$4 sm:$0x33]  }
 0x19b   : > { %v9199_v22 = vpop.f32.mrf.mxu0  ;;  %v1810_v23 = vpop.f32.mrf.mxu1  ;;  %v5045_v15 = vrot.slane %v5043_v3, 3 }
 0x19c   : > { %v9202_v33 = vadd.f32 %v1810_v23, %v9148_v20  ;;  %v3969_v20 = vsel %vm3932_vm3, %v3966_v13, %v3968_v24  ;;  %v5020_v8 = vsel %vm5003_vm4, %v5011_v37, %v5019_v63  ;;  %v4500_v24 = vsel %vm3932_vm3, %v4497_v12, %v4499_v50  ;;  %v8414_v37 = vld [vmem:[#allocation2 + $0x10] sm:$0xf8]  }
 0x19d   : > { %v9204_v30 = vpop.f32.mrf.mxu0  ;;  %v7782_v62 = vpop.f32.mrf.mxu1  ;;  %v5029_v25 = vsel %vm5003_vm4, %v5019_v63, %v5028_v6  ;;  %v5673_v59 = vrot.slane %v8414_v37, 3 }
 0x19e   : > { %v9208_v7 = vadd.f32 %v7782_v62, %v9157_v29  ;;  %v4498_v29 = vsel %vm3932_vm3, %v4495_v27, %v4497_v12  ;;  %v5054_v62 = vrot.slane %v5052_v16, 3 }
 0x19f   : > { %v9210_v35 = vpop.f32.mrf.mxu0  ;;  %v1813_v36 = vpop.f32.mrf.mxu1 }
 0x1a0   : > { %v9214_v42 = vadd.f32 %v1813_v36, %v9159_v34  ;;  %v4503_v36 = vrot.slane %v8411_v18, 2 }
 0x1a1   : > { %v7785_v47 = vpop.f32.mrf.mxu1  ;;  %v7829_v49 = vpop.f32.mrf.mxu0  ;;  %8016 = vmatmul.mubr.bf16.gmra.mxu1 %v3969_v20  ;;  %8060 = vmatmul.mubr.bf16.gmra.mxu0 %v4496_v48 }
 0x1a2   : > { %v9222_v34 = vadd.f32 %v7785_v47, %v9163_v44  ;;  %v9225_v13 = vadd.f32 %v7829_v49, %v9170_v53  ;;  %8063 = vmatprep.mubr.bf16.mxu0 %v4498_v29  ;;  %8087 = vmatprep.mubr.bf16.mxu1 %v5020_v8  ;;  %v5037_v53 = vor.u32 %v5036_v57, %v5033_v56  ;;  %v5067_v49 = vshrl.u32 %v8418_v31, 16 }
 0x1a3   : > { %v1826_v61 = vpop.f32.mrf.mxu1  ;;  %v2330_v0 = vpop.f32.mrf.mxu0  ;;  %v5055_v47 = vor.u32 %v5054_v62, %v5051_v28  ;;  %v5070_v29 = vshll.u32 %v8418_v31, 16 }
 0x1a4   : > { %v9228_v4 = vadd.f32 %v1826_v61, %v9172_v52  ;;  %v9231_v51 = vadd.f32 %v2330_v0, %v9175_v55  ;;  %v5042_v55 = vrot.slane %v5040_v39, 2  ;;  %v5038_v54 = vsel %vm5003_vm4, %v5028_v6, %v5037_v53  ;;  %v8420_v61 = vld [vmem:[#allocation2 + $0x50] sm:$0xff]  }
 0x1a5   : > { %v7786_v9 = vpop.f32.mrf.mxu1  ;;  %v7830_v44 = vpop.f32.mrf.mxu0  ;;  %v5079_v18 = vshll.u32 %v8420_v61, 16 }
 0x1a6   : > { %v9235_v60 = vadd.f32 %v7786_v9, %v9177_v58  ;;  %v9238_v10 = vadd.f32 %v7830_v44, %v9181_v1  ;;  %v8416_v58 = vld [vmem:[#allocation2 + $0x40] sm:$0xff]   ;;  %v4502_v1 = vsel %vm3932_vm3, %v4499_v50, %v4501_v40  ;;  %v5046_v20 = vor.u32 %v5045_v15, %v5042_v55 }
 0x1a7   : > { %v1829_v52 = vpop.f32.mrf.mxu1  ;;  %v2333_v17 = vpop.f32.mrf.mxu0  ;;  %v5058_v45 = vshrl.u32 %v8416_v58, 16  ;;  %v5061_v46 = vshll.u32 %v8416_v58, 16  ;;  %v8417_v50 = vld [vmem:[#allocation2 + $0x20] sm:$0xff]   ;;  %v5081_v31 = vrot.slane %v5079_v18, 3 }
 0x1a8   : > { %v9241_v19 = vadd.f32 %v1829_v52, %v9183_v2  ;;  %v9244_v23 = vadd.f32 %v2333_v17, %v9186_v5  ;;  %v9250_v2 = vld [vmem:[#allocation2 + $0x18] sm:$0xff]   ;;  %v5047_v57 = vsel %vm5003_vm4, %v5037_v53, %v5046_v20  ;;  %v5056_v9 = vsel %vm5003_vm4, %v5046_v20, %v5055_v47  ;;  %v8424_v20 = vld [vmem:[#allocation2 + $0x60] sm:$0xff]  }
 0x1a9   : > { %v7789_v26 = vpop.f32.mrf.mxu1  ;;  %v7833_v27 = vpop.f32.mrf.mxu0  ;;  %8064 = vmatmul.mubr.bf16.gmra.mxu0 %v4500_v24  ;;  %8088 = vmatmul.mubr.bf16.vlgmr.msra.gmra.mxu1 %v5029_v25  ;;  %v5063_v3 = vrot.slane %v5061_v46, 3  ;;  %v5072_v53 = vrot.slane %v5070_v29, 3  ;;  %v5076_v17 = vshrl.u32 %v8420_v61, 16  ;;  %v5676_v24 = vrot.slane %v8417_v50, 3 }
 0x1aa   : > { %v9253_v5 = vadd.f32 %v7789_v26, %v9190_v14  ;;  %v9256_v12 = vadd.f32 %v7833_v27, %v9197_v21  ;;  %8067 = vmatprep.mubr.bf16.mxu0 %v4502_v1  ;;  %8091 = vmatprep.mubr.bf16.mxu1 %v5038_v54  ;;  %v5674_v21 = vrot.slane %v9250_v2, 3  ;;  %v5678_v27 = vrot.slane %v8419_v11, 3 }
 0x1ab   : > { %v1842_v63 = vpop.f32.mrf.mxu1  ;;  %v2346_v32 = vpop.f32.mrf.mxu0  ;;  %v5078_v2 = vrot.slane %v5076_v17, 2 }
 0x1ac   : > { %v9259_v38 = vadd.f32 %v1842_v63, %v9199_v22  ;;  %v9262_v48 = vadd.f32 %v2346_v32, %v9202_v33  ;;  %v4504_v33 = vsel %vm3932_vm3, %v4501_v40, %v4503_v36  ;;  %v5675_v44 = vsel %vm5672_vm5, %v5673_v59, %v5674_v21  ;;  %v8421_v63 = vld [vmem:[#allocation2 + $0x30] sm:$0xff]  }
 0x1ad   : > { %v7790_v14 = vpop.f32.mrf.mxu1  ;;  %v7834_v41 = vpop.f32.mrf.mxu0  ;;  %v5069_v40 = vrot.slane %v5067_v49, 2  ;;  %v5677_v36 = vsel %vm5672_vm5, %v5674_v21, %v5676_v24  ;;  %v5679_v46 = vsel %vm5672_vm5, %v5676_v24, %v5678_v27  ;;  %v9307_v49 = vld [vmem:[#allocation2 + $0x38] sm:$0xff]   ;;  %v5097_v59 = vshll.u32 %v8424_v20, 16  ;;  %v8425_v24 = vld [vmem:[#allocation2 + $0x40] sm:$0xff]  }
 0x1ae   : > { %v9266_v8 = vadd.f32 %v7790_v14, %v9204_v30  ;;  %v9269_v43 = vadd.f32 %v7834_v41, %v9208_v7  ;;  %v5060_v30 = vrot.slane %v5058_v45, 2  ;;  %v5682_v50 = vrot.slane %v9307_v49, 3  ;;  %v1954_v49 = vld [vmem:[#allocation3 + $0x88] sm:$0xff] }
 0x1af   : > { %v1845_v22 = vpop.f32.mrf.mxu1  ;;  %v2349_v56 = vpop.f32.mrf.mxu0  ;;  %v5073_v26 = vor.u32 %v5072_v53, %v5069_v40 }
 0x1b0   : > { %v9274_v0 = vadd.f32 %v1845_v22, %v9210_v35  ;;  %v9277_v39 = vadd.f32 %v2349_v56, %v9214_v42  ;;  %v8422_v35 = vld [vmem:[#allocation2 + $0x58] sm:$0xff]   ;;  %v5064_v15 = vor.u32 %v5063_v3, %v5060_v30  ;;  %v5082_v22 = vor.u32 %v5081_v31, %v5078_v2  ;;  %v9335_v2 = vld [vmem:[#allocation2 + $0x48] sm:$0xff]  }
 0x1b1   : > { %v9279_v7 = vpop.f32.mrf.mxu1  ;;  %v7837_v6 = vpop.f32.mrf.mxu0  ;;  %8068 = vmatmul.mubr.bf16.gmra.mxu0 %v4504_v33  ;;  %8092 = vmatmul.mubr.bf16.gmra.mxu1 %v5047_v57  ;;  %v5085_v1 = vshrl.u32 %v8422_v35, 16  ;;  %v5680_v56 = vrot.slane %v8421_v63, 3  ;;  %v5094_v57 = vshrl.u32 %v8424_v20, 16  ;;  %v1956_v63 = vld [vmem:[#allocation3 + $0x98] sm:$0xff] }
 0x1b2   : > { %v9284_v16 = vadd.f32 %v7837_v6, %v9222_v34  ;;  %8095 = vmatprep.mubr.bf16.mxu1 %v5056_v9  ;;  %8139 = vmatprep.mubr.bf16.mxu0 %v5675_v44  ;;  %v5088_v34 = vshll.u32 %v8422_v35, 16  ;;  %v5065_v32 = vsel %vm5003_vm4, %v5055_v47, %v5064_v15  ;;  %v1955_v44 = vld [vmem:[#allocation3 + $0x90] sm:$0xff] }
 0x1b3   : > { %v9286_v42 = vpop.f32.mrf.mxu1  ;;  %v2362_v52 = vpop.f32.mrf.mxu0  ;;  %v5087_v14 = vrot.slane %v5085_v1, 2  ;;  %v5681_v11 = vsel %vm5672_vm5, %v5678_v27, %v5680_v56  ;;  %v8428_v35 = vld [vmem:[#allocation2 + $0x70] sm:$0xff]   ;;  %v5096_v18 = vrot.slane %v5094_v57, 2 }
 0x1b4   : > { %v9289_v55 = vadd.f32 %v2362_v52, %v9228_v4  ;;  %v5090_v41 = vrot.slane %v5088_v34, 3  ;;  %v1991_v52 = vadd.f32 %v9279_v7, %v1955_v44  ;;  %v8430_v7 = vld [vmem:[#allocation2 + $0x78] sm:$0xff]   ;;  %v5112_v20 = vshrl.u32 %v8428_v35, 16 }
 0x1b5   : > { %v9291_v25 = vpop.f32.mrf.mxu1  ;;  %v7838_v58 = vpop.f32.mrf.mxu0  ;;  %v5124_v57 = vshll.u32 %v8430_v7, 16 }
 0x1b6   : > { %v9294_v54 = vadd.f32 %v7838_v58, %v9235_v60  ;;  %v5074_v60 = vsel %vm5003_vm4, %v5064_v15, %v5073_v26  ;;  %v5091_v3 = vor.u32 %v5090_v41, %v5087_v14  ;;  %v5099_v15 = vrot.slane %v5097_v59, 3  ;;  %v1953_v58 = vld [vmem:[#allocation3 + $0x80] sm:$0xff] }
 0x1b7   : > { %v9296_v28 = vpop.f32.mrf.mxu1  ;;  %v2365_v62 = vpop.f32.mrf.mxu0  ;;  %v5684_v41 = vrot.slane %v8425_v24, 3  ;;  %v5114_v44 = vrot.slane %v5112_v20, 2  ;;  %v1957_v24 = vld [vmem:[#allocation3 + $0xa0] sm:$0xff] }
 0x1b8   : > { %v9299_v4 = vadd.f32 %v2365_v62, %v9241_v19  ;;  %v8426_v19 = vld [vmem:[#allocation2 + $0x68] sm:$0xff]   ;;  %v5092_v34 = vsel %vm5003_vm4, %v5082_v22, %v5091_v3  ;;  %v5100_v14 = vor.u32 %v5099_v15, %v5096_v18  ;;  %v1990_v59 = vadd.f32 %v1954_v49, %v9296_v28  ;;  %v8432_v15 = vld [vmem:[#allocation2 + $0x80] sm:$0xff]  }
 0x1b9   : > { %v9303_v37 = vpop.f32.mrf.mxu1  ;;  %v7841_v45 = vpop.f32.mrf.mxu0  ;;  %8096 = vmatmul.mubr.bf16.gmra.mxu1 %v5065_v32  ;;  %8140 = vmatmul.mubr.bf16.vlgmr.msra.gmra.mxu0 %v5677_v36  ;;  %v5106_v6 = vshll.u32 %v8426_v19, 16  ;;  %v5685_v18 = vsel %vm5672_vm5, %v5682_v50, %v5684_v41 }
 0x1ba   : > { %v9310_v29 = vadd.f32 %v7841_v45, %v9253_v5  ;;  %8099 = vmatprep.mubr.bf16.mxu1 %v5074_v60  ;;  %8143 = vmatprep.mubr.bf16.mxu0 %v5679_v46  ;;  %v5103_v5 = vshrl.u32 %v8426_v19, 16  ;;  %v5115_v45 = vshll.u32 %v8428_v35, 16  ;;  %v1992_v60 = vadd.f32 %v9291_v25, %v1956_v63 }
 0x1bb   : > { %v9312_v47 = vpop.f32.mrf.mxu1  ;;  %v2378_v21 = vpop.f32.mrf.mxu0  ;;  %v5108_v62 = vrot.slane %v5106_v6, 3 }
 0x1bc   : > { %v9315_v33 = vadd.f32 %v2378_v21, %v9259_v38  ;;  %v5083_v38 = vsel %vm5003_vm4, %v5073_v26, %v5082_v22  ;;  %v5683_v26 = vsel %vm5672_vm5, %v5680_v56, %v5682_v50  ;;  %v5105_v27 = vrot.slane %v5103_v5, 2  ;;  %v1959_v5 = vld [vmem:[#allocation3 + $0xb0] sm:$0xff]  ;;  %v1960_v50 = vld [vmem:[#allocation3 + $0xb8] sm:$0xff] }
 0x1bd   : > { %v9317_v61 = vpop.f32.mrf.mxu1  ;;  %v7842_v30 = vpop.f32.mrf.mxu0  ;;  %v5686_v22 = vrot.slane %v9335_v2, 3  ;;  %v5121_v56 = vshrl.u32 %v8430_v7, 16 }
 0x1be   : > { %v9321_v9 = vadd.f32 %v7842_v30, %v9266_v8  ;;  %v5109_v21 = vor.u32 %v5108_v62, %v5105_v27  ;;  %v5126_v27 = vrot.slane %v5124_v57, 3  ;;  %v8434_v62 = vld [vmem:[#allocation2 + $0x88] sm:$0xff]   ;;  %v1996_v20 = vadd.f32 %v9317_v61, %v1960_v50 }
 0x1bf   : > { %v9323_v40 = vpop.f32.mrf.mxu1  ;;  %v2381_v53 = vpop.f32.mrf.mxu0  ;;  %v5139_v57 = vshrl.u32 %v8434_v62, 16 }
 0x1c0   : > { %v9329_v17 = vadd.f32 %v2381_v53, %v9274_v0  ;;  %v1989_v0 = vadd.f32 %v1953_v58, %v9286_v42  ;;  %v5117_v53 = vrot.slane %v5115_v45, 3 }
 0x1c1   : > { %v9331_v8 = vpop.f32.mrf.mxu1  ;;  %v7845_v1 = vpop.f32.mrf.mxu0  ;;  %8100 = vmatmul.mubr.bf16.gmra.mxu1 %v5083_v38  ;;  %8144 = vmatmul.mubr.bf16.gmra.mxu0 %v5681_v11  ;;  %v8429_v38 = vld [vmem:[#allocation2 + $0x50] sm:$0xff]   ;;  %v1995_v11 = vadd.f32 %v9303_v37, %v1959_v5  ;;  %v9362_v37 = vld [vmem:[#allocation2 + $0x58] sm:$0xff]  }
 0x1c2   : > { %v9338_v31 = vadd.f32 %v7845_v1, %v1991_v52  ;;  %8103 = vmatprep.mubr.bf16.mxu1 %v5092_v34  ;;  %8147 = vmatprep.mubr.bf16.mxu0 %v5683_v26  ;;  %v5101_v52 = vsel %vm5003_vm4, %v5091_v3, %v5100_v14  ;;  %v5110_v1 = vsel %vm5003_vm4, %v5100_v14, %v5109_v21  ;;  %v5123_v26 = vrot.slane %v5121_v56, 2 }
 0x1c3   : > { %v9340_v32 = vpop.f32.mrf.mxu1  ;;  %v2394_v36 = vpop.f32.mrf.mxu0  ;;  %v5687_v34 = vsel %vm5672_vm5, %v5684_v41, %v5686_v22  ;;  %v1993_v3 = vadd.f32 %v1957_v24, %v9312_v47  ;;  %v5118_v63 = vor.u32 %v5117_v53, %v5114_v44  ;;  %v5133_v14 = vshll.u32 %v8432_v15, 16  ;;  %v1958_v41 = vld [vmem:[#allocation3 + $0xa8] sm:$0xff]  ;;  %v1963_v44 = vld [vmem:[#allocation3 + $0xd0] sm:$0xff] }
 0x1c4   : > { %v9343_v46 = vadd.f32 %v2394_v36, %v1989_v0  ;;  %v5688_v36 = vrot.slane %v8429_v38, 3  ;;  %v5690_v56 = vrot.slane %v9362_v37, 3  ;;  %v1994_v5 = vadd.f32 %v1958_v41, %v9323_v40 }
 0x1c5   : > { %v9345_v19 = vpop.f32.mrf.mxu1  ;;  %v7846_v42 = vpop.f32.mrf.mxu0  ;;  %v5119_v38 = vsel %vm5003_vm4, %v5109_v21, %v5118_v63  ;;  %v5141_v37 = vrot.slane %v5139_v57, 2 }
 0x1c6   : > { %v9349_v30 = vadd.f32 %v7846_v42, %v1992_v60  ;;  %v5130_v60 = vshrl.u32 %v8432_v15, 16  ;;  %v5127_v42 = vor.u32 %v5126_v27, %v5123_v26  ;;  %v5691_v21 = vsel %vm5672_vm5, %v5688_v36, %v5690_v56 }
 0x1c7   : > { %v9351_v6 = vpop.f32.mrf.mxu1  ;;  %v2397_v25 = vpop.f32.mrf.mxu0 }
 0x1c8   : > { %v9354_v35 = vadd.f32 %v2397_v25, %v1990_v59  ;;  %v5142_v59 = vshll.u32 %v8434_v62, 16  ;;  %v5132_v24 = vrot.slane %v5130_v60, 2  ;;  %v5128_v27 = vsel %vm5003_vm4, %v5118_v63, %v5127_v42  ;;  %v9389_v62 = vld [vmem:[#allocation2 + $0x68] sm:$0xff]  }
 0x1c9   : > { %v9358_v28 = vpop.f32.mrf.mxu1  ;;  %v7849_v58 = vpop.f32.mrf.mxu0  ;;  %8104 = vmatmul.mubr.bf16.gmra.mxu1 %v5101_v52  ;;  %8148 = vmatmul.mubr.bf16.gmra.mxu0 %v5685_v18  ;;  %v8436_v52 = vld [vmem:[#allocation2 + $0x90] sm:$0xff]   ;;  %v1999_v18 = vadd.f32 %v9331_v8, %v1963_v44  ;;  %v8438_v8 = vld [vmem:[#allocation2 + $0x98] sm:$0xff]  }
 0x1ca   : > { %v9365_v2 = vadd.f32 %v7849_v58, %v1995_v11  ;;  %8107 = vmatprep.mubr.bf16.mxu1 %v5110_v1  ;;  %8151 = vmatprep.mubr.bf16.mxu0 %v5687_v34  ;;  %v5689_v11 = vsel %vm5672_vm5, %v5686_v22, %v5688_v36  ;;  %v5135_v58 = vrot.slane %v5133_v14, 3  ;;  %v8433_v1 = vld [vmem:[#allocation2 + $0x60] sm:$0xff]   ;;  %v5144_v22 = vrot.slane %v5142_v59, 3  ;;  %v1962_v59 = vld [vmem:[#allocation3 + $0xc8] sm:$0xff] }
 0x1cb   : > { %v9367_v7 = vpop.f32.mrf.mxu1  ;;  %v2410_v0 = vpop.f32.mrf.mxu0  ;;  %v1961_v34 = vld [vmem:[#allocation3 + $0xc0] sm:$0xff]  ;;  %v5148_v14 = vshrl.u32 %v8436_v52, 16  ;;  %v5151_v41 = vshll.u32 %v8436_v52, 16  ;;  %v5692_v57 = vrot.slane %v8433_v1, 3  ;;  %v9405_v52 = vld [vmem:[#allocation2 + $0x70] sm:$0xff]  }
 0x1cc   : > { %v9370_v45 = vadd.f32 %v2410_v0, %v1993_v3  ;;  %v1997_v3 = vadd.f32 %v1961_v34, %v9340_v32  ;;  %v1964_v0 = vld [vmem:[#allocation3 + $0xd8] sm:$0xff]  ;;  %v5145_v44 = vor.u32 %v5144_v22, %v5141_v37 }
 0x1cd   : > { %v9372_v49 = vpop.f32.mrf.mxu1  ;;  %v7850_v47 = vpop.f32.mrf.mxu0  ;;  %v2000_v63 = vadd.f32 %v9345_v19, %v1964_v0  ;;  %v1967_v19 = vld [vmem:[#allocation3 + $0xf0] sm:$0xff]  ;;  %v5153_v1 = vrot.slane %v5151_v41, 3 }
 0x1ce   : > { %v9376_v25 = vadd.f32 %v7850_v47, %v1996_v20  ;;  %v5136_v47 = vor.u32 %v5135_v58, %v5132_v24  ;;  %v5150_v58 = vrot.slane %v5148_v14, 2 }
 0x1cf   : > { %v9378_v53 = vpop.f32.mrf.mxu1  ;;  %v2413_v61 = vpop.f32.mrf.mxu0 }
 0x1d0   : > { %v9383_v15 = vadd.f32 %v2413_v61, %v1994_v5  ;;  %v5694_v61 = vrot.slane %v9389_v62, 3  ;;  %v5137_v22 = vsel %vm5003_vm4, %v5127_v42, %v5136_v47  ;;  %v5693_v62 = vsel %vm5672_vm5, %v5690_v56, %v5692_v57  ;;  %v1968_v56 = vld [vmem:[#allocation3 + $0xf8] sm:$0xff] }
 0x1d1   : > { %v9385_v40 = vpop.f32.mrf.mxu1  ;;  %v7853_v26 = vpop.f32.mrf.mxu0  ;;  %8108 = vmatmul.mubr.bf16.gmra.mxu1 %v5119_v38  ;;  %8152 = vmatmul.mubr.bf16.gmra.mxu0 %v5689_v11  ;;  %v5157_v38 = vshrl.u32 %v8438_v8, 16  ;;  %v5160_v11 = vshll.u32 %v8438_v8, 16  ;;  %v5146_v0 = vsel %vm5003_vm4, %v5136_v47, %v5145_v44  ;;  %v5696_v47 = vrot.slane %v9405_v52, 3 }
 0x1d2   : > { %v9392_v50 = vadd.f32 %v7853_v26, %v1999_v18  ;;  %8111 = vmatprep.mubr.bf16.mxu1 %v5128_v27  ;;  %8155 = vmatprep.mubr.bf16.mxu0 %v5691_v21  ;;  %v1998_v18 = vadd.f32 %v1962_v59, %v9351_v6  ;;  %v8440_v27 = vld [vmem:[#allocation2 + $0xa0] ss:$0 sps:$4 sm:$0x77]   ;;  %v2003_v21 = vadd.f32 %v9358_v28, %v1967_v19  ;;  %v1965_v6 = vld [vmem:[#allocation3 + $0xe0] sm:$0xff] }
 0x1d3   : > { %v9394_v20 = vpop.f32.mrf.mxu1  ;;  %v2426_v60 = vpop.f32.mrf.mxu0  ;;  %v5159_v14 = vrot.slane %v5157_v38, 2  ;;  %v5162_v41 = vrot.slane %v5160_v11, 3  ;;  %v2001_v28 = vadd.f32 %v1965_v6, %v9367_v7  ;;  %v5154_v19 = vor.u32 %v5153_v1, %v5150_v58 }
 0x1d4   : > { %v9397_v36 = vadd.f32 %v2426_v60, %v1997_v3  ;;  %v5695_v60 = vsel %vm5672_vm5, %v5692_v57, %v5694_v61  ;;  %v5166_v57 = vshrl.u32 %v8440_v27, 16  ;;  %v2004_v38 = vadd.f32 %v9372_v49, %v1968_v56  ;;  %v1971_v49 = vld [vmem:[#allocation3 + $0x110] sm:$0xff] }
 0x1d5   : > { %v9399_v5 = vpop.f32.mrf.mxu1  ;;  %v7854_v32 = vpop.f32.mrf.mxu0 }
 0x1d6   : > { %v9403_v34 = vadd.f32 %v7854_v32, %v2000_v63  ;;  %v9416_v63 = vld [vmem:[#allocation2 + $0x78] sm:$0xff]  }
 0x1d7   : > { %v9407_v26 = vpop.f32.mrf.mxu1  ;;  %v2429_v24 = vpop.f32.mrf.mxu0  ;;  %v5698_v6 = vrot.slane %v9416_v63, 3 }
 0x1d8   : > { %v9410_v37 = vadd.f32 %v2429_v24, %v1998_v18  ;;  %v5169_v24 = vshll.u32 %v8440_v27, 16  ;;  %v5697_v27 = vsel %vm5672_vm5, %v5694_v61, %v5696_v47 }
 0x1d9   : > { %v7857_v8 = vpop.f32.mrf.mxu0  ;;  %v7881_v3 = vpop.f32.mrf.mxu1  ;;  %8112 = vmatmul.mubr.bf16.gmra.mxu1 %v5137_v22  ;;  %8156 = vmatmul.mubr.bf16.gmra.mxu0 %v5693_v62  ;;  %v5163_v62 = vor.u32 %v5162_v41, %v5159_v14  ;;  %v2007_v14 = vadd.f32 %v9385_v40, %v1971_v49 }
 0x1da   : > { %v9419_v59 = vadd.f32 %v7857_v8, %v2003_v21  ;;  %v9422_v42 = vadd.f32 %v7881_v3, %v9225_v13  ;;  %8115 = vmatprep.mubr.bf16.mxu1 %v5146_v0  ;;  %8159 = vmatprep.mubr.bf16.mxu0 %v5695_v60  ;;  %v1966_v21 = vld [vmem:[#allocation3 + $0xe8] sm:$0xff]  ;;  %v5168_v0 = vrot.slane %v5166_v57, 2  ;;  %v8441_v60 = vld [vmem:[#allocation2 + $0x80] sm:$0xff]   ;;  %v5171_v63 = vrot.slane %v5169_v24, 3 }
 0x1db   : > { %v2442_v32 = vpop.f32.mrf.mxu0  ;;  %v2865_v18 = vpop.f32.mrf.mxu1  ;;  %v2002_v8 = vadd.f32 %v1966_v21, %v9378_v53  ;;  %v5700_v21 = vrot.slane %v8441_v60, 3 }
 0x1dc   : > { %v9426_v11 = vadd.f32 %v2442_v32, %v2001_v28  ;;  %v9429_v7 = vadd.f32 %v2865_v18, %v9231_v51  ;;  %v5155_v51 = vsel %vm5003_vm4, %v5145_v44, %v5154_v19  ;;  %v1969_v28 = vld [vmem:[#allocation3 + $0x100] sm:$0xff]  ;;  %v5164_v32 = vsel %vm5003_vm4, %v5154_v19, %v5163_v62 }
 0x1dd   : > { %v7858_v13 = vpop.f32.mrf.mxu0  ;;  %v7882_v22 = vpop.f32.mrf.mxu1  ;;  %v5699_v44 = vsel %vm5672_vm5, %v5696_v47, %v5698_v6  ;;  %v8442_v18 = vld [vmem:[#allocation2 + $0x88] sm:$0xff]   ;;  %v2005_v61 = vadd.f32 %v1969_v28, %v9394_v20  ;;  %v5172_v47 = vor.u32 %v5171_v63, %v5168_v0  ;;  %v8443_v0 = vld [vmem:[#allocation2 + $0x90] sm:$0xff]  }
 0x1de   : > { %v9433_v58 = vadd.f32 %v7858_v13, %v2004_v38  ;;  %v9436_v52 = vadd.f32 %v7882_v22, %v9238_v10 }
 0x1df   : > { %v2445_v1 = vpop.f32.mrf.mxu0  ;;  %v2868_v3 = vpop.f32.mrf.mxu1  ;;  %v5173_v28 = vsel %vm5003_vm4, %v5163_v62, %v5172_v47 }
 0x1e0   : > { %v9441_v41 = vadd.f32 %v2445_v1, %v2002_v8  ;;  %v3045_v53 = vadd.f32 %v2868_v3, %v9244_v23  ;;  %v1972_v23 = vld [vmem:[#allocation3 + $0x118] sm:$0xff]  ;;  %v1970_v8 = vld [vmem:[#allocation3 + $0x108] sm:$0xff]  ;;  %v5702_v1 = vrot.slane %v8442_v18, 3  ;;  %v5704_v18 = vrot.slane %v8443_v0, 3 }
 0x1e1   : > { %v7861_v56 = vpop.f32.mrf.mxu0  ;;  %v7885_v10 = vpop.f32.mrf.mxu1  ;;  %8116 = vmatmul.mubr.bf16.gmra.mxu1 %v5155_v51  ;;  %8160 = vmatmul.mubr.bf16.gmra.mxu0 %v5697_v27  ;;  %v2008_v13 = vadd.f32 %v9399_v5, %v1972_v23  ;;  %v2006_v3 = vadd.f32 %v1970_v8, %v9407_v26  ;;  %v8445_v8 = vld [vmem:[#allocation2 + $0xa0] ss:$0 sps:$4 sm:$0x77]  }
 0x1e2   : > { %v9447_v57 = vadd.f32 %v7861_v56, %v2007_v14  ;;  %v3050_v40 = vadd.f32 %v7885_v10, %v9256_v12  ;;  %8119 = vmatprep.mubr.bf16.mxu1 %v5164_v32  ;;  %8163 = vmatprep.mubr.bf16.mxu0 %v5699_v44  ;;  %v5703_v26 = vsel %vm5672_vm5, %v5700_v21, %v5702_v1  ;;  %v8444_v10 = vld [vmem:[#allocation2 + $0x98] sm:$0xff]  }
 0x1e3   : > { %v2458_v38 = vpop.f32.mrf.mxu0  ;;  %v2881_v24 = vpop.f32.mrf.mxu1 }
 0x1e4   : > { %v9451_v22 = vadd.f32 %v2458_v38, %v2005_v61  ;;  %v3048_v19 = vadd.f32 %v2881_v24, %v9262_v48  ;;  %v5701_v48 = vsel %vm5672_vm5, %v5698_v6, %v5700_v21  ;;  %v5706_v38 = vrot.slane %v8444_v10, 3 }
 0x1e5   : > { %v7862_v49 = vpop.f32.mrf.mxu0  ;;  %v7886_v20 = vpop.f32.mrf.mxu1 }
 0x1e6   : > { %v9455_v12 = vadd.f32 %v7862_v49, %v2008_v13  ;;  %v3051_v51 = vadd.f32 %v7886_v20, %v9269_v43  ;;  %v5707_v20 = vsel %vm5672_vm5, %v5704_v18, %v5706_v38 }
 0x1e7   : > { %v2461_v27 = vpop.f32.mrf.mxu0  ;;  %v2884_v14 = vpop.f32.mrf.mxu1 }
 0x1e8   : > { %v9458_v60 = vadd.f32 %v2461_v27, %v2006_v3  ;;  %v3049_v5 = vadd.f32 %v2884_v14, %v9277_v39 }
 0x1e9   : > { %v7889_v63 = vpop.f32.mrf.mxu1  ;;  %v7933_v56 = vpop.f32.mrf.mxu0  ;;  %8120 = vmatmul.mubr.bf16.gmra.mxu1 %v5173_v28  ;;  %8164 = vmatmul.mubr.bf16.gmra.mxu0 %v5701_v48 }
 0x1ea   : > { %v3054_v43 = vadd.f32 %v7889_v63, %v9284_v16  ;;  %v9466_v32 = vadd.f32 %v7933_v56, %v9422_v42  ;;  %8167 = vmatprep.mubr.bf16.mxu0 %v5703_v26 }
 0x1eb   : > { %v2897_v44 = vpop.f32.mrf.mxu1  ;;  %v3534_v39 = vpop.f32.mrf.mxu0 }
 0x1ec   : > { %v3052_v62 = vadd.f32 %v2897_v44, %v9289_v55  ;;  %v9470_v6 = vadd.f32 %v3534_v39, %v9429_v7  ;;  %v5705_v55 = vsel %vm5672_vm5, %v5702_v1, %v5704_v18 }
 0x1ed   : > { %v7890_v61 = vpop.f32.mrf.mxu1  ;;  %v7934_v23 = vpop.f32.mrf.mxu0 }
 0x1ee   : > { %v3055_v24 = vadd.f32 %v7890_v61, %v9294_v54  ;;  %v9474_v21 = vadd.f32 %v7934_v23, %v9436_v52 }
 0x1ef   : > { %v2900_v16 = vpop.f32.mrf.mxu1  ;;  %v3537_v42 = vpop.f32.mrf.mxu0 }
 0x1f0   : > { %v3053_v13 = vadd.f32 %v2900_v16, %v9299_v4  ;;  %v9477_v47 = vadd.f32 %v3537_v42, %v3045_v53  ;;  %v5708_v53 = vrot.slane %v8445_v8, 3 }
 0x1f1   : > { %v7893_v7 = vpop.f32.mrf.mxu1  ;;  %v7937_v49 = vpop.f32.mrf.mxu0  ;;  %8168 = vmatmul.mubr.bf16.gmra.mxu0 %v5705_v55 }
 0x1f2   : > { %v3058_v3 = vadd.f32 %v7893_v7, %v9310_v29  ;;  %v9482_v54 = vadd.f32 %v7937_v49, %v3050_v40  ;;  %8171 = vmatprep.mubr.bf16.mxu0 %v5707_v20  ;;  %v5709_v26 = vsel %vm5672_vm5, %v5706_v38, %v5708_v53 }
 0x1f3   : > { %v2913_v52 = vpop.f32.mrf.mxu1  ;;  %v3550_v27 = vpop.f32.mrf.mxu0 }
 0x1f4   : > { %v3056_v14 = vadd.f32 %v2913_v52, %v9315_v33  ;;  %v9485_v4 = vadd.f32 %v3550_v27, %v3048_v19 }
 0x1f5   : > { %v7894_v28 = vpop.f32.mrf.mxu1  ;;  %v7938_v1 = vpop.f32.mrf.mxu0 }
 0x1f6   : > { %v3059_v48 = vadd.f32 %v7894_v28, %v9321_v9  ;;  %v9488_v0 = vadd.f32 %v7938_v1, %v3051_v51 }
 0x1f7   : > { %v2916_v63 = vpop.f32.mrf.mxu1  ;;  %v3553_v56 = vpop.f32.mrf.mxu0 }
 0x1f8   : > { %v3057_v29 = vadd.f32 %v2916_v63, %v9329_v17  ;;  %v9491_v40 = vadd.f32 %v3553_v56, %v3049_v5 }
 0x1f9   : > { %v7897_v10 = vpop.f32.mrf.mxu1  ;;  %v7941_v44 = vpop.f32.mrf.mxu0  ;;  %8172 = vmatmul.mubr.bf16.gmra.mxu0 %v5709_v26 }
 0x1fa   : > { %v3062_v33 = vadd.f32 %v7897_v10, %v9338_v31  ;;  %v9495_v19 = vadd.f32 %v7941_v44, %v3054_v43 }
 0x1fb   : > { %v2929_v39 = vpop.f32.mrf.mxu1  ;;  %v3566_v18 = vpop.f32.mrf.mxu0 }
 0x1fc   : > { %v3060_v9 = vadd.f32 %v2929_v39, %v9343_v46  ;;  %v9498_v51 = vadd.f32 %v3566_v18, %v3052_v62 }
 0x1fd   : > { %v7898_v61 = vpop.f32.mrf.mxu1  ;;  %v7942_v23 = vpop.f32.mrf.mxu0 }
 0x1fe   : > { %v3063_v17 = vadd.f32 %v7898_v61, %v9349_v30  ;;  %v9501_v5 = vadd.f32 %v7942_v23, %v3055_v24 }
 0x1ff   : > { %v2932_v38 = vpop.f32.mrf.mxu1  ;;  %v3569_v16 = vpop.f32.mrf.mxu0 }
 0x200   : > { %v3061_v42 = vadd.f32 %v2932_v38, %v9354_v35  ;;  %v9504_v55 = vadd.f32 %v3569_v16, %v3053_v13 }
 0x201   : > { %v7901_v31 = vpop.f32.mrf.mxu1  ;;  %v7945_v43 = vpop.f32.mrf.mxu0 }
 0x202   : > { %v3066_v8 = vadd.f32 %v7901_v31, %v9365_v2  ;;  %v9507_v7 = vadd.f32 %v7945_v43, %v3058_v3 }
 0x203   : > { %v2945_v46 = vpop.f32.mrf.mxu1  ;;  %v3582_v62 = vpop.f32.mrf.mxu0 }
 0x204   : > { %v3064_v49 = vadd.f32 %v2945_v46, %v9370_v45  ;;  %v9510_v20 = vadd.f32 %v3582_v62, %v3056_v14 }
 0x205   : > { %v7902_v30 = vpop.f32.mrf.mxu1  ;;  %v7946_v24 = vpop.f32.mrf.mxu0 }
 0x206   : > { %v3067_v52 = vadd.f32 %v7902_v30, %v9376_v25  ;;  %v9513_v27 = vadd.f32 %v7946_v24, %v3059_v48 }
 0x207   : > { %v2948_v35 = vpop.f32.mrf.mxu1  ;;  %v3585_v13 = vpop.f32.mrf.mxu0 }
 0x208   : > { %v3065_v53 = vadd.f32 %v2948_v35, %v9383_v15  ;;  %v9516_v28 = vadd.f32 %v3585_v13, %v3057_v29 }
 0x209   : > { %v7905_v2 = vpop.f32.mrf.mxu1  ;;  %v7949_v3 = vpop.f32.mrf.mxu0 }
 0x20a   : > { %v3070_v1 = vadd.f32 %v7905_v2, %v9392_v50  ;;  %v9519_v63 = vadd.f32 %v7949_v3, %v3062_v33 }
 0x20b   : > { %v2961_v45 = vpop.f32.mrf.mxu1  ;;  %v3598_v14 = vpop.f32.mrf.mxu0 }
 0x20c   : > { %v3068_v56 = vadd.f32 %v2961_v45, %v9397_v36  ;;  %v9522_v26 = vadd.f32 %v3598_v14, %v3060_v9 }
 0x20d   : > { %v7906_v25 = vpop.f32.mrf.mxu1  ;;  %v7950_v48 = vpop.f32.mrf.mxu0 }
 0x20e   : > { %v3071_v10 = vadd.f32 %v7906_v25, %v9403_v34  ;;  %v9525_v44 = vadd.f32 %v7950_v48, %v3063_v17 }
 0x20f   : > { %v2964_v15 = vpop.f32.mrf.mxu1  ;;  %v3601_v29 = vpop.f32.mrf.mxu0 }
 0x210   : > { %v3069_v39 = vadd.f32 %v2964_v15, %v9410_v37  ;;  %v9528_v18 = vadd.f32 %v3601_v29, %v3061_v42 }
 0x211   : > { %v7909_v50 = vpop.f32.mrf.mxu1  ;;  %v7953_v33 = vpop.f32.mrf.mxu0 }
 0x212   : > { %v3074_v61 = vadd.f32 %v7909_v50, %v9419_v59  ;;  %v9531_v23 = vadd.f32 %v7953_v33, %v3066_v8 }
 0x213   : > { %v2977_v36 = vpop.f32.mrf.mxu1  ;;  %v3614_v9 = vpop.f32.mrf.mxu0 }
 0x214   : > { %v3072_v38 = vadd.f32 %v2977_v36, %v9426_v11  ;;  %v9534_v16 = vadd.f32 %v3614_v9, %v3064_v49 }
 0x215   : > { %v7910_v34 = vpop.f32.mrf.mxu1  ;;  %v7954_v17 = vpop.f32.mrf.mxu0 }
 0x216   : > { %v3075_v31 = vadd.f32 %v7910_v34, %v9433_v58  ;;  %v9537_v43 = vadd.f32 %v7954_v17, %v3067_v52 }
 0x217   : > { %v2980_v37 = vpop.f32.mrf.mxu1  ;;  %v3617_v42 = vpop.f32.mrf.mxu0 }
 0x218   : > { %v3073_v46 = vadd.f32 %v2980_v37, %v9441_v41  ;;  %v9540_v62 = vadd.f32 %v3617_v42, %v3065_v53 }
 0x219   : > { %v7913_v59 = vpop.f32.mrf.mxu1  ;;  %v7957_v8 = vpop.f32.mrf.mxu0 }
 0x21a   : > { %v3078_v30 = vadd.f32 %v7913_v59, %v9447_v57  ;;  %v9543_v24 = vadd.f32 %v7957_v8, %v3070_v1 }
 0x21b   : > { %v2993_v11 = vpop.f32.mrf.mxu1  ;;  %v3630_v49 = vpop.f32.mrf.mxu0 }
 0x21c   : > { %v3076_v35 = vadd.f32 %v2993_v11, %v9451_v22  ;;  %v9546_v13 = vadd.f32 %v3630_v49, %v3068_v56 }
 0x21d   : > { %v7914_v58 = vpop.f32.mrf.mxu1  ;;  %v7958_v52 = vpop.f32.mrf.mxu0 }
 0x21e   : > { %v3079_v2 = vadd.f32 %v7914_v58, %v9455_v12  ;;  %v9549_v3 = vadd.f32 %v7958_v52, %v3071_v10 }
 0x21f   : > { %v2996_v41 = vpop.f32.mrf.mxu1  ;;  %v3633_v53 = vpop.f32.mrf.mxu0 }
 0x220   : > { %v3077_v45 = vadd.f32 %v2996_v41, %v9458_v60  ;;  %v9552_v14 = vadd.f32 %v3633_v53, %v3069_v39 }
 0x221   : > { %v7961_v57 = vpop.f32.mrf.mxu0  ;;  %v7985_v1 = vpop.f32.mrf.mxu1 }
 0x222   : > { %v9554_v25 = vadd.f32 %v7961_v57, %v3074_v61  ;;  %v4251_v22 = vadd.f32 %v7985_v1, %v9466_v32 }
 0x223   : > { %v3646_v56 = vpop.f32.mrf.mxu0  ;;  %v4070_v48 = vpop.f32.mrf.mxu1 }
 0x224   : > { %v9557_v15 = vadd.f32 %v3646_v56, %v3072_v38  ;;  %v4249_v12 = vadd.f32 %v4070_v48, %v9470_v6 }
 0x225   : > { %v7962_v10 = vpop.f32.mrf.mxu0  ;;  %v7986_v29 = vpop.f32.mrf.mxu1 }
 0x226   : > { %v9560_v50 = vadd.f32 %v7962_v10, %v3075_v31  ;;  %v4252_v60 = vadd.f32 %v7986_v29, %v9474_v21 }
 0x227   : > { %v3649_v39 = vpop.f32.mrf.mxu0  ;;  %v4073_v33 = vpop.f32.mrf.mxu1 }
 0x228   : > { %v9563_v36 = vadd.f32 %v3649_v39, %v3073_v46  ;;  %v4250_v61 = vadd.f32 %v4073_v33, %v9477_v47 }
 0x229   : > { %v7965_v9 = vpop.f32.mrf.mxu0  ;;  %v7989_v32 = vpop.f32.mrf.mxu1 }
 0x22a   : > { %v9566_v34 = vadd.f32 %v7965_v9, %v3078_v30  ;;  %v4255_v38 = vadd.f32 %v7989_v32, %v9482_v54 }
 0x22b   : > { %v3662_v17 = vpop.f32.mrf.mxu0  ;;  %v4086_v6 = vpop.f32.mrf.mxu1 }
 0x22c   : > { %v9569_v37 = vadd.f32 %v3662_v17, %v3076_v35  ;;  %v4253_v31 = vadd.f32 %v4086_v6, %v9485_v4 }
 0x22d   : > { %v7966_v42 = vpop.f32.mrf.mxu0  ;;  %v7990_v21 = vpop.f32.mrf.mxu1 }
 0x22e   : > { %v9572_v59 = vadd.f32 %v7966_v42, %v3079_v2  ;;  %v4256_v46 = vadd.f32 %v7990_v21, %v9488_v0 }
 0x22f   : > { %v3665_v8 = vpop.f32.mrf.mxu0  ;;  %v4089_v47 = vpop.f32.mrf.mxu1 }
 0x230   : > { %v9575_v11 = vadd.f32 %v3665_v8, %v3077_v45  ;;  %v4254_v30 = vadd.f32 %v4089_v47, %v9491_v40 }
 0x231   : > { %v7993_v49 = vpop.f32.mrf.mxu1  ;;  %v8037_v54 = vpop.f32.mrf.mxu0 }
 0x232   : > { %v4259_v58 = vadd.f32 %v7993_v49, %v9495_v19  ;;  %v9579_v35 = vadd.f32 %v8037_v54, %v4251_v22 }
 0x233   : > { %v4102_v52 = vpop.f32.mrf.mxu1  ;;  %v4605_v4 = vpop.f32.mrf.mxu0 }
 0x234   : > { %v4257_v41 = vadd.f32 %v4102_v52, %v9498_v51  ;;  %v9582_v2 = vadd.f32 %v4605_v4, %v4249_v12 }
 0x235   : > { %v7994_v53 = vpop.f32.mrf.mxu1  ;;  %v8038_v0 = vpop.f32.mrf.mxu0 }
 0x236   : > { %v4260_v57 = vadd.f32 %v7994_v53, %v9501_v5  ;;  %v9585_v45 = vadd.f32 %v8038_v0, %v4252_v60 }
 0x237   : > { %v4105_v1 = vpop.f32.mrf.mxu1  ;;  %v4608_v40 = vpop.f32.mrf.mxu0 }
 0x238   : > { %v4258_v56 = vadd.f32 %v4105_v1, %v9504_v55  ;;  %v9588_v48 = vadd.f32 %v4608_v40, %v4250_v61 }
 0x239   : > { %v7997_v19 = vpop.f32.mrf.mxu1  ;;  %v8041_v22 = vpop.f32.mrf.mxu0 }
 0x23a   : > { %v4263_v10 = vadd.f32 %v7997_v19, %v9507_v7  ;;  %v9591_v29 = vadd.f32 %v8041_v22, %v4255_v38 }
 0x23b   : > { %v4118_v51 = vpop.f32.mrf.mxu1  ;;  %v4621_v12 = vpop.f32.mrf.mxu0 }
 0x23c   : > { %v4261_v39 = vadd.f32 %v4118_v51, %v9510_v20  ;;  %v9594_v33 = vadd.f32 %v4621_v12, %v4253_v31 }
 0x23d   : > { %v7998_v5 = vpop.f32.mrf.mxu1  ;;  %v8042_v60 = vpop.f32.mrf.mxu0 }
 0x23e   : > { %v4264_v9 = vadd.f32 %v7998_v5, %v9513_v27  ;;  %v9597_v32 = vadd.f32 %v8042_v60, %v4256_v46 }
 0x23f   : > { %v4121_v55 = vpop.f32.mrf.mxu1  ;;  %v4624_v61 = vpop.f32.mrf.mxu0 }
 0x240   : > { %v4262_v17 = vadd.f32 %v4121_v55, %v9516_v28  ;;  %v9600_v6 = vadd.f32 %v4624_v61, %v4254_v30 }
 0x241   : > { %v8001_v7 = vpop.f32.mrf.mxu1  ;;  %v8045_v38 = vpop.f32.mrf.mxu0 }
 0x242   : > { %v4267_v42 = vadd.f32 %v8001_v7, %v9519_v63  ;;  %v9603_v21 = vadd.f32 %v8045_v38, %v4259_v58 }
 0x243   : > { %v4134_v20 = vpop.f32.mrf.mxu1  ;;  %v4637_v31 = vpop.f32.mrf.mxu0 }
 0x244   : > { %v4265_v8 = vadd.f32 %v4134_v20, %v9522_v26  ;;  %v9606_v47 = vadd.f32 %v4637_v31, %v4257_v41 }
 0x245   : > { %v8002_v27 = vpop.f32.mrf.mxu1  ;;  %v8046_v46 = vpop.f32.mrf.mxu0 }
 0x246   : > { %v4268_v49 = vadd.f32 %v8002_v27, %v9525_v44  ;;  %v9609_v54 = vadd.f32 %v8046_v46, %v4260_v57 }
 0x247   : > { %v4137_v28 = vpop.f32.mrf.mxu1  ;;  %v4640_v30 = vpop.f32.mrf.mxu0 }
 0x248   : > { %v4266_v52 = vadd.f32 %v4137_v28, %v9528_v18  ;;  %v9612_v4 = vadd.f32 %v4640_v30, %v4258_v56 }
 0x249   : > { %v8005_v63 = vpop.f32.mrf.mxu1  ;;  %v8049_v58 = vpop.f32.mrf.mxu0 }
 0x24a   : > { %v4271_v53 = vadd.f32 %v8005_v63, %v9531_v23  ;;  %v9615_v0 = vadd.f32 %v8049_v58, %v4263_v10 }
 0x24b   : > { %v4150_v26 = vpop.f32.mrf.mxu1  ;;  %v4653_v41 = vpop.f32.mrf.mxu0 }
 0x24c   : > { %v4269_v1 = vadd.f32 %v4150_v26, %v9534_v16  ;;  %v9618_v40 = vadd.f32 %v4653_v41, %v4261_v39 }
 0x24d   : > { %v8006_v44 = vpop.f32.mrf.mxu1  ;;  %v8050_v57 = vpop.f32.mrf.mxu0 }
 0x24e   : > { %v4272_v19 = vadd.f32 %v8006_v44, %v9537_v43  ;;  %v9621_v22 = vadd.f32 %v8050_v57, %v4264_v9 }
 0x24f   : > { %v4153_v18 = vpop.f32.mrf.mxu1  ;;  %v4656_v56 = vpop.f32.mrf.mxu0 }
 0x250   : > { %v4270_v51 = vadd.f32 %v4153_v18, %v9540_v62  ;;  %v9624_v12 = vadd.f32 %v4656_v56, %v4262_v17 }
 0x251   : > { %v8009_v23 = vpop.f32.mrf.mxu1  ;;  %v8053_v10 = vpop.f32.mrf.mxu0 }
 0x252   : > { %v4275_v5 = vadd.f32 %v8009_v23, %v9543_v24  ;;  %v9627_v60 = vadd.f32 %v8053_v10, %v4267_v42 }
 0x253   : > { %v4166_v16 = vpop.f32.mrf.mxu1  ;;  %v4669_v39 = vpop.f32.mrf.mxu0 }
 0x254   : > { %v4273_v55 = vadd.f32 %v4166_v16, %v9546_v13  ;;  %v9630_v61 = vadd.f32 %v4669_v39, %v4265_v8 }
 0x255   : > { %v8010_v43 = vpop.f32.mrf.mxu1  ;;  %v8054_v9 = vpop.f32.mrf.mxu0 }
 0x256   : > { %v4276_v7 = vadd.f32 %v8010_v43, %v9549_v3  ;;  %v9633_v38 = vadd.f32 %v8054_v9, %v4268_v49 }
 0x257   : > { %v4169_v62 = vpop.f32.mrf.mxu1  ;;  %v4672_v17 = vpop.f32.mrf.mxu0 }
 0x258   : > { %v4274_v20 = vadd.f32 %v4169_v62, %v9552_v14  ;;  %v9636_v31 = vadd.f32 %v4672_v17, %v4266_v52 }
 0x259   : > { %v8013_v24 = vpop.f32.mrf.mxu1  ;;  %v8057_v42 = vpop.f32.mrf.mxu0 }
 0x25a   : > { %v4279_v27 = vadd.f32 %v8013_v24, %v9554_v25  ;;  %v9639_v46 = vadd.f32 %v8057_v42, %v4271_v53 }
 0x25b   : > { %v4182_v13 = vpop.f32.mrf.mxu1  ;;  %v4685_v8 = vpop.f32.mrf.mxu0 }
 0x25c   : > { %v4277_v28 = vadd.f32 %v4182_v13, %v9557_v15  ;;  %v9642_v30 = vadd.f32 %v4685_v8, %v4269_v1 }
 0x25d   : > { %v8014_v3 = vpop.f32.mrf.mxu1  ;;  %v8058_v49 = vpop.f32.mrf.mxu0 }
 0x25e   : > { %v4280_v63 = vadd.f32 %v8014_v3, %v9560_v50  ;;  %v9645_v58 = vadd.f32 %v8058_v49, %v4272_v19 }
 0x25f   : > { %v4185_v14 = vpop.f32.mrf.mxu1  ;;  %v4688_v52 = vpop.f32.mrf.mxu0 }
 0x260   : > { %v4278_v26 = vadd.f32 %v4185_v14, %v9563_v36  ;;  %v9648_v41 = vadd.f32 %v4688_v52, %v4270_v51 }
 0x261   : > { %v8017_v25 = vpop.f32.mrf.mxu1  ;;  %v8061_v53 = vpop.f32.mrf.mxu0 }
 0x262   : > { %v4283_v44 = vadd.f32 %v8017_v25, %v9566_v34  ;;  %v9651_v15 = vadd.f32 %v8061_v53, %v4275_v5 }
 0x263   : > { %v4198_v1 = vpop.f32.mrf.mxu1  ;;  %v4701_v57 = vpop.f32.mrf.mxu0 }
 0x264   : > { %v4281_v18 = vadd.f32 %v4198_v1, %v9569_v37  ;;  %v9654_v50 = vadd.f32 %v4701_v57, %v4273_v55 }
 0x265   : > { %v8018_v19 = vpop.f32.mrf.mxu1  ;;  %v8062_v56 = vpop.f32.mrf.mxu0 }
 0x266   : > { %v4284_v23 = vadd.f32 %v8018_v19, %v9572_v59  ;;  %v9657_v36 = vadd.f32 %v8062_v56, %v4276_v7  ;;  %v8455_v7 = vmov 0.0  }
 0x267   : > { %v4201_v51 = vpop.f32.mrf.mxu1  ;;  %v4704_v10 = vpop.f32.mrf.mxu0  ;;  %6543 = vst [vmem:[%s9670_s28 + $0x2] sm:$0x3f] %v8455_v7 }
 0x268   : > { %v4282_v16 = vadd.f32 %v4201_v51, %v9575_v11  ;;  %v9660_v34 = vadd.f32 %v4704_v10, %v4274_v20 }
 0x269   : > { %v8065_v5 = vpop.f32.mrf.mxu0  ;;  %v8089_v39 = vpop.f32.mrf.mxu1 }
 0x26a   : > { %v9663_v43 = vadd.f32 %v8065_v5, %v4279_v27  ;;  %v5455_v53 = vadd.f32 %v8089_v39, %v9579_v35 }
 0x26b   : > { %v4717_v37 = vpop.f32.mrf.mxu0  ;;  %v5274_v55 = vpop.f32.mrf.mxu1 }
 0x26c   : > { %v9665_v9 = vadd.f32 %v4717_v37, %v4277_v28 }
 0x26d   : > { %v8066_v59 = vpop.f32.mrf.mxu0  ;;  %v8090_v11 = vpop.f32.mrf.mxu1 }
 0x26e   : > { %v9673_v62 = vadd.f32 %v8066_v59, %v4280_v63  ;;  %v5456_v51 = vadd.f32 %v8090_v11, %v9585_v45 }
 0x26f   : > { %v4720_v17 = vpop.f32.mrf.mxu0  ;;  %v5277_v20 = vpop.f32.mrf.mxu1 }
 0x270   : > { %v9675_v24 = vadd.f32 %v4720_v17, %v4278_v26  ;;  %v5454_v37 = vadd.f32 %v5277_v20, %v9588_v48 }
 0x271   : > { %v8069_v42 = vpop.f32.mrf.mxu0  ;;  %v8093_v27 = vpop.f32.mrf.mxu1 }
 0x272   : > { %v9677_v13 = vadd.f32 %v8069_v42, %v4283_v44  ;;  %v5453_v44 = vadd.f32 %v5274_v55, %v9582_v2  ;;  %v5459_v2 = vadd.f32 %v8093_v27, %v9591_v29 }
 0x273   : > { %v4733_v8 = vpop.f32.mrf.mxu0  ;;  %v5290_v28 = vpop.f32.mrf.mxu1 }
 0x274   : > { %v9680_v3 = vadd.f32 %v4733_v8, %v4281_v18  ;;  %v5457_v55 = vadd.f32 %v5290_v28, %v9594_v33 }
 0x275   : > { %v8070_v49 = vpop.f32.mrf.mxu0  ;;  %v8094_v14 = vpop.f32.mrf.mxu1 }
 0x276   : > { %v9682_v52 = vadd.f32 %v8070_v49, %v4284_v23 }
 0x277   : > { %v4736_v63 = vpop.f32.mrf.mxu0  ;;  %v5293_v25 = vpop.f32.mrf.mxu1 }
 0x278   : > { %v9685_v26 = vadd.f32 %v4736_v63, %v4282_v16  ;;  %v5460_v63 = vadd.f32 %v8094_v14, %v9597_v32 }
 0x279   : > { %v8097_v1 = vpop.f32.mrf.mxu1  ;;  %v8141_v57 = vpop.f32.mrf.mxu0 }
 0x27a   : > { %v5991_v19 = vadd.f32 %v8141_v57, %v5455_v53 }
 0x27b   : > { %v5306_v56 = vpop.f32.mrf.mxu1  ;;  %v5810_v18 = vpop.f32.mrf.mxu0 }
 0x27c   : > { %6027 = vst [vmem:[#allocation3 + $0x10] sm:$0xff] %v5991_v19  ;;  %v5989_v23 = vadd.f32 %v5810_v18, %v5453_v44  ;;  %v5458_v18 = vadd.f32 %v5293_v25, %v9600_v6 }
 0x27d   : > { %v8098_v10 = vpop.f32.mrf.mxu1  ;;  %v8142_v5 = vpop.f32.mrf.mxu0 }
 0x27e   : > { %v5992_v59 = vadd.f32 %v8142_v5, %v5456_v51  ;;  %v6081_v7 = vmul.f32 %v5989_v23, %v5989_v23  ;;  %v5463_v5 = vadd.f32 %v8097_v1, %v9603_v21  ;;  %v5464_v6 = vadd.f32 %v8098_v10, %v9609_v54 }
 0x27f   : > { %v5309_v35 = vpop.f32.mrf.mxu1  ;;  %v5813_v16 = vpop.f32.mrf.mxu0 }
 0x280   : > { %6028 = vst [vmem:[#allocation3 + $0x18] sm:$0xff] %v5992_v59  ;;  %v5990_v39 = vadd.f32 %v5813_v16, %v5454_v37  ;;  %v5462_v21 = vadd.f32 %v5309_v35, %v9612_v4 }
 0x281   : > { %v8101_v45 = vpop.f32.mrf.mxu1  ;;  %v8145_v11 = vpop.f32.mrf.mxu0 }
 0x282   : > { %v7343_v48 = vpack.c.bf16 %v5990_v39, %v5989_v23  ;;  %v6073_v17 = vadd.f32 %v5990_v39, %v5989_v23  ;;  %v6082_v20 = vmul.f32 %v5990_v39, %v5990_v39  ;;  %v5995_v42 = vadd.f32 %v8145_v11, %v5459_v2 }
 0x283   : > { %v5322_v8 = vpop.f32.mrf.mxu1  ;;  %v5826_v49 = vpop.f32.mrf.mxu0  ;;  %v5461_v11 = vadd.f32 %v5306_v56, %v9606_v47 }
 0x284   : > { %7344 = vst [vmem:[%s9695_s7] sm:$0xff] %v7343_v48   ;;  %v6074_v29 = vrot.slane %v6073_v17, 4  ;;  %v6083_v33 = vadd.f32 %v6082_v20, %v6081_v7  ;;  %v5993_v27 = vadd.f32 %v5826_v49, %v5457_v55  ;;  %6031 = vst [vmem:[#allocation3 + $0x30] sm:$0xff] %v5995_v42  ;;  %v5467_v20 = vadd.f32 %v8101_v45, %v9615_v0 }
 0x285   : > { %v8102_v28 = vpop.f32.mrf.mxu1  ;;  %v8146_v53 = vpop.f32.mrf.mxu0  ;;  %v5465_v42 = vadd.f32 %v5322_v8, %v9618_v40 }
 0x286   : > { %v6075_v57 = vadd.f32 %v6074_v29, %v6073_v17  ;;  %v6084_v44 = vrot.slane %v6083_v33, 4  ;;  %6029 = vst [vmem:[#allocation3 + $0x20] sm:$0xff] %v5993_v27  ;;  %v5996_v19 = vadd.f32 %v8146_v53, %v5460_v63  ;;  %v9709_v53 = vadd.f32 %v8102_v28, %v9621_v22 }
 0x287   : > { %v5325_v51 = vpop.f32.mrf.mxu1  ;;  %v5829_v23 = vpop.f32.mrf.mxu0  ;;  %v6091_v25 = vld [vmem:[#allocation3 + $0x12] sm:$0xff] }
 0x288   : > { %v6076_v37 = vrot.slane %v6075_v57, 2  ;;  %v6085_v59 = vadd.f32 %v6084_v44, %v6083_v33  ;;  %6032 = vst [vmem:[#allocation3 + $0x38] sm:$0xff] %v5996_v19  ;;  %v5994_v32 = vadd.f32 %v5829_v23, %v5458_v18  ;;  %v6111_v54 = vmul.f32 %v6091_v25, %v6091_v25 }
 0x289   : > { %v8105_v14 = vpop.f32.mrf.mxu1  ;;  %v8149_v16 = vpop.f32.mrf.mxu0  ;;  %v9712_v35 = vadd.f32 %v5325_v51, %v9624_v12 }
 0x28a   : > { %v6077_v39 = vadd.f32 %v6076_v37, %v6075_v57  ;;  %v6086_v2 = vrot.slane %v6085_v59, 2  ;;  %v9701_v55 = vadd.f32 %v8149_v16, %v5463_v5  ;;  %6030 = vst [vmem:[#allocation3 + $0x28] sm:$0xff] %v5994_v32  ;;  %v9716_v57 = vadd.f32 %v8105_v14, %v9627_v60 }
 0x28b   : > { %v5338_v7 = vpop.f32.mrf.mxu1  ;;  %v5842_v48 = vpop.f32.mrf.mxu0 }
 0x28c   : > { %v6087_v1 = vadd.f32 %v6086_v2, %v6085_v59  ;;  %v6078_v17 = vrot.slane %v6077_v39, 1  ;;  %v5997_v63 = vadd.f32 %v5842_v48, %v5461_v11  ;;  %v6202_v44 = vmul.f32 %v9701_v55, %v9701_v55 }
 0x28d   : > { %v6092_v49 = vld [vmem:[#allocation3 + $0x1a] sm:$0xff]  ;;  %v8106_v29 = vpop.f32.mrf.mxu1  ;;  %v8150_v33 = vpop.f32.mrf.mxu0  ;;  %v9721_v22 = vadd.f32 %v5338_v7, %v9630_v61 }
 0x28e   : > { %v6088_v47 = vrot.slane %v6087_v1, 1  ;;  %v7348_v56 = vpack.c.bf16 %v6092_v49, %v6091_v25  ;;  %v6103_v27 = vadd.f32 %v6092_v49, %v6091_v25  ;;  %v6112_v10 = vmul.f32 %v6092_v49, %v6092_v49  ;;  %6033 = vst [vmem:[#allocation3 + $0x40] sm:$0xff] %v5997_v63 }
 0x28f   : > { %v6151_v4 = vld [vmem:[#allocation3 + $0x36] sm:$0xff]  ;;  %v6000_v0 = vadd.f32 %v8150_v33, %v5464_v6  ;;  %v5341_v40 = vpop.f32.mrf.mxu1  ;;  %v5845_v45 = vpop.f32.mrf.mxu0  ;;  %v9723_v28 = vadd.f32 %v6078_v17, %v6077_v39  ;;  %v9726_v12 = vadd.f32 %v8106_v29, %v9633_v38 }
 0x290   : > { %7458 = vst [vmem:[%s9695_s7 + $0x8] sm:$0xff] %v7348_v56   ;;  %v6104_v8 = vrot.slane %v6103_v27, 4  ;;  %v6113_v19 = vadd.f32 %v6112_v10, %v6111_v54  ;;  %v5998_v18 = vadd.f32 %v5845_v45, %v5462_v21  ;;  %v9730_v5 = vadd.f32 %v6088_v47, %v6087_v1 }
 0x291   : > { %6036 = vst [vmem:[#allocation3 + $0x58] sm:$0xff] %v6000_v0  ;;  %v9728_v51 = vpop.f32.mrf.mxu1  ;;  %v8153_v23 = vpop.f32.mrf.mxu0  ;;  %v6171_v37 = vmul.f32 %v6151_v4, %v6151_v4  ;;  %v6121_v59 = vld [vmem:[#allocation3 + $0x24] sm:$0xff]  ;;  %v6122_v32 = vld [vmem:[#allocation3 + $0x2c] sm:$0xff]  ;;  %v9736_v17 = vadd.f32 %v5341_v40, %v9636_v31 }
 0x292   : > { %v6105_v60 = vadd.f32 %v6104_v8, %v6103_v27  ;;  %v6003_v61 = vadd.f32 %v8153_v23, %v5467_v20  ;;  %v6114_v14 = vrot.slane %v6113_v19, 4  ;;  %v7353_v16 = vpack.c.bf16 %v6122_v32, %v6121_v59 }
 0x293   : > { %v6133_v39 = vadd.f32 %v6122_v32, %v6121_v59  ;;  %v6141_v2 = vmul.f32 %v6121_v59, %v6121_v59  ;;  %v5354_v11 = vpop.f32.mrf.mxu1  ;;  %v5858_v38 = vpop.f32.mrf.mxu0  ;;  %v6142_v48 = vmul.f32 %v6122_v32, %v6122_v32  ;;  %v7363_v6 = vpack.c.bf16 %v9701_v55, %v5998_v18 }
 0x294   : > { %v6106_v7 = vrot.slane %v6105_v60, 2  ;;  %v6193_v25 = vadd.f32 %v9701_v55, %v5998_v18  ;;  %6039 = vst [vmem:[#allocation3 + $0x70] sm:$0xff] %v6003_v61  ;;  %v6115_v21 = vadd.f32 %v6114_v14, %v6113_v19  ;;  %7459 = vst [vmem:[%s9695_s7 + $0x10] sm:$0xff] %v7353_v16   ;;  %v6201_v20 = vmul.f32 %v5998_v18, %v5998_v18 }
 0x295   : > { %v6134_v1 = vrot.slane %v6133_v39, 4  ;;  %v8110_v49 = vpop.f32.mrf.mxu1  ;;  %v9738_v63 = vpop.f32.mrf.mxu0  ;;  %v6143_v33 = vadd.f32 %v6142_v48, %v6141_v2  ;;  %v6152_v47 = vld [vmem:[#allocation3 + $0x3e] sm:$0xff]  ;;  %7461 = vst [vmem:[%s9695_s7 + $0x20] sm:$0xff] %v7363_v6   ;;  %v6001_v27 = vadd.f32 %v5858_v38, %v5465_v42 }
 0x296   : > { %v6107_v29 = vadd.f32 %v6106_v7, %v6105_v60  ;;  %v6194_v56 = vrot.slane %v6193_v25, 4  ;;  %v6116_v54 = vrot.slane %v6115_v21, 2  ;;  %v7358_v10 = vpack.c.bf16 %v6152_v47, %v6151_v4 }
 0x297   : > { %v6135_v55 = vadd.f32 %v6134_v1, %v6133_v39  ;;  %v6163_v0 = vadd.f32 %v6152_v47, %v6151_v4  ;;  %v9741_v45 = vpop.f32.mrf.mxu1  ;;  %v5861_v8 = vpop.f32.mrf.mxu0  ;;  %v6144_v40 = vrot.slane %v6143_v33, 4  ;;  %v6172_v19 = vmul.f32 %v6152_v47, %v6152_v47  ;;  %6037 = vst [vmem:[#allocation3 + $0x60] sm:$0xff] %v6001_v27 }
 0x298   : > { %v6108_v31 = vrot.slane %v6107_v29, 1  ;;  %v6195_v18 = vadd.f32 %v6194_v56, %v6193_v25  ;;  %v6117_v23 = vadd.f32 %v6116_v54, %v6115_v21  ;;  %7460 = vst [vmem:[%s9695_s7 + $0x18] sm:$0xff] %v7358_v10   ;;  %v6203_v32 = vadd.f32 %v6202_v44, %v6201_v20 }
 0x299   : > { %v6136_v60 = vrot.slane %v6135_v55, 2  ;;  %v6164_v59 = vrot.slane %v6163_v0, 4  ;;  %v8113_v61 = vpop.f32.mrf.mxu1  ;;  %v8157_v14 = vpop.f32.mrf.mxu0  ;;  %v6145_v16 = vadd.f32 %v6144_v40, %v6143_v33  ;;  %v6173_v39 = vadd.f32 %v6172_v19, %v6171_v37 }
 0x29a   : > { %v6109_v42 = vadd.f32 %v6108_v31, %v6107_v29  ;;  %v6196_v2 = vrot.slane %v6195_v18, 2  ;;  %v6118_v4 = vrot.slane %v6117_v23, 1  ;;  %v6204_v48 = vrot.slane %v6203_v32, 4 }
 0x29b   : > { %v6137_v38 = vadd.f32 %v6136_v60, %v6135_v55  ;;  %v6165_v7 = vadd.f32 %v6164_v59, %v6163_v0  ;;  %v5370_v6 = vpop.f32.mrf.mxu1  ;;  %v5874_v1 = vpop.f32.mrf.mxu0  ;;  %v6146_v47 = vrot.slane %v6145_v16, 2  ;;  %v6174_v25 = vrot.slane %v6173_v39, 4 }
 0x29c   : > { %v6197_v56 = vadd.f32 %v6196_v2, %v6195_v18  ;;  %v5475_v21 = vadd.f32 %v9728_v51, %v9639_v46  ;;  %v6119_v27 = vadd.f32 %v6118_v4, %v6117_v23  ;;  %v6205_v54 = vadd.f32 %v6204_v48, %v6203_v32 }
 0x29d   : > { %v6138_v44 = vrot.slane %v6137_v38, 1  ;;  %v6166_v20 = vrot.slane %v6165_v7, 2  ;;  %v8114_v29 = vpop.f32.mrf.mxu1  ;;  %v8158_v33 = vpop.f32.mrf.mxu0  ;;  %v6147_v37 = vadd.f32 %v6146_v47, %v6145_v16  ;;  %v6175_v10 = vadd.f32 %v6174_v25, %v6173_v39 }
 0x29e   : > { %v6198_v31 = vrot.slane %v6197_v56, 1  ;;  %v5473_v55 = vadd.f32 %v5354_v11, %v9642_v30  ;;  %v6110_v0 = vadd.f32 %v6109_v42, %v9723_v28  ;;  %v6206_v60 = vrot.slane %v6205_v54, 2  ;;  %v9748_v18 = vld [vmem:[#allocation3 + $0x5a] sm:$0xff] }
 0x29f   : > { %v6139_v40 = vadd.f32 %v6138_v44, %v6137_v38  ;;  %v6167_v19 = vadd.f32 %v6166_v20, %v6165_v7  ;;  %v5373_v59 = vpop.f32.mrf.mxu1  ;;  %v5877_v46 = vpop.f32.mrf.mxu0  ;;  %v6120_v51 = vadd.f32 %v6119_v27, %v9730_v5  ;;  %v6148_v23 = vrot.slane %v6147_v37, 1 }
 0x2a0   : > { %v6176_v32 = vrot.slane %v6175_v10, 2  ;;  %v5476_v2 = vadd.f32 %v8110_v49, %v9645_v58  ;;  %v6199_v39 = vadd.f32 %v6198_v31, %v6197_v56  ;;  %v6207_v4 = vadd.f32 %v6206_v60, %v6205_v54 }
 0x2a1   : > { %v6168_v16 = vrot.slane %v6167_v19, 1  ;;  %v6004_v30 = vadd.f32 %v9738_v63, %v9709_v53  ;;  %v8117_v28 = vpop.f32.mrf.mxu1  ;;  %v8161_v11 = vpop.f32.mrf.mxu0  ;;  %v6149_v42 = vadd.f32 %v6148_v23, %v6147_v37  ;;  %v9756_v7 = vmul.f32 %v9748_v18, %v9748_v18 }
 0x2a2   : > { %v6177_v38 = vadd.f32 %v6176_v32, %v6175_v10  ;;  %v6002_v5 = vadd.f32 %v5861_v8, %v9712_v35  ;;  %v6140_v48 = vadd.f32 %v6139_v40, %v6110_v0  ;;  %v6208_v25 = vrot.slane %v6207_v4, 1 }
 0x2a3   : > { %v6169_v47 = vadd.f32 %v6168_v16, %v6167_v19  ;;  %6040 = vst [vmem:[#allocation3 + $0x78] sm:$0xff] %v6004_v30  ;;  %v6007_v58 = vadd.f32 %v8157_v14, %v9716_v57  ;;  %v5386_v49 = vpop.f32.mrf.mxu1  ;;  %v5890_v56 = vpop.f32.mrf.mxu0  ;;  %v5474_v53 = vadd.f32 %v9741_v45, %v9648_v41  ;;  %v5479_v63 = vadd.f32 %v8113_v61, %v9651_v15 }
 0x2a4   : > { %v6178_v27 = vrot.slane %v6177_v38, 1  ;;  %6038 = vst [vmem:[#allocation3 + $0x68] sm:$0xff] %v6002_v5  ;;  %v6005_v44 = vadd.f32 %v5874_v1, %v9721_v22  ;;  %v6150_v20 = vadd.f32 %v6149_v42, %v6120_v51  ;;  %v6209_v35 = vadd.f32 %v6208_v25, %v6207_v4 }
 0x2a5   : > { %v6170_v54 = vadd.f32 %v6169_v47, %v6140_v48  ;;  %6043 = vst [vmem:[#allocation3 + $0x90] sm:$0xff] %v6007_v58  ;;  %v9765_v8 = vadd.f32 %v5370_v6, %v9654_v50  ;;  %v8118_v37 = vpop.f32.mrf.mxu1  ;;  %v8162_v57 = vpop.f32.mrf.mxu0  ;;  %v6321_v10 = vmul.f32 %v6007_v58, %v6007_v58  ;;  %v6008_v31 = vadd.f32 %v8158_v33, %v9726_v12 }
 0x2a6   : > { %v6179_v14 = vadd.f32 %v6178_v27, %v6177_v38  ;;  %6041 = vst [vmem:[#allocation3 + $0x80] sm:$0xff] %v6005_v44  ;;  %v6006_v41 = vadd.f32 %v5877_v46, %v9736_v17  ;;  %v9772_v15 = vadd.f32 %v8114_v29, %v9657_v36  ;;  %v9775_v22 = vadd.f32 %v5373_v59, %v9660_v34 }
 0x2a7   : > { %v9769_v45 = vadd.f32 %v6199_v39, %v6170_v54  ;;  %v6011_v61 = vadd.f32 %v8161_v11, %v5475_v21  ;;  %v5389_v50 = vpop.f32.mrf.mxu1  ;;  %v5893_v6 = vpop.f32.mrf.mxu0  ;;  %6044 = vst [vmem:[#allocation3 + $0x98] sm:$0xff] %v6008_v31  ;;  %v7383_v0 = vpack.c.bf16 %v6008_v31, %v6007_v58  ;;  %v6313_v40 = vadd.f32 %v6008_v31, %v6007_v58 }
 0x2a8   : > { %v6180_v1 = vadd.f32 %v6179_v14, %v6150_v20  ;;  %v6322_v19 = vmul.f32 %v6008_v31, %v6008_v31  ;;  %6042 = vst [vmem:[#allocation3 + $0x88] sm:$0xff] %v6006_v41  ;;  %v9778_v12 = vadd.f32 %v8117_v28, %v9663_v43  ;;  %v9781_v36 = vadd.f32 %v5386_v49, %v9665_v9 }
 0x2a9   : > { %6047 = vst [vmem:[#allocation3 + $0xb0] sm:$0xff] %v6011_v61  ;;  %v6009_v17 = vadd.f32 %v5890_v56, %v5473_v55  ;;  %v6012_v34 = vadd.f32 %v8162_v57, %v5476_v2  ;;  %v8165_v29 = vpop.f32.mrf.mxu0  ;;  %7465 = vst [vmem:[%s9695_s7 + $0x40] sm:$0xff] %v7383_v0   ;;  %v6314_v60 = vrot.slane %v6313_v40, 4  ;;  %v6010_v46 = vadd.f32 %v5893_v6, %v5474_v53  ;;  %v8121_v55 = vpop.f32.mrf.mxu1 }
 0x2aa   : > { %v9783_v21 = vadd.f32 %v6209_v35, %v6180_v1  ;;  %v6242_v33 = vld [vmem:[#allocation3 + $0x74] sm:$0xff]  ;;  %v6323_v59 = vadd.f32 %v6322_v19, %v6321_v10  ;;  %v9787_v43 = vadd.f32 %v8118_v37, %v9673_v62  ;;  %v9790_v9 = vadd.f32 %v5389_v50, %v9675_v24 }
 0x2ab   : > { %v6262_v51 = vmul.f32 %v6242_v33, %v6242_v33  ;;  %v6212_v23 = vld [vmem:[#allocation3 + $0x62] sm:$0xff]  ;;  %v6241_v32 = vld [vmem:[#allocation3 + $0x6c] sm:$0xff]  ;;  %6045 = vst [vmem:[#allocation3 + $0xa0] sm:$0xff] %v6009_v17  ;;  %6048 = vst [vmem:[#allocation3 + $0xb8] sm:$0xff] %v6012_v34  ;;  %v6015_v2 = vadd.f32 %v8165_v29, %v5479_v63  ;;  %v9792_v16 = vpop.f32.mrf.mxu0  ;;  %v6315_v38 = vadd.f32 %v6314_v60, %v6313_v40  ;;  %v5402_v50 = vpop.f32.mrf.mxu1 }
 0x2ac   : > { %v7368_v39 = vpack.c.bf16 %v6212_v23, %v9748_v18  ;;  %v6223_v4 = vadd.f32 %v6212_v23, %v9748_v18  ;;  %v6232_v30 = vmul.f32 %v6212_v23, %v6212_v23  ;;  %v7373_v28 = vpack.c.bf16 %v6242_v33, %v6241_v32  ;;  %6046 = vst [vmem:[#allocation3 + $0xa8] sm:$0xff] %v6010_v46 }
 0x2ad   : > { %v6253_v11 = vadd.f32 %v6242_v33, %v6241_v32  ;;  %v6261_v62 = vmul.f32 %v6241_v32, %v6241_v32  ;;  %v6271_v42 = vld [vmem:[#allocation3 + $0x7e] sm:$0xff]  ;;  %v6324_v5 = vrot.slane %v6323_v59, 4  ;;  %6051 = vst [vmem:[#allocation3 + $0xd0] sm:$0xff] %v6015_v2  ;;  %v9796_v24 = vpop.f32.mrf.mxu0  ;;  %v9802_v58 = vadd.f32 %v8121_v55, %v9677_v13 }
 0x2ae   : > { %7462 = vst [vmem:[%s9695_s7 + $0x28] sm:$0xff] %v7368_v39   ;;  %v6224_v48 = vrot.slane %v6223_v4, 4  ;;  %v6233_v47 = vadd.f32 %v6232_v30, %v9756_v7  ;;  %7463 = vst [vmem:[%s9695_s7 + $0x30] sm:$0xff] %v7373_v28   ;;  %v6291_v25 = vmul.f32 %v6271_v42, %v6271_v42  ;;  %v6316_v56 = vrot.slane %v6315_v38, 2 }
 0x2af   : > { %v6254_v18 = vrot.slane %v6253_v11, 4  ;;  %v6263_v49 = vadd.f32 %v6262_v51, %v6261_v62  ;;  %v6325_v27 = vadd.f32 %v6324_v5, %v6323_v59  ;;  %v6272_v53 = vld [vmem:[#allocation3 + $0x86] sm:$0xff]  ;;  %v9804_v63 = vpop.f32.mrf.mxu0  ;;  %v9812_v51 = vadd.f32 %v5402_v50, %v9680_v3  ;;  %v8122_v3 = vpop.f32.mrf.mxu1 }
 0x2b0   : > { %v6225_v44 = vadd.f32 %v6224_v48, %v6223_v4  ;;  %v6234_v20 = vrot.slane %v6233_v47, 4  ;;  %v7378_v54 = vpack.c.bf16 %v6272_v53, %v6271_v42  ;;  %v6283_v35 = vadd.f32 %v6272_v53, %v6271_v42 }
 0x2b1   : > { %v6255_v37 = vadd.f32 %v6254_v18, %v6253_v11  ;;  %v6264_v57 = vrot.slane %v6263_v49, 4  ;;  %v6317_v7 = vadd.f32 %v6316_v56, %v6315_v38  ;;  %v6326_v14 = vrot.slane %v6325_v27, 2  ;;  %v9806_v10 = vpop.f32.mrf.mxu0 }
 0x2b2   : > { %v6226_v13 = vrot.slane %v6225_v44, 2  ;;  %v6235_v31 = vadd.f32 %v6234_v20, %v6233_v47  ;;  %7464 = vst [vmem:[%s9695_s7 + $0x38] sm:$0xff] %v7378_v54   ;;  %v6284_v41 = vrot.slane %v6283_v35, 4  ;;  %v6292_v61 = vmul.f32 %v6272_v53, %v6272_v53 }
 0x2b3   : > { %v6256_v6 = vrot.slane %v6255_v37, 2  ;;  %v6265_v1 = vadd.f32 %v6264_v57, %v6263_v49  ;;  %v6318_v0 = vrot.slane %v6317_v7, 1  ;;  %v6327_v40 = vadd.f32 %v6326_v14, %v6325_v27  ;;  %v9809_v19 = vpop.f32.mrf.mxu0  ;;  %v6331_v4 = vld [vmem:[#allocation3 + $0xa2] sm:$0xff]  ;;  %v6332_v30 = vld [vmem:[#allocation3 + $0xaa] sm:$0xff] }
 0x2b4   : > { %v6227_v17 = vadd.f32 %v6226_v13, %v6225_v44  ;;  %v6236_v34 = vrot.slane %v6235_v31, 2  ;;  %v6285_v29 = vadd.f32 %v6284_v41, %v6283_v35  ;;  %v6293_v33 = vadd.f32 %v6292_v61, %v6291_v25 }
 0x2b5   : > { %v6257_v60 = vadd.f32 %v6256_v6, %v6255_v37  ;;  %v6266_v59 = vrot.slane %v6265_v1, 2  ;;  %v6328_v46 = vrot.slane %v6327_v40, 1  ;;  %v8170_v23 = vpop.f32.mrf.mxu0  ;;  %v6319_v62 = vadd.f32 %v6318_v0, %v6317_v7  ;;  %v5405_v6 = vpop.f32.mrf.mxu1 }
 0x2b6   : > { %v6228_v32 = vrot.slane %v6227_v17, 1  ;;  %v6237_v55 = vadd.f32 %v6236_v34, %v6235_v31  ;;  %v6286_v2 = vrot.slane %v6285_v29, 2  ;;  %v6294_v39 = vrot.slane %v6293_v33, 4 }
 0x2b7   : > { %v6258_v28 = vrot.slane %v6257_v60, 1  ;;  %v6267_v11 = vadd.f32 %v6266_v59, %v6265_v1  ;;  %v9814_v42 = vadd.f32 %v6328_v46, %v6327_v40  ;;  %v5925_v38 = vpop.f32.mrf.mxu0  ;;  %v7388_v56 = vpack.c.bf16 %v6332_v30, %v6331_v4 }
 0x2b8   : > { %v6229_v5 = vadd.f32 %v6228_v32, %v6227_v17  ;;  %v6238_v48 = vrot.slane %v6237_v55, 1  ;;  %v6287_v47 = vadd.f32 %v6286_v2, %v6285_v29  ;;  %v6295_v25 = vadd.f32 %v6294_v39, %v6293_v33 }
 0x2b9   : > { %v6259_v18 = vadd.f32 %v6258_v28, %v6257_v60  ;;  %v6268_v49 = vrot.slane %v6267_v11, 1  ;;  %v6343_v27 = vadd.f32 %v6332_v30, %v6331_v4  ;;  %v8173_v53 = vpop.f32.mrf.mxu0  ;;  %7466 = vst [vmem:[%s9695_s7 + $0x48] sm:$0xff] %v7388_v56   ;;  %v6351_v7 = vmul.f32 %v6331_v4, %v6331_v4 }
 0x2ba   : > { %v6230_v44 = vadd.f32 %v6229_v5, %v9769_v45  ;;  %v6239_v20 = vadd.f32 %v6238_v48, %v6237_v55  ;;  %v6288_v54 = vrot.slane %v6287_v47, 1  ;;  %v6296_v35 = vrot.slane %v6295_v25, 2 }
 0x2bb   : > { %v6269_v37 = vadd.f32 %v6268_v49, %v6267_v11  ;;  %v6344_v57 = vrot.slane %v6343_v27, 4  ;;  %v6352_v14 = vmul.f32 %v6332_v30, %v6332_v30  ;;  %v5938_v13 = vpop.f32.mrf.mxu0  ;;  %v6013_v45 = vadd.f32 %v9792_v16, %v9765_v8 }
 0x2bc   : > { %v6240_v31 = vadd.f32 %v6239_v20, %v9783_v21  ;;  %v6260_v41 = vadd.f32 %v6259_v18, %v6230_v44  ;;  %v6289_v61 = vadd.f32 %v6288_v54, %v6287_v47  ;;  %v6297_v50 = vadd.f32 %v6296_v35, %v6295_v25 }
 0x2bd   : > { %v6345_v1 = vadd.f32 %v6344_v57, %v6343_v27  ;;  %v6353_v0 = vadd.f32 %v6352_v14, %v6351_v7  ;;  %v5488_v40 = vadd.f32 %v8122_v3, %v9682_v52  ;;  %v8174_v17 = vpop.f32.mrf.mxu0  ;;  %v6016_v60 = vadd.f32 %v9796_v24, %v9772_v15  ;;  %6049 = vst [vmem:[#allocation3 + $0xc0] sm:$0xff] %v6013_v45 }
 0x2be   : > { %v6270_v34 = vadd.f32 %v6269_v37, %v6240_v31  ;;  %v6290_v29 = vadd.f32 %v6289_v61, %v6260_v41  ;;  %v6298_v33 = vrot.slane %v6297_v50, 1  ;;  %v5486_v46 = vadd.f32 %v5405_v6, %v9685_v26 }
 0x2bf   : > { %v6346_v59 = vrot.slane %v6345_v1, 2  ;;  %v6354_v21 = vrot.slane %v6353_v0, 4  ;;  %v6014_v32 = vadd.f32 %v9804_v63, %v9775_v22  ;;  %6052 = vst [vmem:[#allocation3 + $0xd8] sm:$0xff] %v6016_v60  ;;  %v6441_v8 = vmul.f32 %v6016_v60, %v6016_v60  ;;  %v5941_v4 = vpop.f32.mrf.mxu0 }
 0x2c0   : > { %v6299_v55 = vadd.f32 %v6298_v33, %v6297_v50  ;;  %v6320_v2 = vadd.f32 %v6319_v62, %v6290_v29  ;;  %v6019_v52 = vadd.f32 %v9806_v10, %v9778_v12  ;;  %v6017_v15 = vadd.f32 %v9809_v19, %v9781_v36 }
 0x2c1   : > { %v6347_v16 = vadd.f32 %v6346_v59, %v6345_v1  ;;  %v6355_v39 = vadd.f32 %v6354_v21, %v6353_v0  ;;  %6050 = vst [vmem:[#allocation3 + $0xc8] sm:$0xff] %v6014_v32  ;;  %v6020_v24 = vadd.f32 %v8170_v23, %v9787_v43  ;;  %v6018_v22 = vadd.f32 %v5925_v38, %v9790_v9  ;;  %v6361_v9 = vld [vmem:[#allocation3 + $0xb4] sm:$0xff] }
 0x2c2   : > { %v6300_v26 = vadd.f32 %v6299_v55, %v6270_v34  ;;  %6055 = vst [vmem:[#allocation3 + $0xf0] sm:$0xff] %v6019_v52  ;;  %v6023_v63 = vadd.f32 %v8173_v53, %v9802_v58  ;;  %v6021_v30 = vadd.f32 %v5938_v13, %v9812_v51  ;;  %6053 = vst [vmem:[#allocation3 + $0xe0] sm:$0xff] %v6017_v15 }
 0x2c3   : > { %v6348_v28 = vrot.slane %v6347_v16, 1  ;;  %v6356_v12 = vrot.slane %v6355_v39, 2  ;;  %v7403_v10 = vpack.c.bf16 %v6017_v15, %v6016_v60  ;;  %v6433_v11 = vadd.f32 %v6017_v15, %v6016_v60  ;;  %6056 = vst [vmem:[#allocation3 + $0xf8] sm:$0xff] %v6020_v24  ;;  %6054 = vst [vmem:[#allocation3 + $0xe8] sm:$0xff] %v6018_v22 }
 0x2c4   : > { %v6330_v36 = vadd.f32 %v9814_v42, %v6300_v26  ;;  %v6442_v19 = vmul.f32 %v6017_v15, %v6017_v15  ;;  %6059 = vst [vmem:[#allocation3 + $0x110] sm:$0xff] %v6023_v63  ;;  %6057 = vst [vmem:[#allocation3 + $0x100] sm:$0xff] %v6021_v30  ;;  %v6024_v43 = vadd.f32 %v8174_v17, %v5488_v40  ;;  %v6362_v38 = vld [vmem:[#allocation3 + $0xbc] sm:$0xff] }
 0x2c5   : > { %v6022_v23 = vadd.f32 %v5941_v4, %v5486_v46  ;;  %v6349_v62 = vadd.f32 %v6348_v28, %v6347_v16  ;;  %v6357_v58 = vadd.f32 %v6356_v12, %v6355_v39  ;;  %7469 = vst [vmem:[%s9695_s7 + $0x60] sm:$0xff] %v7403_v10   ;;  %v6434_v51 = vrot.slane %v6433_v11, 4 }
 0x2c6   : > { %v6443_v5 = vadd.f32 %v6442_v19, %v6441_v8  ;;  %6060 = vst [vmem:[#allocation3 + $0x118] sm:$0xff] %v6024_v43  ;;  %v7393_v47 = vpack.c.bf16 %v6362_v38, %v6361_v9  ;;  %v6373_v25 = vadd.f32 %v6362_v38, %v6361_v9  ;;  %v6381_v42 = vmul.f32 %v6361_v9, %v6361_v9 }
 0x2c7   : > { %6058 = vst [vmem:[#allocation3 + $0x108] sm:$0xff] %v6022_v23  ;;  %v6358_v48 = vrot.slane %v6357_v58, 1  ;;  %v6382_v3 = vmul.f32 %v6362_v38, %v6362_v38  ;;  %v6435_v56 = vadd.f32 %v6434_v51, %v6433_v11  ;;  %v6350_v53 = vadd.f32 %v6349_v62, %v6320_v2 }
 0x2c8   : > { %v6391_v18 = vld [vmem:[#allocation3 + $0xc6] sm:$0xff]  ;;  %v6392_v49 = vld [vmem:[#allocation3 + $0xce] sm:$0xff]  ;;  %v6444_v27 = vrot.slane %v6443_v5, 4  ;;  %7467 = vst [vmem:[%s9695_s7 + $0x50] sm:$0xff] %v7393_v47   ;;  %v6374_v44 = vrot.slane %v6373_v25, 4 }
 0x2c9   : > { %v7398_v20 = vpack.c.bf16 %v6392_v49, %v6391_v18  ;;  %v6403_v54 = vadd.f32 %v6392_v49, %v6391_v18  ;;  %v6383_v35 = vadd.f32 %v6382_v3, %v6381_v42  ;;  %v6411_v37 = vmul.f32 %v6391_v18, %v6391_v18 }
 0x2ca   : > { %v6412_v57 = vmul.f32 %v6392_v49, %v6392_v49  ;;  %v6436_v7 = vrot.slane %v6435_v56, 2  ;;  %v6452_v14 = vld [vmem:[#allocation3 + $0xf2] sm:$0xff]  ;;  %v6359_v13 = vadd.f32 %v6358_v48, %v6357_v58  ;;  %v6375_v31 = vadd.f32 %v6374_v44, %v6373_v25  ;;  %v6451_v50 = vld [vmem:[#allocation3 + $0xea] sm:$0xff] }
 0x2cb   : > { %7468 = vst [vmem:[%s9695_s7 + $0x58] sm:$0xff] %v7398_v20   ;;  %v6404_v41 = vrot.slane %v6403_v54, 4  ;;  %v6445_v61 = vadd.f32 %v6444_v27, %v6443_v5  ;;  %v6384_v6 = vrot.slane %v6383_v35, 4  ;;  %v6472_v45 = vmul.f32 %v6452_v14, %v6452_v14  ;;  %v6481_v15 = vld [vmem:[#allocation3 + $0xfc] sm:$0xff] }
 0x2cc   : > { %v6413_v1 = vadd.f32 %v6412_v57, %v6411_v37  ;;  %v6437_v0 = vadd.f32 %v6436_v7, %v6435_v56  ;;  %v6376_v40 = vrot.slane %v6375_v31, 2  ;;  %v7408_v29 = vpack.c.bf16 %v6452_v14, %v6451_v50 }
 0x2cd   : > { %v6405_v17 = vadd.f32 %v6404_v41, %v6403_v54  ;;  %v6446_v34 = vrot.slane %v6445_v61, 2  ;;  %v6385_v33 = vadd.f32 %v6384_v6, %v6383_v35  ;;  %v6463_v21 = vadd.f32 %v6452_v14, %v6451_v50  ;;  %v6512_v47 = vld [vmem:[#allocation3 + $0x116] sm:$0xff] }
 0x2ce   : > { %v6414_v60 = vrot.slane %v6413_v1, 4  ;;  %v6438_v59 = vrot.slane %v6437_v0, 1  ;;  %v6377_v46 = vadd.f32 %v6376_v40, %v6375_v31  ;;  %7470 = vst [vmem:[%s9695_s7 + $0x68] sm:$0xff] %v7408_v29   ;;  %v6471_v2 = vmul.f32 %v6451_v50, %v6451_v50  ;;  %v6482_v10 = vld [vmem:[#allocation3 + $0x104] sm:$0xff]  ;;  %v6511_v51 = vld [vmem:[#allocation3 + $0x10e] sm:$0xff] }
 0x2cf   : > { %v6406_v32 = vrot.slane %v6405_v17, 2  ;;  %v6447_v55 = vadd.f32 %v6446_v34, %v6445_v61  ;;  %v6360_v8 = vadd.f32 %v6359_v13, %v6330_v36  ;;  %v6386_v52 = vrot.slane %v6385_v33, 2 }
 0x2d0   : > { %v6415_v16 = vadd.f32 %v6414_v60, %v6413_v1  ;;  %v6464_v39 = vrot.slane %v6463_v21, 4  ;;  %v6378_v24 = vrot.slane %v6377_v46, 1  ;;  %v6473_v22 = vadd.f32 %v6472_v45, %v6471_v2 }
 0x2d1   : > { %v6407_v4 = vadd.f32 %v6406_v32, %v6405_v17  ;;  %v6448_v26 = vrot.slane %v6447_v55, 1  ;;  %v6387_v63 = vadd.f32 %v6386_v52, %v6385_v33  ;;  %v6439_v28 = vadd.f32 %v6438_v59, %v6437_v0 }
 0x2d2   : > { %v6416_v30 = vrot.slane %v6415_v16, 2  ;;  %v6465_v12 = vadd.f32 %v6464_v39, %v6463_v21  ;;  %v6379_v11 = vadd.f32 %v6378_v24, %v6377_v46  ;;  %v6474_v43 = vrot.slane %v6473_v22, 4 }
 0x2d3   : > { %v6408_v19 = vrot.slane %v6407_v4, 1  ;;  %v6501_v23 = vmul.f32 %v6481_v15, %v6481_v15  ;;  %v6388_v9 = vrot.slane %v6387_v63, 1  ;;  %v6449_v62 = vadd.f32 %v6448_v26, %v6447_v55 }
 0x2d4   : > { %v6417_v36 = vadd.f32 %v6416_v30, %v6415_v16  ;;  %v6466_v58 = vrot.slane %v6465_v12, 2  ;;  %v6380_v38 = vadd.f32 %v6379_v11, %v6350_v53  ;;  %v6475_v48 = vadd.f32 %v6474_v43, %v6473_v22 }
 0x2d5   : > { %v6409_v5 = vadd.f32 %v6408_v19, %v6407_v4  ;;  %v7413_v25 = vpack.c.bf16 %v6482_v10, %v6481_v15  ;;  %v6389_v42 = vadd.f32 %v6388_v9, %v6387_v63  ;;  %v6493_v49 = vadd.f32 %v6482_v10, %v6481_v15 }
 0x2d6   : > { %v6418_v3 = vrot.slane %v6417_v36, 1  ;;  %v6467_v18 = vadd.f32 %v6466_v58, %v6465_v12  ;;  %v6476_v27 = vrot.slane %v6475_v48, 2  ;;  %v6502_v44 = vmul.f32 %v6482_v10, %v6482_v10 }
 0x2d7   : > { %v6410_v56 = vadd.f32 %v6409_v5, %v6380_v38  ;;  %7471 = vst [vmem:[%s9695_s7 + $0x70] sm:$0xff] %v7413_v25   ;;  %v7418_v20 = vpack.c.bf16 %v6512_v47, %v6511_v51  ;;  %v6390_v54 = vadd.f32 %v6389_v42, %v6360_v8  ;;  %v6532_v37 = vmul.f32 %v6512_v47, %v6512_v47 }
 0x2d8   : > { %v6419_v35 = vadd.f32 %v6418_v3, %v6417_v36  ;;  %v6494_v57 = vrot.slane %v6493_v49, 4  ;;  %v6477_v53 = vadd.f32 %v6476_v27, %v6475_v48  ;;  %v6503_v14 = vadd.f32 %v6502_v44, %v6501_v23 }
 0x2d9   : > { %v6440_v7 = vadd.f32 %v6439_v28, %v6410_v56  ;;  %7472 = vst [vmem:[%s9695_s7 + $0x78] sm:$0xff] %v7418_v20   ;;  %v6523_v13 = vadd.f32 %v6512_v47, %v6511_v51  ;;  %v6468_v41 = vrot.slane %v6467_v18, 1  ;;  %v6531_v50 = vmul.f32 %v6511_v51, %v6511_v51 }
 0x2da   : > { %v6420_v31 = vadd.f32 %v6419_v35, %v6390_v54  ;;  %v6495_v61 = vadd.f32 %v6494_v57, %v6493_v49  ;;  %v6504_v6 = vrot.slane %v6503_v14, 4  ;;  %v6478_v17 = vrot.slane %v6477_v53, 1 }
 0x2db   : > { %v6524_v1 = vrot.slane %v6523_v13, 4  ;;  %v6533_v40 = vadd.f32 %v6532_v37, %v6531_v50  ;;  %v6469_v33 = vadd.f32 %v6468_v41, %v6467_v18 }
 0x2dc   : > { %v6450_v0 = vadd.f32 %v6449_v62, %v6420_v31  ;;  %v6496_v45 = vrot.slane %v6495_v61, 2  ;;  %v6505_v34 = vadd.f32 %v6504_v6, %v6503_v14  ;;  %v6479_v2 = vadd.f32 %v6478_v17, %v6477_v53 }
 0x2dd   : > { %v6525_v29 = vadd.f32 %v6524_v1, %v6523_v13  ;;  %v6534_v59 = vrot.slane %v6533_v40, 4  ;;  %v6470_v16 = vadd.f32 %v6469_v33, %v6440_v7 }
 0x2de   : > { %v6497_v60 = vadd.f32 %v6496_v45, %v6495_v61  ;;  %v6506_v21 = vrot.slane %v6505_v34, 2  ;;  %v6480_v63 = vadd.f32 %v6479_v2, %v6450_v0 }
 0x2df   : > { %v6526_v46 = vrot.slane %v6525_v29, 2  ;;  %v6535_v55 = vadd.f32 %v6534_v59, %v6533_v40 }
 0x2e0   : > { %v6498_v32 = vrot.slane %v6497_v60, 1  ;;  %v6507_v8 = vadd.f32 %v6506_v21, %v6505_v34 }
 0x2e1   : > { %v6527_v52 = vadd.f32 %v6526_v46, %v6525_v29  ;;  %v6536_v15 = vrot.slane %v6535_v55, 2 }
 0x2e2   : > { %v6499_v39 = vadd.f32 %v6498_v32, %v6497_v60  ;;  %v6508_v24 = vrot.slane %v6507_v8, 1 }
 0x2e3   : > { %v6528_v4 = vrot.slane %v6527_v52, 1  ;;  %v6537_v22 = vadd.f32 %v6536_v15, %v6535_v55 }
 0x2e4   : > { %v6500_v26 = vadd.f32 %v6499_v39, %v6470_v16  ;;  %v6509_v30 = vadd.f32 %v6508_v24, %v6507_v8 }
 0x2e5   : > { %v6529_v28 = vadd.f32 %v6528_v4, %v6527_v52  ;;  %v6538_v12 = vrot.slane %v6537_v22, 1 }
 0x2e6   : > { %v6510_v10 = vadd.f32 %v6509_v30, %v6480_v63 }
 0x2e7   : > { %v6530_v11 = vadd.f32 %v6529_v28, %v6500_v26  ;;  %v6539_v19 = vadd.f32 %v6538_v12, %v6537_v22 }
 0x2e9   : > { %6541 = vst [vmem:[%s9670_s28] sm:$0x1] %v6530_v11  ;;  %v6540_v43 = vadd.f32 %v6539_v19, %v6510_v10 }
 0x2eb   : > { %6542 = vst [vmem:[%s9670_s28 + $0x1] sm:$0x1] %v6540_v43 }
 0x2ec PF: > { %s17_s21 = sadd.s32 1, %s8452_s21  }
 0x2ed   : > { %p14_p5 = scmp.ge.s32.totalorder %s17_s21, 4  }
 0x2ef   :  { %16 = sbr.rel (!%p14_p5) target bundleno = 1 (0x1), region = 90 }

</bundles_post_ra>
